<compile_context>
chip_gen: v7x
topology: tpu7x:2x2x1
jax: 0.10.0
libtpu: 0.0.40
codegen_flags: <defaults>
</compile_context>

<pallas_src>
import functools

import jax
import jax.numpy as jnp
from jax.experimental import pallas as pl
from jax.experimental.pallas import tpu as pltpu

EPS = 1e-5
LEAKY_SLOPE = 0.2


def _pick_row_tile(H, W, max_rows=4096):
    """Image-row tile th for the conv kernel: th | H and (th*W) % 8 == 0."""
    if H * W <= max_rows:
        return H
    cands = [th for th in range(1, H + 1)
             if H % th == 0 and (th * W) % 8 == 0 and th * W <= max_rows]
    return max(cands) if cands else H


def _pick_flat_tile(M, max_rows=2048):
    """Row tile for the elementwise BN/LeakyReLU pass (divides M, mult of 8)."""
    if M <= max_rows:
        return M
    cands = [t for t in range(8, max_rows + 1, 8) if M % t == 0]
    return max(cands) if cands else M


# ---------------------------------------------------------------------------
# Kernel 1: fused 3x3 conv (9-tap, bf16 MXU) + bias + BN partial statistics
# ---------------------------------------------------------------------------
def _conv3x3_bias_stats_kernel(x_ref, w_ref, b_ref,          # inputs
                               y_ref, ps_ref, pq_ref,        # outputs
                               acc_ref,                      # scratch (fp32)
                               *, W, th, single_hb):
    HWt = th * W
    base = 0 if single_hb else pl.program_id(1) * HWt

    # Left/right-edge masks in *output* coordinates (identical for every kh):
    # tap kw=0 at column 0 and tap kw=2 at column W-1 would otherwise read the
    # neighbouring image row because only H (not W) is zero-padded.
    col = jax.lax.broadcasted_iota(jnp.int32, (HWt, 1), 0) % W
    mask_l = (col != 0).astype(jnp.bfloat16)
    mask_r = (col != (W - 1)).astype(jnp.bfloat16)

    acc_ref[...] = jnp.zeros_like(acc_ref)
    for kh in range(3):
        for kw in range(3):
            start = base + (kh + 1) * W + (kw - 1)
            a = x_ref[0, pl.ds(start, HWt), :].astype(jnp.bfloat16)
            if kw == 0:
                a = a * mask_l
            elif kw == 2:
                a = a * mask_r
            acc_ref[...] += jnp.dot(a, w_ref[kh, kw],
                                    preferred_element_type=jnp.float32)

    y = acc_ref[...] + b_ref[...]                     # bias in fp32
    y_ref[0] = y
    # BatchNorm partial statistics, computed in the epilogue (fp32).
    ps_ref[0, 0] = jnp.sum(y, axis=0, keepdims=True)
    pq_ref[0, 0] = jnp.sum(y * y, axis=0, keepdims=True)


def _conv3x3_bias_stats(xflat, w_taps, bias, *, N, H, W, Cin, Cout, th):
    HB = H // th
    HWt = th * W
    kernel = functools.partial(_conv3x3_bias_stats_kernel,
                               W=W, th=th, single_hb=(HB == 1))
    return pl.pallas_call(
        kernel,
        out_shape=(jax.ShapeDtypeStruct((N, H * W, Cout), jnp.float32),
                   jax.ShapeDtypeStruct((N, HB, 1, Cout), jnp.float32),
                   jax.ShapeDtypeStruct((N, HB, 1, Cout), jnp.float32)),
        grid_spec=pltpu.PrefetchScalarGridSpec(
            num_scalar_prefetch=0,
            grid=(N, HB),
            in_specs=[
                # full per-batch padded/flattened slab (resident across hb)
                pl.BlockSpec((1, (H + 4) * W, Cin), lambda n, hb: (n, 0, 0)),
                # weights: (kh, kw, Cin, Cout), bf16
                pl.BlockSpec((3, 3, Cin, Cout), lambda n, hb: (0, 0, 0, 0)),
                # bias: (1, Cout)
                pl.BlockSpec((1, Cout), lambda n, hb: (0, 0)),
            ],
            out_specs=(
                pl.BlockSpec((1, HWt, Cout), lambda n, hb: (n, hb, 0)),
                pl.BlockSpec((1, 1, 1, Cout), lambda n, hb: (n, hb, 0, 0)),
                pl.BlockSpec((1, 1, 1, Cout), lambda n, hb: (n, hb, 0, 0)),
            ),
            scratch_shapes=[pltpu.VMEM((HWt, Cout), jnp.float32)],
        ),
        compiler_params=pltpu.CompilerParams(
            dimension_semantics=("parallel", "parallel"),
            vmem_limit_bytes=48 * 1024 * 1024),
    )(xflat, w_taps, bias)


# ---------------------------------------------------------------------------
# Kernel 2: fused BatchNorm affine + LeakyReLU (fp32, large row tiles)
# ---------------------------------------------------------------------------
def _bn_affine_leaky_kernel(y_ref, sc_ref, sh_ref, o_ref):
    z = y_ref[0] * sc_ref[...] + sh_ref[...]
    o_ref[0] = jnp.where(z > 0, z, LEAKY_SLOPE * z)


def _bn_affine_leaky(y, scale, shift, *, N, HW, Cout, tr):
    RB = HW // tr
    return pl.pallas_call(
        _bn_affine_leaky_kernel,
        out_shape=jax.ShapeDtypeStruct((N, HW, Cout), jnp.float32),
        grid_spec=pltpu.PrefetchScalarGridSpec(
            num_scalar_prefetch=0,
            grid=(N, RB),
            in_specs=[pl.BlockSpec((1, tr, Cout), lambda n, r: (n, r, 0)),
                      pl.BlockSpec((1, Cout), lambda n, r: (0, 0)),
                      pl.BlockSpec((1, Cout), lambda n, r: (0, 0))],
            out_specs=pl.BlockSpec((1, tr, Cout), lambda n, r: (n, r, 0)),
        ),
        compiler_params=pltpu.CompilerParams(
            dimension_semantics=("parallel", "parallel")),
    )(y, scale.reshape(1, Cout), shift.reshape(1, Cout))


# ---------------------------------------------------------------------------
# vgg_layer forward (PyTorch NCHW I/O convention)
# ---------------------------------------------------------------------------
def vgg_layer_forward(params, x_nchw):
    w, b = params["w"], params["b"]
    gamma, beta = params["gamma"], params["beta"]
    N, Cin, H, W = x_nchw.shape
    Cout = w.shape[0]

    # NCHW -> NHWC, pad 2 zero rows top/bottom, flatten spatial (fused by XLA).
    x = jnp.transpose(x_nchw, (0, 2, 3, 1))
    xh = jnp.pad(x, ((0, 0), (2, 2), (0, 0), (0, 0)))
    xflat = xh.reshape(N, (H + 4) * W, Cin)

    # PyTorch (Cout, Cin, kh, kw) -> per-tap (kh, kw, Cin, Cout), bf16 for MXU.
    w_taps = jnp.transpose(w, (2, 3, 1, 0)).astype(jnp.bfloat16)
    bias = b.reshape(1, Cout).astype(jnp.float32)

    th = _pick_row_tile(H, W)
    y, ps, pq = _conv3x3_bias_stats(xflat, w_taps, bias,
                                    N=N, H=H, W=W, Cin=Cin, Cout=Cout, th=th)

    # Finish the BatchNorm reduction over the tiny per-tile partials (plain JAX).
    # TODO(synk): E[x^2]-E[x]^2 in fp32 is fine at these magnitudes; switch to a
    # shifted/Welford reduction if activations grow very large.
    cnt = N * H * W
    mean = jnp.sum(ps, axis=(0, 1, 2)) / cnt
    var = jnp.maximum(jnp.sum(pq, axis=(0, 1, 2)) / cnt - mean * mean, 0.0)
    scale = gamma / jnp.sqrt(var + EPS)
    shift = beta - mean * scale

    tr = _pick_flat_tile(H * W)
    out = _bn_affine_leaky(y, scale, shift, N=N, HW=H * W, Cout=Cout, tr=tr)
    return jnp.transpose(out.reshape(N, H, W, Cout), (0, 3, 1, 2))


# ---------------------------------------------------------------------------
# Pure-JAX fp32 reference (mirrors the PyTorch module in training mode)
# ---------------------------------------------------------------------------
def _reference_forward(params, x):
    y = jax.lax.conv_general_dilated(
        x, params["w"], window_strides=(1, 1), padding="SAME",
        dimension_numbers=("NCHW", "OIHW", "NCHW"))
    y = y + params["b"][None, :, None, None]
    mean = jnp.mean(y, axis=(0, 2, 3), keepdims=True)
    var = jnp.var(y, axis=(0, 2, 3), keepdims=True)          # biased, BN-train
    z = (y - mean) / jnp.sqrt(var + EPS)
    z = z * params["gamma"][None, :, None, None] + params["beta"][None, :, None, None]
    return jnp.where(z > 0, z, LEAKY_SLOPE * z)


if __name__ == "__main__":
    key = jax.random.PRNGKey(0)
    N, Cin, Cout, H, W = 2, 8, 16, 16, 16           # batch>=2 for train-mode BN
    kx, kw, kb = jax.random.split(key, 3)
    x = jax.random.normal(kx, (N, Cin, H, W), jnp.float32)
    params = {
        "w": jax.random.normal(kw, (Cout, Cin, 3, 3), jnp.float32)
             * (2.0 / (Cin * 9)) ** 0.5,
        "b": 0.01 * jax.random.normal(kb, (Cout,), jnp.float32),
        "gamma": jnp.ones((Cout,), jnp.float32),
        "beta": jnp.zeros((Cout,), jnp.float32),
    }

    out = jax.block_until_ready(jax.jit(vgg_layer_forward)(params, x))
    assert out.shape == (N, Cout, H, W), out.shape
    assert bool(jnp.all(jnp.isfinite(out)))

    ref = _reference_forward(params, x)
    err = float(jnp.max(jnp.abs(out - ref)))
    assert err < 6e-2, f"max abs err {err}"          # bf16-MXU tolerance
    print("KERNEL_OK")
</pallas_src>

<mosaic_0001>
module attributes {stable_mosaic.version = 11 : i64} {
  func.func @_conv3x3_bias_stats_kernel(%arg0: i32, %arg1: i32, %arg2: memref<1x320x8xf32, #tpu.memory_space<vmem>>, %arg3: memref<3x3x8x16xbf16, #tpu.memory_space<vmem>>, %arg4: memref<1x16xf32, #tpu.memory_space<vmem>>, %arg5: memref<1x256x16xf32, #tpu.memory_space<vmem>>, %arg6: memref<1x1x1x16xf32, #tpu.memory_space<vmem>>, %arg7: memref<1x1x1x16xf32, #tpu.memory_space<vmem>>, %arg8: memref<256x16xf32, #tpu.memory_space<vmem>>) attributes {dimension_semantics = [#tpu.dimension_semantics<parallel>, #tpu.dimension_semantics<parallel>], iteration_bounds = array<i64: 2, 1>, scalar_prefetch = 0 : i64, scratch_operands = 1 : i64, tpu.core_type = #tpu.core_type<tc>, window_params = [{transform_indices = @transform_0, window_bounds = array<i64: 1, 320, 8>}, {pipeline_mode = #tpu.pipeline_mode<synchronous>, transform_indices = @transform_1, window_bounds = array<i64: 3, 3, 8, 16>}, {pipeline_mode = #tpu.pipeline_mode<synchronous>, transform_indices = @transform_2, window_bounds = array<i64: 1, 16>}, {transform_indices = @transform_3, window_bounds = array<i64: 1, 256, 16>}, {transform_indices = @transform_4, window_bounds = array<i64: 1, 1, 1, 16>}, {transform_indices = @transform_5, window_bounds = array<i64: 1, 1, 1, 16>}]} {
    %0 = tpu.iota {dimensions = array<i32: 0>} : vector<256x1xi32>
    %c16_i32 = arith.constant 16 : i32
    %c0_i32 = arith.constant 0 : i32
    %1 = arith.cmpi eq, %c16_i32, %c0_i32 : i32
    %c1_i32 = arith.constant 1 : i32
    %2 = arith.select %1, %c1_i32, %c16_i32 : i32
    %3 = vector.broadcast %2 : i32 to vector<256x1xi32>
    %4 = arith.remsi %0, %3 : vector<256x1xi32>
    %c0_i32_0 = arith.constant 0 : i32
    %5 = vector.broadcast %c0_i32_0 : i32 to vector<256x1xi32>
    %6 = arith.cmpi ne, %4, %5 : vector<256x1xi32>
    %c0_i32_1 = arith.constant 0 : i32
    %7 = vector.broadcast %c0_i32_1 : i32 to vector<256x1xi32>
    %8 = arith.cmpi slt, %4, %7 : vector<256x1xi32>
    %c0_i32_2 = arith.constant 0 : i32
    %9 = arith.cmpi slt, %2, %c0_i32_2 : i32
    %10 = vector.broadcast %9 : i1 to vector<256x1xi1>
    %11 = vector.broadcast %10 : vector<256x1xi1> to vector<256x1xi1>
    %12 = arith.xori %8, %11 : vector<256x1xi1>
    %13 = arith.andi %12, %6 : vector<256x1xi1>
    %14 = vector.broadcast %2 : i32 to vector<256x1xi32>
    %15 = arith.addi %4, %14 : vector<256x1xi32>
    %16 = arith.select %13, %15, %4 : vector<256x1xi1>, vector<256x1xi32>
    %c0_i32_3 = arith.constant 0 : i32
    %17 = vector.broadcast %c0_i32_3 : i32 to vector<256x1xi32>
    %18 = arith.cmpi ne, %16, %17 : vector<256x1xi32>
    %19 = arith.extui %18 : vector<256x1xi1> to vector<256x1xi32>
    %20 = arith.sitofp %19 : vector<256x1xi32> to vector<256x1xf32>
    %21 = arith.truncf %20 : vector<256x1xf32> to vector<256x1xbf16>
    %c15_i32 = arith.constant 15 : i32
    %22 = vector.broadcast %c15_i32 : i32 to vector<256x1xi32>
    %23 = arith.cmpi ne, %16, %22 : vector<256x1xi32>
    %24 = arith.extui %23 : vector<256x1xi1> to vector<256x1xi32>
    %25 = arith.sitofp %24 : vector<256x1xi32> to vector<256x1xf32>
    %26 = arith.truncf %25 : vector<256x1xf32> to vector<256x1xbf16>
    %cst = arith.constant 0.000000e+00 : f32
    %27 = vector.broadcast %cst : f32 to vector<256x16xf32>
    %c0 = arith.constant 0 : index
    %c0_4 = arith.constant 0 : index
    %28 = vector.load %arg8[%c0, %c0_4] : memref<256x16xf32, #tpu.memory_space<vmem>>, vector<256x16xf32>
    tpu.vector_store %arg8[%c0, %c0_4], %27 {strides = array<i32>} : memref<256x16xf32, #tpu.memory_space<vmem>>, vector<256x16xf32>,
    %c0_5 = arith.constant 0 : index
    %c15 = arith.constant 15 : index
    %c0_6 = arith.constant 0 : index
    %29 = vector.load %arg2[%c0_5, %c15, %c0_6] : memref<1x320x8xf32, #tpu.memory_space<vmem>>, vector<1x256x8xf32>
    %30 = vector.shape_cast %29 : vector<1x256x8xf32> to vector<256x8xf32>
    %31 = arith.truncf %30 : vector<256x8xf32> to vector<256x8xbf16>
    %32 = vector.broadcast %21 : vector<256x1xbf16> to vector<256x8xbf16>
    %33 = arith.mulf %31, %32 : vector<256x8xbf16>
    %c0_7 = arith.constant 0 : index
    %c0_8 = arith.constant 0 : index
    %34 = vector.load %arg8[%c0_7, %c0_8] : memref<256x16xf32, #tpu.memory_space<vmem>>, vector<256x16xf32>
    %c0_9 = arith.constant 0 : index
    %c0_10 = arith.constant 0 : index
    %c0_11 = arith.constant 0 : index
    %c0_12 = arith.constant 0 : index
    %35 = vector.load %arg3[%c0_9, %c0_10, %c0_11, %c0_12] : memref<3x3x8x16xbf16, #tpu.memory_space<vmem>>, vector<1x1x8x16xbf16>
    %36 = vector.shape_cast %35 : vector<1x1x8x16xbf16> to vector<8x16xbf16>
    %cst_13 = arith.constant dense<0.000000e+00> : vector<256x16xf32>
    %37 = tpu.matmul %33, %36, %cst_13 {dimension_numbers = #tpu.dot_dimension_numbers<[1], [0], [0], [1], [0, 0, 1, 1], [], []>} : vector<256x8xbf16>, vector<8x16xbf16>, vector<256x16xf32> -> vector<256x16xf32>
    %38 = arith.addf %34, %37 : vector<256x16xf32>
    %c0_14 = arith.constant 0 : index
    %c0_15 = arith.constant 0 : index
    %39 = vector.load %arg8[%c0_14, %c0_15] : memref<256x16xf32, #tpu.memory_space<vmem>>, vector<256x16xf32>
    tpu.vector_store %arg8[%c0_14, %c0_15], %38 {strides = array<i32>} : memref<256x16xf32, #tpu.memory_space<vmem>>, vector<256x16xf32>,
    %c0_16 = arith.constant 0 : index
    %c16 = arith.constant 16 : index
    %c0_17 = arith.constant 0 : index
    %40 = vector.load %arg2[%c0_16, %c16, %c0_17] : memref<1x320x8xf32, #tpu.memory_space<vmem>>, vector<1x256x8xf32>
    %41 = vector.shape_cast %40 : vector<1x256x8xf32> to vector<256x8xf32>
    %42 = arith.truncf %41 : vector<256x8xf32> to vector<256x8xbf16>
    %c0_18 = arith.constant 0 : index
    %c0_19 = arith.constant 0 : index
    %43 = vector.load %arg8[%c0_18, %c0_19] : memref<256x16xf32, #tpu.memory_space<vmem>>, vector<256x16xf32>
    %c0_20 = arith.constant 0 : index
    %c1 = arith.constant 1 : index
    %c0_21 = arith.constant 0 : index
    %c0_22 = arith.constant 0 : index
    %44 = vector.load %arg3[%c0_20, %c1, %c0_21, %c0_22] : memref<3x3x8x16xbf16, #tpu.memory_space<vmem>>, vector<1x1x8x16xbf16>
    %45 = vector.shape_cast %44 : vector<1x1x8x16xbf16> to vector<8x16xbf16>
    %cst_23 = arith.constant dense<0.000000e+00> : vector<256x16xf32>
    %46 = tpu.matmul %42, %45, %cst_23 {dimension_numbers = #tpu.dot_dimension_numbers<[1], [0], [0], [1], [0, 0, 1, 1], [], []>} : vector<256x8xbf16>, vector<8x16xbf16>, vector<256x16xf32> -> vector<256x16xf32>
    %47 = arith.addf %43, %46 : vector<256x16xf32>
    %c0_24 = arith.constant 0 : index
    %c0_25 = arith.constant 0 : index
    %48 = vector.load %arg8[%c0_24, %c0_25] : memref<256x16xf32, #tpu.memory_space<vmem>>, vector<256x16xf32>
    tpu.vector_store %arg8[%c0_24, %c0_25], %47 {strides = array<i32>} : memref<256x16xf32, #tpu.memory_space<vmem>>, vector<256x16xf32>,
    %c0_26 = arith.constant 0 : index
    %c17 = arith.constant 17 : index
    %c0_27 = arith.constant 0 : index
    %49 = vector.load %arg2[%c0_26, %c17, %c0_27] : memref<1x320x8xf32, #tpu.memory_space<vmem>>, vector<1x256x8xf32>
    %50 = vector.shape_cast %49 : vector<1x256x8xf32> to vector<256x8xf32>
    %51 = arith.truncf %50 : vector<256x8xf32> to vector<256x8xbf16>
    %52 = vector.broadcast %26 : vector<256x1xbf16> to vector<256x8xbf16>
    %53 = arith.mulf %51, %52 : vector<256x8xbf16>
    %c0_28 = arith.constant 0 : index
    %c0_29 = arith.constant 0 : index
    %54 = vector.load %arg8[%c0_28, %c0_29] : memref<256x16xf32, #tpu.memory_space<vmem>>, vector<256x16xf32>
    %c0_30 = arith.constant 0 : index
    %c2 = arith.constant 2 : index
    %c0_31 = arith.constant 0 : index
    %c0_32 = arith.constant 0 : index
    %55 = vector.load %arg3[%c0_30, %c2, %c0_31, %c0_32] : memref<3x3x8x16xbf16, #tpu.memory_space<vmem>>, vector<1x1x8x16xbf16>
    %56 = vector.shape_cast %55 : vector<1x1x8x16xbf16> to vector<8x16xbf16>
    %cst_33 = arith.constant dense<0.000000e+00> : vector<256x16xf32>
    %57 = tpu.matmul %53, %56, %cst_33 {dimension_numbers = #tpu.dot_dimension_numbers<[1], [0], [0], [1], [0, 0, 1, 1], [], []>} : vector<256x8xbf16>, vector<8x16xbf16>, vector<256x16xf32> -> vector<256x16xf32>
    %58 = arith.addf %54, %57 : vector<256x16xf32>
    %c0_34 = arith.constant 0 : index
    %c0_35 = arith.constant 0 : index
    %59 = vector.load %arg8[%c0_34, %c0_35] : memref<256x16xf32, #tpu.memory_space<vmem>>, vector<256x16xf32>
    tpu.vector_store %arg8[%c0_34, %c0_35], %58 {strides = array<i32>} : memref<256x16xf32, #tpu.memory_space<vmem>>, vector<256x16xf32>,
    %c0_36 = arith.constant 0 : index
    %c31 = arith.constant 31 : index
    %c0_37 = arith.constant 0 : index
    %60 = vector.load %arg2[%c0_36, %c31, %c0_37] : memref<1x320x8xf32, #tpu.memory_space<vmem>>, vector<1x256x8xf32>
    %61 = vector.shape_cast %60 : vector<1x256x8xf32> to vector<256x8xf32>
    %62 = arith.truncf %61 : vector<256x8xf32> to vector<256x8xbf16>
    %63 = vector.broadcast %21 : vector<256x1xbf16> to vector<256x8xbf16>
    %64 = arith.mulf %62, %63 : vector<256x8xbf16>
    %c0_38 = arith.constant 0 : index
    %c0_39 = arith.constant 0 : index
    %65 = vector.load %arg8[%c0_38, %c0_39] : memref<256x16xf32, #tpu.memory_space<vmem>>, vector<256x16xf32>
    %c1_40 = arith.constant 1 : index
    %c0_41 = arith.constant 0 : index
    %c0_42 = arith.constant 0 : index
    %c0_43 = arith.constant 0 : index
    %66 = vector.load %arg3[%c1_40, %c0_41, %c0_42, %c0_43] : memref<3x3x8x16xbf16, #tpu.memory_space<vmem>>, vector<1x1x8x16xbf16>
    %67 = vector.shape_cast %66 : vector<1x1x8x16xbf16> to vector<8x16xbf16>
    %cst_44 = arith.constant dense<0.000000e+00> : vector<256x16xf32>
    %68 = tpu.matmul %64, %67, %cst_44 {dimension_numbers = #tpu.dot_dimension_numbers<[1], [0], [0], [1], [0, 0, 1, 1], [], []>} : vector<256x8xbf16>, vector<8x16xbf16>, vector<256x16xf32> -> vector<256x16xf32>
    %69 = arith.addf %65, %68 : vector<256x16xf32>
    %c0_45 = arith.constant 0 : index
    %c0_46 = arith.constant 0 : index
    %70 = vector.load %arg8[%c0_45, %c0_46] : memref<256x16xf32, #tpu.memory_space<vmem>>, vector<256x16xf32>
    tpu.vector_store %arg8[%c0_45, %c0_46], %69 {strides = array<i32>} : memref<256x16xf32, #tpu.memory_space<vmem>>, vector<256x16xf32>,
    %c0_47 = arith.constant 0 : index
    %c32 = arith.constant 32 : index
    %c0_48 = arith.constant 0 : index
    %71 = vector.load %arg2[%c0_47, %c32, %c0_48] : memref<1x320x8xf32, #tpu.memory_space<vmem>>, vector<1x256x8xf32>
    %72 = vector.shape_cast %71 : vector<1x256x8xf32> to vector<256x8xf32>
    %73 = arith.truncf %72 : vector<256x8xf32> to vector<256x8xbf16>
    %c0_49 = arith.constant 0 : index
    %c0_50 = arith.constant 0 : index
    %74 = vector.load %arg8[%c0_49, %c0_50] : memref<256x16xf32, #tpu.memory_space<vmem>>, vector<256x16xf32>
    %c1_51 = arith.constant 1 : index
    %c1_52 = arith.constant 1 : index
    %c0_53 = arith.constant 0 : index
    %c0_54 = arith.constant 0 : index
    %75 = vector.load %arg3[%c1_51, %c1_52, %c0_53, %c0_54] : memref<3x3x8x16xbf16, #tpu.memory_space<vmem>>, vector<1x1x8x16xbf16>
    %76 = vector.shape_cast %75 : vector<1x1x8x16xbf16> to vector<8x16xbf16>
    %cst_55 = arith.constant dense<0.000000e+00> : vector<256x16xf32>
    %77 = tpu.matmul %73, %76, %cst_55 {dimension_numbers = #tpu.dot_dimension_numbers<[1], [0], [0], [1], [0, 0, 1, 1], [], []>} : vector<256x8xbf16>, vector<8x16xbf16>, vector<256x16xf32> -> vector<256x16xf32>
    %78 = arith.addf %74, %77 : vector<256x16xf32>
    %c0_56 = arith.constant 0 : index
    %c0_57 = arith.constant 0 : index
    %79 = vector.load %arg8[%c0_56, %c0_57] : memref<256x16xf32, #tpu.memory_space<vmem>>, vector<256x16xf32>
    tpu.vector_store %arg8[%c0_56, %c0_57], %78 {strides = array<i32>} : memref<256x16xf32, #tpu.memory_space<vmem>>, vector<256x16xf32>,
    %c0_58 = arith.constant 0 : index
    %c33 = arith.constant 33 : index
    %c0_59 = arith.constant 0 : index
    %80 = vector.load %arg2[%c0_58, %c33, %c0_59] : memref<1x320x8xf32, #tpu.memory_space<vmem>>, vector<1x256x8xf32>
    %81 = vector.shape_cast %80 : vector<1x256x8xf32> to vector<256x8xf32>
    %82 = arith.truncf %81 : vector<256x8xf32> to vector<256x8xbf16>
    %83 = vector.broadcast %26 : vector<256x1xbf16> to vector<256x8xbf16>
    %84 = arith.mulf %82, %83 : vector<256x8xbf16>
    %c0_60 = arith.constant 0 : index
    %c0_61 = arith.constant 0 : index
    %85 = vector.load %arg8[%c0_60, %c0_61] : memref<256x16xf32, #tpu.memory_space<vmem>>, vector<256x16xf32>
    %c1_62 = arith.constant 1 : index
    %c2_63 = arith.constant 2 : index
    %c0_64 = arith.constant 0 : index
    %c0_65 = arith.constant 0 : index
    %86 = vector.load %arg3[%c1_62, %c2_63, %c0_64, %c0_65] : memref<3x3x8x16xbf16, #tpu.memory_space<vmem>>, vector<1x1x8x16xbf16>
    %87 = vector.shape_cast %86 : vector<1x1x8x16xbf16> to vector<8x16xbf16>
    %cst_66 = arith.constant dense<0.000000e+00> : vector<256x16xf32>
    %88 = tpu.matmul %84, %87, %cst_66 {dimension_numbers = #tpu.dot_dimension_numbers<[1], [0], [0], [1], [0, 0, 1, 1], [], []>} : vector<256x8xbf16>, vector<8x16xbf16>, vector<256x16xf32> -> vector<256x16xf32>
    %89 = arith.addf %85, %88 : vector<256x16xf32>
    %c0_67 = arith.constant 0 : index
    %c0_68 = arith.constant 0 : index
    %90 = vector.load %arg8[%c0_67, %c0_68] : memref<256x16xf32, #tpu.memory_space<vmem>>, vector<256x16xf32>
    tpu.vector_store %arg8[%c0_67, %c0_68], %89 {strides = array<i32>} : memref<256x16xf32, #tpu.memory_space<vmem>>, vector<256x16xf32>,
    %c0_69 = arith.constant 0 : index
    %c47 = arith.constant 47 : index
    %c0_70 = arith.constant 0 : index
    %91 = vector.load %arg2[%c0_69, %c47, %c0_70] : memref<1x320x8xf32, #tpu.memory_space<vmem>>, vector<1x256x8xf32>
    %92 = vector.shape_cast %91 : vector<1x256x8xf32> to vector<256x8xf32>
    %93 = arith.truncf %92 : vector<256x8xf32> to vector<256x8xbf16>
    %94 = vector.broadcast %21 : vector<256x1xbf16> to vector<256x8xbf16>
    %95 = arith.mulf %93, %94 : vector<256x8xbf16>
    %c0_71 = arith.constant 0 : index
    %c0_72 = arith.constant 0 : index
    %96 = vector.load %arg8[%c0_71, %c0_72] : memref<256x16xf32, #tpu.memory_space<vmem>>, vector<256x16xf32>
    %c2_73 = arith.constant 2 : index
    %c0_74 = arith.constant 0 : index
    %c0_75 = arith.constant 0 : index
    %c0_76 = arith.constant 0 : index
    %97 = vector.load %arg3[%c2_73, %c0_74, %c0_75, %c0_76] : memref<3x3x8x16xbf16, #tpu.memory_space<vmem>>, vector<1x1x8x16xbf16>
    %98 = vector.shape_cast %97 : vector<1x1x8x16xbf16> to vector<8x16xbf16>
    %cst_77 = arith.constant dense<0.000000e+00> : vector<256x16xf32>
    %99 = tpu.matmul %95, %98, %cst_77 {dimension_numbers = #tpu.dot_dimension_numbers<[1], [0], [0], [1], [0, 0, 1, 1], [], []>} : vector<256x8xbf16>, vector<8x16xbf16>, vector<256x16xf32> -> vector<256x16xf32>
    %100 = arith.addf %96, %99 : vector<256x16xf32>
    %c0_78 = arith.constant 0 : index
    %c0_79 = arith.constant 0 : index
    %101 = vector.load %arg8[%c0_78, %c0_79] : memref<256x16xf32, #tpu.memory_space<vmem>>, vector<256x16xf32>
    tpu.vector_store %arg8[%c0_78, %c0_79], %100 {strides = array<i32>} : memref<256x16xf32, #tpu.memory_space<vmem>>, vector<256x16xf32>,
    %c0_80 = arith.constant 0 : index
    %c48 = arith.constant 48 : index
    %c0_81 = arith.constant 0 : index
    %102 = vector.load %arg2[%c0_80, %c48, %c0_81] : memref<1x320x8xf32, #tpu.memory_space<vmem>>, vector<1x256x8xf32>
    %103 = vector.shape_cast %102 : vector<1x256x8xf32> to vector<256x8xf32>
    %104 = arith.truncf %103 : vector<256x8xf32> to vector<256x8xbf16>
    %c0_82 = arith.constant 0 : index
    %c0_83 = arith.constant 0 : index
    %105 = vector.load %arg8[%c0_82, %c0_83] : memref<256x16xf32, #tpu.memory_space<vmem>>, vector<256x16xf32>
    %c2_84 = arith.constant 2 : index
    %c1_85 = arith.constant 1 : index
    %c0_86 = arith.constant 0 : index
    %c0_87 = arith.constant 0 : index
    %106 = vector.load %arg3[%c2_84, %c1_85, %c0_86, %c0_87] : memref<3x3x8x16xbf16, #tpu.memory_space<vmem>>, vector<1x1x8x16xbf16>
    %107 = vector.shape_cast %106 : vector<1x1x8x16xbf16> to vector<8x16xbf16>
    %cst_88 = arith.constant dense<0.000000e+00> : vector<256x16xf32>
    %108 = tpu.matmul %104, %107, %cst_88 {dimension_numbers = #tpu.dot_dimension_numbers<[1], [0], [0], [1], [0, 0, 1, 1], [], []>} : vector<256x8xbf16>, vector<8x16xbf16>, vector<256x16xf32> -> vector<256x16xf32>
    %109 = arith.addf %105, %108 : vector<256x16xf32>
    %c0_89 = arith.constant 0 : index
    %c0_90 = arith.constant 0 : index
    %110 = vector.load %arg8[%c0_89, %c0_90] : memref<256x16xf32, #tpu.memory_space<vmem>>, vector<256x16xf32>
    tpu.vector_store %arg8[%c0_89, %c0_90], %109 {strides = array<i32>} : memref<256x16xf32, #tpu.memory_space<vmem>>, vector<256x16xf32>,
    %c0_91 = arith.constant 0 : index
    %c49 = arith.constant 49 : index
    %c0_92 = arith.constant 0 : index
    %111 = vector.load %arg2[%c0_91, %c49, %c0_92] : memref<1x320x8xf32, #tpu.memory_space<vmem>>, vector<1x256x8xf32>
    %112 = vector.shape_cast %111 : vector<1x256x8xf32> to vector<256x8xf32>
    %113 = arith.truncf %112 : vector<256x8xf32> to vector<256x8xbf16>
    %114 = vector.broadcast %26 : vector<256x1xbf16> to vector<256x8xbf16>
    %115 = arith.mulf %113, %114 : vector<256x8xbf16>
    %c0_93 = arith.constant 0 : index
    %c0_94 = arith.constant 0 : index
    %116 = vector.load %arg8[%c0_93, %c0_94] : memref<256x16xf32, #tpu.memory_space<vmem>>, vector<256x16xf32>
    %c2_95 = arith.constant 2 : index
    %c2_96 = arith.constant 2 : index
    %c0_97 = arith.constant 0 : index
    %c0_98 = arith.constant 0 : index
    %117 = vector.load %arg3[%c2_95, %c2_96, %c0_97, %c0_98] : memref<3x3x8x16xbf16, #tpu.memory_space<vmem>>, vector<1x1x8x16xbf16>
    %118 = vector.shape_cast %117 : vector<1x1x8x16xbf16> to vector<8x16xbf16>
    %cst_99 = arith.constant dense<0.000000e+00> : vector<256x16xf32>
    %119 = tpu.matmul %115, %118, %cst_99 {dimension_numbers = #tpu.dot_dimension_numbers<[1], [0], [0], [1], [0, 0, 1, 1], [], []>} : vector<256x8xbf16>, vector<8x16xbf16>, vector<256x16xf32> -> vector<256x16xf32>
    %120 = arith.addf %116, %119 : vector<256x16xf32>
    %c0_100 = arith.constant 0 : index
    %c0_101 = arith.constant 0 : index
    %121 = vector.load %arg8[%c0_100, %c0_101] : memref<256x16xf32, #tpu.memory_space<vmem>>, vector<256x16xf32>
    tpu.vector_store %arg8[%c0_100, %c0_101], %120 {strides = array<i32>} : memref<256x16xf32, #tpu.memory_space<vmem>>, vector<256x16xf32>,
    %c0_102 = arith.constant 0 : index
    %c0_103 = arith.constant 0 : index
    %122 = vector.load %arg8[%c0_102, %c0_103] : memref<256x16xf32, #tpu.memory_space<vmem>>, vector<256x16xf32>
    %c0_104 = arith.constant 0 : index
    %c0_105 = arith.constant 0 : index
    %123 = vector.load %arg4[%c0_104, %c0_105] : memref<1x16xf32, #tpu.memory_space<vmem>>, vector<1x16xf32>
    %124 = vector.broadcast %123 : vector<1x16xf32> to vector<256x16xf32>
    %125 = arith.addf %122, %124 : vector<256x16xf32>
    %c0_106 = arith.constant 0 : index
    %c0_107 = arith.constant 0 : index
    %c0_108 = arith.constant 0 : index
    %126 = vector.load %arg5[%c0_106, %c0_107, %c0_108] : memref<1x256x16xf32, #tpu.memory_space<vmem>>, vector<1x256x16xf32>
    %127 = vector.shape_cast %126 : vector<1x256x16xf32> to vector<256x16xf32>
    %128 = vector.shape_cast %125 : vector<256x16xf32> to vector<1x256x16xf32>
    tpu.vector_store %arg5[%c0_106, %c0_107, %c0_108], %128 {strides = array<i32>} : memref<1x256x16xf32, #tpu.memory_space<vmem>>, vector<1x256x16xf32>,
    %cst_109 = arith.constant dense<0.000000e+00> : vector<16xf32>
    %129 = vector.multi_reduction <add>, %125, %cst_109 [0] : vector<256x16xf32> to vector<16xf32>
    %130 = vector.shape_cast %129 : vector<16xf32> to vector<1x16xf32>
    %c0_110 = arith.constant 0 : index
    %c0_111 = arith.constant 0 : index
    %c0_112 = arith.constant 0 : index
    %c0_113 = arith.constant 0 : index
    %131 = vector.load %arg6[%c0_110, %c0_111, %c0_112, %c0_113] : memref<1x1x1x16xf32, #tpu.memory_space<vmem>>, vector<1x1x1x16xf32>
    %132 = vector.shape_cast %131 : vector<1x1x1x16xf32> to vector<1x16xf32>
    %133 = vector.shape_cast %130 : vector<1x16xf32> to vector<1x1x1x16xf32>
    tpu.vector_store %arg6[%c0_110, %c0_111, %c0_112, %c0_113], %133 {strides = array<i32>} : memref<1x1x1x16xf32, #tpu.memory_space<vmem>>, vector<1x1x1x16xf32>,
    %134 = arith.mulf %125, %125 : vector<256x16xf32>
    %cst_114 = arith.constant dense<0.000000e+00> : vector<16xf32>
    %135 = vector.multi_reduction <add>, %134, %cst_114 [0] : vector<256x16xf32> to vector<16xf32>
    %136 = vector.shape_cast %135 : vector<16xf32> to vector<1x16xf32>
    %c0_115 = arith.constant 0 : index
    %c0_116 = arith.constant 0 : index
    %c0_117 = arith.constant 0 : index
    %c0_118 = arith.constant 0 : index
    %137 = vector.load %arg7[%c0_115, %c0_116, %c0_117, %c0_118] : memref<1x1x1x16xf32, #tpu.memory_space<vmem>>, vector<1x1x1x16xf32>
    %138 = vector.shape_cast %137 : vector<1x1x1x16xf32> to vector<1x16xf32>
    %139 = vector.shape_cast %136 : vector<1x16xf32> to vector<1x1x1x16xf32>
    tpu.vector_store %arg7[%c0_115, %c0_116, %c0_117, %c0_118], %139 {strides = array<i32>} : memref<1x1x1x16xf32, #tpu.memory_space<vmem>>, vector<1x1x1x16xf32>,
    return
  }
  func.func @transform_0(%arg0: i32, %arg1: i32) -> (i32, i32, i32) {
    %c0_i32 = arith.constant 0 : i32
    %c0_i32_0 = arith.constant 0 : i32
    %c0_i32_1 = arith.constant 0 : i32
    return %arg0, %c0_i32, %c0_i32_0 : i32, i32, i32
  }
  func.func @transform_1(%arg0: i32, %arg1: i32) -> (i32, i32, i32, i32) {
    %c0_i32 = arith.constant 0 : i32
    %c0_i32_0 = arith.constant 0 : i32
    %c0_i32_1 = arith.constant 0 : i32
    %c0_i32_2 = arith.constant 0 : i32
    %c0_i32_3 = arith.constant 0 : i32
    return %c0_i32, %c0_i32_0, %c0_i32_1, %c0_i32_2 : i32, i32, i32, i32
  }
  func.func @transform_2(%arg0: i32, %arg1: i32) -> (i32, i32) {
    %c0_i32 = arith.constant 0 : i32
    %c0_i32_0 = arith.constant 0 : i32
    %c0_i32_1 = arith.constant 0 : i32
    return %c0_i32, %c0_i32_0 : i32, i32
  }
  func.func @transform_3(%arg0: i32, %arg1: i32) -> (i32, i32, i32) {
    %c0_i32 = arith.constant 0 : i32
    %c0_i32_0 = arith.constant 0 : i32
    return %arg0, %arg1, %c0_i32 : i32, i32, i32
  }
  func.func @transform_4(%arg0: i32, %arg1: i32) -> (i32, i32, i32, i32) {
    %c0_i32 = arith.constant 0 : i32
    %c0_i32_0 = arith.constant 0 : i32
    %c0_i32_1 = arith.constant 0 : i32
    return %arg0, %arg1, %c0_i32, %c0_i32_0 : i32, i32, i32, i32
  }
  func.func @transform_5(%arg0: i32, %arg1: i32) -> (i32, i32, i32, i32) {
    %c0_i32 = arith.constant 0 : i32
    %c0_i32_0 = arith.constant 0 : i32
    %c0_i32_1 = arith.constant 0 : i32
    return %arg0, %arg1, %c0_i32, %c0_i32_0 : i32, i32, i32, i32
  }
}

module attributes {stable_mosaic.version = 11 : i64} {
  func.func @_bn_affine_leaky_kernel(%arg0: i32, %arg1: i32, %arg2: memref<1x256x16xf32, #tpu.memory_space<vmem>>, %arg3: memref<1x16xf32, #tpu.memory_space<vmem>>, %arg4: memref<1x16xf32, #tpu.memory_space<vmem>>, %arg5: memref<1x256x16xf32, #tpu.memory_space<vmem>>) attributes {dimension_semantics = [#tpu.dimension_semantics<parallel>, #tpu.dimension_semantics<parallel>], iteration_bounds = array<i64: 2, 1>, scalar_prefetch = 0 : i64, scratch_operands = 0 : i64, tpu.core_type = #tpu.core_type<tc>, window_params = [{transform_indices = @transform_0, window_bounds = array<i64: 1, 256, 16>}, {pipeline_mode = #tpu.pipeline_mode<synchronous>, transform_indices = @transform_1, window_bounds = array<i64: 1, 16>}, {pipeline_mode = #tpu.pipeline_mode<synchronous>, transform_indices = @transform_2, window_bounds = array<i64: 1, 16>}, {transform_indices = @transform_3, window_bounds = array<i64: 1, 256, 16>}]} {
    %c0 = arith.constant 0 : index
    %c0_0 = arith.constant 0 : index
    %c0_1 = arith.constant 0 : index
    %0 = vector.load %arg2[%c0, %c0_0, %c0_1] : memref<1x256x16xf32, #tpu.memory_space<vmem>>, vector<1x256x16xf32>
    %1 = vector.shape_cast %0 : vector<1x256x16xf32> to vector<256x16xf32>
    %c0_2 = arith.constant 0 : index
    %c0_3 = arith.constant 0 : index
    %2 = vector.load %arg3[%c0_2, %c0_3] : memref<1x16xf32, #tpu.memory_space<vmem>>, vector<1x16xf32>
    %3 = vector.broadcast %2 : vector<1x16xf32> to vector<256x16xf32>
    %4 = arith.mulf %1, %3 : vector<256x16xf32>
    %c0_4 = arith.constant 0 : index
    %c0_5 = arith.constant 0 : index
    %5 = vector.load %arg4[%c0_4, %c0_5] : memref<1x16xf32, #tpu.memory_space<vmem>>, vector<1x16xf32>
    %6 = vector.broadcast %5 : vector<1x16xf32> to vector<256x16xf32>
    %7 = arith.addf %4, %6 : vector<256x16xf32>
    %cst = arith.constant 0.000000e+00 : f32
    %8 = vector.broadcast %cst : f32 to vector<256x16xf32>
    %9 = arith.cmpf ogt, %7, %8 : vector<256x16xf32>
    %cst_6 = arith.constant 2.000000e-01 : f32
    %10 = vector.broadcast %cst_6 : f32 to vector<256x16xf32>
    %11 = arith.mulf %10, %7 : vector<256x16xf32>
    %12 = arith.select %9, %7, %11 : vector<256x16xi1>, vector<256x16xf32>
    %c0_7 = arith.constant 0 : index
    %c0_8 = arith.constant 0 : index
    %c0_9 = arith.constant 0 : index
    %13 = vector.load %arg5[%c0_7, %c0_8, %c0_9] : memref<1x256x16xf32, #tpu.memory_space<vmem>>, vector<1x256x16xf32>
    %14 = vector.shape_cast %13 : vector<1x256x16xf32> to vector<256x16xf32>
    %15 = vector.shape_cast %12 : vector<256x16xf32> to vector<1x256x16xf32>
    tpu.vector_store %arg5[%c0_7, %c0_8, %c0_9], %15 {strides = array<i32>} : memref<1x256x16xf32, #tpu.memory_space<vmem>>, vector<1x256x16xf32>,
    return
  }
  func.func @transform_0(%arg0: i32, %arg1: i32) -> (i32, i32, i32) {
    %c0_i32 = arith.constant 0 : i32
    %c0_i32_0 = arith.constant 0 : i32
    return %arg0, %arg1, %c0_i32 : i32, i32, i32
  }
  func.func @transform_1(%arg0: i32, %arg1: i32) -> (i32, i32) {
    %c0_i32 = arith.constant 0 : i32
    %c0_i32_0 = arith.constant 0 : i32
    %c0_i32_1 = arith.constant 0 : i32
    return %c0_i32, %c0_i32_0 : i32, i32
  }
  func.func @transform_2(%arg0: i32, %arg1: i32) -> (i32, i32) {
    %c0_i32 = arith.constant 0 : i32
    %c0_i32_0 = arith.constant 0 : i32
    %c0_i32_1 = arith.constant 0 : i32
    return %c0_i32, %c0_i32_0 : i32, i32
  }
  func.func @transform_3(%arg0: i32, %arg1: i32) -> (i32, i32, i32) {
    %c0_i32 = arith.constant 0 : i32
    %c0_i32_0 = arith.constant 0 : i32
    return %arg0, %arg1, %c0_i32 : i32, i32, i32
  }
}

</mosaic_0001>

<bundles_post_ra>
// kernel: vgg_layer_forward.3
= control target key start
LH: loop header
LB: loop body
LE: loop exit
PB: predicated region body
PF: predicated region fallthrough
CT: control target
= control target key end

     0   :  { %s619_s12 = smov 0   ;;  %s621_s13 = smov 0   ;;  %s829_s0 = inlined_call_operand.vmem [shape: f32[2,256,16], index: 0, kind: input, shape index: {}]   ;;  %s830_s1 = inlined_call_operand.vmem [shape: f32[1,16], index: 1, kind: input, shape index: {}]   ;;  %s831_s2 = inlined_call_operand.vmem [shape: f32[1,16], index: 2, kind: input, shape index: {}]   ;;  %s832_s3 = inlined_call_operand.vmem [shape: f32[2,256,16], index: 3, kind: output, shape index: {}]  }
   0x1   :  { %s623_s14 = smov 0  }
   0x2 LB: > { %s25_s15 = sadd.s32 1, %s593_s13  ;;  %p540_p0 = scmp.ge.s32.totalorder %s597_s14, 1  ;;  %s597_s14 = sphi %s623_s14, %s13_s14   ;;  %s593_s13 = sphi %s621_s13, %s834_s13   ;;  %s589_s12 = sphi %s619_s12, %s833_s12  }
   0x3   : > { %p27_p1 = scmp.ge.s32.totalorder %s25_s15, 2  ;;  %p158_p2 = scmp.lt.s32.totalorder %s597_s14, 3 }
   0x5   : > { %s836_s15 = smov (%p27_p1, %s25_s15), 0  ;;  %p159_p3 = pnand %p540_p0, %p158_p2 }
   0x6   : > { %p191_p4 = scmp.lt.s32.totalorder (!%p159_p3), %s589_s12, 1  ;;  %v643_v0 = vld [vmem:[%s830_s1] ss:$0 sm:$0xff] (!%p159_p3)  ;;  %vm416_vm0 = vcmask (!%p159_p3), 130048  }
   0x7   : > { %162 = sbr.rel (%p159_p3) target bundleno = 63 (0x3f), region = 32  ;;  %v653_v1 = vld [vmem:[%s831_s2] ss:$0 sm:$0xff] (!%p159_p3) }
   0xe   : > { %s838_s12 = smov (!%p191_p4, %s589_s12), 1 }
   0xf   : > { %s549_s16 = sshll.u32 %s838_s12, 8 }
  0x10   : > { %s648_s21 = scalar_lea.vmem %s829_s0, %s549_s16  ;;  %s681_s26 = scalar_lea.vmem %s832_s3, %s549_s16 }
  0x11   : > { %v210_v2 = vld [vmem:[%s648_s21] sm:$0xff]  ;;  %v211_v3 = vld [vmem:[%s648_s21 + $0x8] sm:$0xff]  ;;  %v212_v4 = vld [vmem:[%s648_s21 + $0x10] sm:$0xff] }
  0x12   : > { %v249_v5 = vmul.f32 %v643_v0, %v210_v2  ;;  %v250_v6 = vmul.f32 %v643_v0, %v211_v3  ;;  %v251_v7 = vmul.f32 %v643_v0, %v212_v4  ;;  %v213_v8 = vld [vmem:[%s648_s21 + $0x18] sm:$0xff]  ;;  %v214_v9 = vld [vmem:[%s648_s21 + $0x20] sm:$0xff]  ;;  %v215_v10 = vld [vmem:[%s648_s21 + $0x28] sm:$0xff] }
  0x13   : > { %v252_v11 = vmul.f32 %v643_v0, %v213_v8  ;;  %v253_v12 = vmul.f32 %v643_v0, %v214_v9  ;;  %v254_v13 = vmul.f32 %v643_v0, %v215_v10  ;;  %v216_v14 = vld [vmem:[%s648_s21 + $0x30] sm:$0xff]  ;;  %v217_v15 = vld [vmem:[%s648_s21 + $0x38] sm:$0xff]  ;;  %v218_v24 = vld [vmem:[%s648_s21 + $0x40] sm:$0xff] }
  0x14   : > { %v288_v16 = vadd.f32 %v653_v1, %v249_v5  ;;  %v289_v17 = vadd.f32 %v653_v1, %v250_v6  ;;  %v290_v18 = vadd.f32 %v653_v1, %v251_v7  ;;  %v255_v19 = vmul.f32 %v643_v0, %v216_v14  ;;  %v219_v32 = vld [vmem:[%s648_s21 + $0x48] sm:$0xff]  ;;  %v220_v33 = vld [vmem:[%s648_s21 + $0x50] sm:$0xff]  ;;  %v221_v34 = vld [vmem:[%s648_s21 + $0x58] sm:$0xff] }
  0x15   : > { %v291_v20 = vadd.f32 %v653_v1, %v252_v11  ;;  %v292_v21 = vadd.f32 %v653_v1, %v253_v12  ;;  %v293_v22 = vadd.f32 %v653_v1, %v254_v13  ;;  %v256_v23 = vmul.f32 %v643_v0, %v217_v15  ;;  %v222_v46 = vld [vmem:[%s648_s21 + $0x60] sm:$0xff]  ;;  %v223_v47 = vld [vmem:[%s648_s21 + $0x68] sm:$0xff]  ;;  %v224_v58 = vld [vmem:[%s648_s21 + $0x70] sm:$0xff] }
  0x16   : > { %vm320_vm1 = vcmp.gt.f32.partialorder %v288_v16, 0.0  ;;  %v352_v25 = vmul.f32 0.2, %v288_v16  ;;  %vm321_vm2 = vcmp.gt.f32.partialorder %v289_v17, 0.0  ;;  %v353_v26 = vmul.f32 0.2, %v289_v17 }
  0x17   : > { %vm322_vm3 = vcmp.gt.f32.partialorder %v290_v18, 0.0  ;;  %v354_v27 = vmul.f32 0.2, %v290_v18  ;;  %vm323_vm4 = vcmp.gt.f32.partialorder %v291_v20, 0.0  ;;  %v355_v28 = vmul.f32 0.2, %v291_v20 }
  0x18   : > { %v384_v29 = vsel %vm320_vm1, %v288_v16, %v352_v25  ;;  %v385_v30 = vsel %vm321_vm2, %v289_v17, %v353_v26  ;;  %vm324_vm5 = vcmp.gt.f32.partialorder %v292_v21, 0.0  ;;  %v356_v31 = vmul.f32 0.2, %v292_v21  ;;  %v225_v59 = vld [vmem:[%s648_s21 + $0x78] sm:$0xff]  ;;  %v226_v6 = vld [vmem:[%s648_s21 + $0x80] sm:$0xff]  ;;  %v227_v7 = vld [vmem:[%s648_s21 + $0x88] sm:$0xff] }
  0x19   : > { %417 = vst.msk [vmem:[%s681_s26] sm:$0xff] %vm416_vm0, %v384_v29  ;;  %418 = vst.msk [vmem:[%s681_s26 + $0x8] sm:$0xff] %vm416_vm0, %v385_v30  ;;  %v386_v35 = vsel %vm322_vm3, %v290_v18, %v354_v27  ;;  %v387_v36 = vsel %vm323_vm4, %v291_v20, %v355_v28  ;;  %vm325_vm6 = vcmp.gt.f32.partialorder %v293_v22, 0.0  ;;  %v357_v37 = vmul.f32 0.2, %v293_v22  ;;  %v228_v12 = vld [vmem:[%s648_s21 + $0x90] sm:$0xff] }
  0x1a   : > { %419 = vst.msk [vmem:[%s681_s26 + $0x10] sm:$0xff] %vm416_vm0, %v386_v35  ;;  %420 = vst.msk [vmem:[%s681_s26 + $0x18] sm:$0xff] %vm416_vm0, %v387_v36  ;;  %v388_v38 = vsel %vm324_vm5, %v292_v21, %v356_v31  ;;  %v294_v39 = vadd.f32 %v653_v1, %v255_v19  ;;  %v295_v40 = vadd.f32 %v653_v1, %v256_v23  ;;  %v229_v13 = vld [vmem:[%s648_s21 + $0x98] sm:$0xff]  ;;  %v231_v25 = vld [vmem:[%s648_s21 + $0xa8] sm:$0xff] }
  0x1b   : > { %v257_v41 = vmul.f32 %v643_v0, %v218_v24  ;;  %421 = vst.msk [vmem:[%s681_s26 + $0x20] sm:$0xff] %vm416_vm0, %v388_v38  ;;  %v389_v42 = vsel %vm325_vm6, %v293_v22, %v357_v37  ;;  %v258_v43 = vmul.f32 %v643_v0, %v219_v32  ;;  %v259_v44 = vmul.f32 %v643_v0, %v220_v33  ;;  %v230_v24 = vld [vmem:[%s648_s21 + $0xa0] sm:$0xff]  ;;  %v232_v36 = vld [vmem:[%s648_s21 + $0xb0] sm:$0xff]  ;;  %v233_v37 = vld [vmem:[%s648_s21 + $0xb8] sm:$0xff] }
  0x1c   : > { %v260_v45 = vmul.f32 %v643_v0, %v221_v34  ;;  %422 = vst.msk [vmem:[%s681_s26 + $0x28] sm:$0xff] %vm416_vm0, %v389_v42  ;;  %vm326_vm7 = vcmp.gt.f32.partialorder %v294_v39, 0.0  ;;  %v358_v48 = vmul.f32 0.2, %v294_v39  ;;  %vm327_vm8 = vcmp.gt.f32.partialorder %v295_v40, 0.0 }
  0x1d   : > { %v359_v49 = vmul.f32 0.2, %v295_v40  ;;  %v296_v50 = vadd.f32 %v653_v1, %v257_v41  ;;  %v297_v51 = vadd.f32 %v653_v1, %v258_v43  ;;  %v298_v52 = vadd.f32 %v653_v1, %v259_v44 }
  0x1e   : > { %v299_v53 = vadd.f32 %v653_v1, %v260_v45  ;;  %v390_v54 = vsel %vm326_vm7, %v294_v39, %v358_v48  ;;  %v261_v56 = vmul.f32 %v643_v0, %v222_v46  ;;  %v262_v57 = vmul.f32 %v643_v0, %v223_v47  ;;  %v234_v46 = vld [vmem:[%s648_s21 + $0xc0] sm:$0xff]  ;;  %v235_v47 = vld [vmem:[%s648_s21 + $0xc8] sm:$0xff] }
  0x1f   : > { %v391_v55 = vsel %vm327_vm8, %v295_v40, %v359_v49  ;;  %423 = vst.msk [vmem:[%s681_s26 + $0x30] sm:$0xff] %vm416_vm0, %v390_v54  ;;  %vm328_vm9 = vcmp.gt.f32.partialorder %v296_v50, 0.0  ;;  %v360_v60 = vmul.f32 0.2, %v296_v50  ;;  %vm329_vm10 = vcmp.gt.f32.partialorder %v297_v51, 0.0 }
  0x20   : > { %424 = vst.msk [vmem:[%s681_s26 + $0x38] sm:$0xff] %vm416_vm0, %v391_v55  ;;  %v361_v61 = vmul.f32 0.2, %v297_v51  ;;  %vm330_vm11 = vcmp.gt.f32.partialorder %v298_v52, 0.0  ;;  %v362_v62 = vmul.f32 0.2, %v298_v52  ;;  %v300_v4 = vadd.f32 %v653_v1, %v261_v56 }
  0x21   : > { %vm331_vm12 = vcmp.gt.f32.partialorder %v299_v53, 0.0  ;;  %v363_v63 = vmul.f32 0.2, %v299_v53  ;;  %v392_v2 = vsel %vm328_vm9, %v296_v50, %v360_v60  ;;  %v301_v5 = vadd.f32 %v653_v1, %v262_v57 }
  0x22   : > { %v393_v3 = vsel %vm329_vm10, %v297_v51, %v361_v61  ;;  %425 = vst.msk [vmem:[%s681_s26 + $0x40] sm:$0xff] %vm416_vm0, %v392_v2  ;;  %v394_v8 = vsel %vm330_vm11, %v298_v52, %v362_v62  ;;  %v263_v10 = vmul.f32 %v643_v0, %v224_v58  ;;  %v264_v11 = vmul.f32 %v643_v0, %v225_v59  ;;  %v236_v52 = vld [vmem:[%s648_s21 + $0xd0] sm:$0xff]  ;;  %v238_v2 = vld [vmem:[%s648_s21 + $0xe0] sm:$0xff] }
  0x23   : > { %426 = vst.msk [vmem:[%s681_s26 + $0x48] sm:$0xff] %vm416_vm0, %v393_v3  ;;  %v395_v9 = vsel %vm331_vm12, %v299_v53, %v363_v63  ;;  %427 = vst.msk [vmem:[%s681_s26 + $0x50] sm:$0xff] %vm416_vm0, %v394_v8  ;;  %vm332_vm13 = vcmp.gt.f32.partialorder %v300_v4, 0.0  ;;  %v364_v14 = vmul.f32 0.2, %v300_v4  ;;  %vm333_vm14 = vcmp.gt.f32.partialorder %v301_v5, 0.0 }
  0x24   : > { %428 = vst.msk [vmem:[%s681_s26 + $0x58] sm:$0xff] %vm416_vm0, %v395_v9  ;;  %v365_v15 = vmul.f32 0.2, %v301_v5  ;;  %v302_v16 = vadd.f32 %v653_v1, %v263_v10  ;;  %v303_v17 = vadd.f32 %v653_v1, %v264_v11  ;;  %v265_v18 = vmul.f32 %v643_v0, %v226_v6  ;;  %v237_v53 = vld [vmem:[%s648_s21 + $0xd8] sm:$0xff]  ;;  %v239_v3 = vld [vmem:[%s648_s21 + $0xe8] sm:$0xff] }
  0x25   : > { %v266_v19 = vmul.f32 %v643_v0, %v227_v7  ;;  %v396_v20 = vsel %vm332_vm13, %v300_v4, %v364_v14  ;;  %v267_v22 = vmul.f32 %v643_v0, %v228_v12  ;;  %v268_v23 = vmul.f32 %v643_v0, %v229_v13  ;;  %v240_v14 = vld [vmem:[%s648_s21 + $0xf0] sm:$0xff] }
  0x26   : > { %v397_v21 = vsel %vm333_vm14, %v301_v5, %v365_v15  ;;  %429 = vst.msk [vmem:[%s681_s26 + $0x60] sm:$0xff] %vm416_vm0, %v396_v20  ;;  %vm334_vm15 = vcmp.gt.f32.partialorder %v302_v16, 0.0  ;;  %v366_v26 = vmul.f32 0.2, %v302_v16  ;;  %vm335_vm1 = vcmp.gt.f32.partialorder %v303_v17, 0.0  ;;  %v241_v15 = vld [vmem:[%s648_s21 + $0xf8] sm:$0xff] }
  0x27   : > { %430 = vst.msk [vmem:[%s681_s26 + $0x68] sm:$0xff] %vm416_vm0, %v397_v21  ;;  %v367_v27 = vmul.f32 0.2, %v303_v17  ;;  %v304_v28 = vadd.f32 %v653_v1, %v265_v18  ;;  %v305_v29 = vadd.f32 %v653_v1, %v266_v19  ;;  %v306_v30 = vadd.f32 %v653_v1, %v267_v22 }
  0x28   : > { %v307_v31 = vadd.f32 %v653_v1, %v268_v23  ;;  %v398_v32 = vsel %vm334_vm15, %v302_v16, %v366_v26  ;;  %v269_v34 = vmul.f32 %v643_v0, %v230_v24  ;;  %v270_v35 = vmul.f32 %v643_v0, %v231_v25 }
  0x29   : > { %v399_v33 = vsel %vm335_vm1, %v303_v17, %v367_v27  ;;  %431 = vst.msk [vmem:[%s681_s26 + $0x70] sm:$0xff] %vm416_vm0, %v398_v32  ;;  %vm336_vm2 = vcmp.gt.f32.partialorder %v304_v28, 0.0  ;;  %v368_v38 = vmul.f32 0.2, %v304_v28  ;;  %vm337_vm3 = vcmp.gt.f32.partialorder %v305_v29, 0.0 }
  0x2a   : > { %432 = vst.msk [vmem:[%s681_s26 + $0x78] sm:$0xff] %vm416_vm0, %v399_v33  ;;  %v369_v39 = vmul.f32 0.2, %v305_v29  ;;  %vm338_vm4 = vcmp.gt.f32.partialorder %v306_v30, 0.0  ;;  %v370_v40 = vmul.f32 0.2, %v306_v30  ;;  %v308_v44 = vadd.f32 %v653_v1, %v269_v34 }
  0x2b   : > { %vm339_vm5 = vcmp.gt.f32.partialorder %v307_v31, 0.0  ;;  %v371_v41 = vmul.f32 0.2, %v307_v31  ;;  %v400_v42 = vsel %vm336_vm2, %v304_v28, %v368_v38  ;;  %v309_v45 = vadd.f32 %v653_v1, %v270_v35 }
  0x2c   : > { %v401_v43 = vsel %vm337_vm3, %v305_v29, %v369_v39  ;;  %433 = vst.msk [vmem:[%s681_s26 + $0x80] sm:$0xff] %vm416_vm0, %v400_v42  ;;  %v402_v48 = vsel %vm338_vm4, %v306_v30, %v370_v40  ;;  %v271_v50 = vmul.f32 %v643_v0, %v232_v36  ;;  %v272_v51 = vmul.f32 %v643_v0, %v233_v37 }
  0x2d   : > { %434 = vst.msk [vmem:[%s681_s26 + $0x88] sm:$0xff] %vm416_vm0, %v401_v43  ;;  %v403_v49 = vsel %vm339_vm5, %v307_v31, %v371_v41  ;;  %435 = vst.msk [vmem:[%s681_s26 + $0x90] sm:$0xff] %vm416_vm0, %v402_v48  ;;  %vm340_vm6 = vcmp.gt.f32.partialorder %v308_v44, 0.0  ;;  %v372_v54 = vmul.f32 0.2, %v308_v44  ;;  %vm341_vm7 = vcmp.gt.f32.partialorder %v309_v45, 0.0 }
  0x2e   : > { %436 = vst.msk [vmem:[%s681_s26 + $0x98] sm:$0xff] %vm416_vm0, %v403_v49  ;;  %v373_v55 = vmul.f32 0.2, %v309_v45  ;;  %v310_v56 = vadd.f32 %v653_v1, %v271_v50  ;;  %v311_v57 = vadd.f32 %v653_v1, %v272_v51  ;;  %v273_v58 = vmul.f32 %v643_v0, %v234_v46 }
  0x2f   : > { %v274_v59 = vmul.f32 %v643_v0, %v235_v47  ;;  %v404_v60 = vsel %vm340_vm6, %v308_v44, %v372_v54  ;;  %v275_v62 = vmul.f32 %v643_v0, %v236_v52  ;;  %v276_v63 = vmul.f32 %v643_v0, %v237_v53 }
  0x30   : > { %v405_v61 = vsel %vm341_vm7, %v309_v45, %v373_v55  ;;  %437 = vst.msk [vmem:[%s681_s26 + $0xa0] sm:$0xff] %vm416_vm0, %v404_v60  ;;  %vm342_vm8 = vcmp.gt.f32.partialorder %v310_v56, 0.0  ;;  %v374_v4 = vmul.f32 0.2, %v310_v56  ;;  %vm343_vm9 = vcmp.gt.f32.partialorder %v311_v57, 0.0 }
  0x31   : > { %438 = vst.msk [vmem:[%s681_s26 + $0xa8] sm:$0xff] %vm416_vm0, %v405_v61  ;;  %v375_v5 = vmul.f32 0.2, %v311_v57  ;;  %v312_v6 = vadd.f32 %v653_v1, %v273_v58  ;;  %v313_v7 = vadd.f32 %v653_v1, %v274_v59  ;;  %v314_v8 = vadd.f32 %v653_v1, %v275_v62 }
  0x32   : > { %v315_v9 = vadd.f32 %v653_v1, %v276_v63  ;;  %v406_v10 = vsel %vm342_vm8, %v310_v56, %v374_v4  ;;  %v277_v12 = vmul.f32 %v643_v0, %v238_v2  ;;  %v278_v13 = vmul.f32 %v643_v0, %v239_v3 }
  0x33   : > { %v407_v11 = vsel %vm343_vm9, %v311_v57, %v375_v5  ;;  %439 = vst.msk [vmem:[%s681_s26 + $0xb0] sm:$0xff] %vm416_vm0, %v406_v10  ;;  %vm344_vm10 = vcmp.gt.f32.partialorder %v312_v6, 0.0  ;;  %v376_v16 = vmul.f32 0.2, %v312_v6  ;;  %vm345_vm11 = vcmp.gt.f32.partialorder %v313_v7, 0.0 }
  0x34   : > { %440 = vst.msk [vmem:[%s681_s26 + $0xb8] sm:$0xff] %vm416_vm0, %v407_v11  ;;  %v377_v17 = vmul.f32 0.2, %v313_v7  ;;  %vm346_vm12 = vcmp.gt.f32.partialorder %v314_v8, 0.0  ;;  %v378_v18 = vmul.f32 0.2, %v314_v8  ;;  %v316_v22 = vadd.f32 %v653_v1, %v277_v12 }
  0x35   : > { %vm347_vm13 = vcmp.gt.f32.partialorder %v315_v9, 0.0  ;;  %v379_v19 = vmul.f32 0.2, %v315_v9  ;;  %v408_v20 = vsel %vm344_vm10, %v312_v6, %v376_v16  ;;  %v317_v23 = vadd.f32 %v653_v1, %v278_v13 }
  0x36   : > { %v409_v21 = vsel %vm345_vm11, %v313_v7, %v377_v17  ;;  %441 = vst.msk [vmem:[%s681_s26 + $0xc0] sm:$0xff] %vm416_vm0, %v408_v20  ;;  %v410_v24 = vsel %vm346_vm12, %v314_v8, %v378_v18  ;;  %v279_v26 = vmul.f32 %v643_v0, %v240_v14  ;;  %v280_v27 = vmul.f32 %v643_v0, %v241_v15 }
  0x37   : > { %442 = vst.msk [vmem:[%s681_s26 + $0xc8] sm:$0xff] %vm416_vm0, %v409_v21  ;;  %v411_v25 = vsel %vm347_vm13, %v315_v9, %v379_v19  ;;  %443 = vst.msk [vmem:[%s681_s26 + $0xd0] sm:$0xff] %vm416_vm0, %v410_v24  ;;  %vm348_vm14 = vcmp.gt.f32.partialorder %v316_v22, 0.0  ;;  %v380_v28 = vmul.f32 0.2, %v316_v22  ;;  %vm349_vm15 = vcmp.gt.f32.partialorder %v317_v23, 0.0 }
  0x38   : > { %444 = vst.msk [vmem:[%s681_s26 + $0xd8] sm:$0xff] %vm416_vm0, %v411_v25  ;;  %v381_v29 = vmul.f32 0.2, %v317_v23  ;;  %v318_v30 = vadd.f32 %v653_v1, %v279_v26  ;;  %v319_v31 = vadd.f32 %v653_v1, %v280_v27 }
  0x39   : > { %v412_v32 = vsel %vm348_vm14, %v316_v22, %v380_v28 }
  0x3a   : > { %v413_v33 = vsel %vm349_vm15, %v317_v23, %v381_v29  ;;  %445 = vst.msk [vmem:[%s681_s26 + $0xe0] sm:$0xff] %vm416_vm0, %v412_v32  ;;  %vm350_vm1 = vcmp.gt.f32.partialorder %v318_v30, 0.0  ;;  %v382_v0 = vmul.f32 0.2, %v318_v30  ;;  %vm351_vm2 = vcmp.gt.f32.partialorder %v319_v31, 0.0 }
  0x3b   : > { %446 = vst.msk [vmem:[%s681_s26 + $0xe8] sm:$0xff] %vm416_vm0, %v413_v33  ;;  %v383_v34 = vmul.f32 0.2, %v319_v31 }
  0x3c   : > { %v414_v35 = vsel %vm350_vm1, %v318_v30, %v382_v0 }
  0x3d   : > { %v415_v36 = vsel %vm351_vm2, %v319_v31, %v383_v34  ;;  %447 = vst.msk [vmem:[%s681_s26 + $0xf0] sm:$0xff] %vm416_vm0, %v414_v35 }
  0x3e   : > { %448 = vst.msk [vmem:[%s681_s26 + $0xf8] sm:$0xff] %vm416_vm0, %v415_v36 }
  0x3f PF: > { %s13_s14 = sadd.s32 1, %s597_s14   ;;  %s833_s12 = smov %s593_s13 }
  0x40   : > { %p10_p5 = scmp.ge.s32.totalorder %s13_s14, 4   ;;  %s834_s13 = smov %s836_s15 }
  0x42   :  { %12 = sbr.rel (!%p10_p5) target bundleno = 2 (0x2), region = 62 }

// kernel: vgg_layer_forward.2
= control target key start
LH: loop header
LB: loop body
LE: loop exit
PB: predicated region body
PF: predicated region fallthrough
CT: control target
= control target key end

     0   :  { %s5452_s18 = smov 0   ;;  %s5454_s19 = smov 0   ;;  %s6975_s0 = inlined_call_operand.vmem [shape: f32[2,320,8], index: 0, kind: input, shape index: {}]   ;;  %s6976_s1 = inlined_call_operand.vmem [shape: bf16[3,3,8,16], index: 1, kind: input, shape index: {}]   ;;  %s6977_s2 = inlined_call_operand.vmem [shape: f32[1,16], index: 2, kind: input, shape index: {}]   ;;  %s6978_s3 = inlined_call_operand.vmem [shape: f32[2,256,16], index: 3, kind: output, shape index: {0}]   ;;  %s6979_s4 = inlined_call_operand.vmem [shape: f32[2,1,1,16], index: 4, kind: output, shape index: {1}]   ;;  %s6980_s5 = inlined_call_operand.vmem [shape: f32[2,1,1,16], index: 5, kind: output, shape index: {2}]  }
   0x1   :  { %s5456_s20 = smov 0  }
   0x2 LB: > { %s28_s21 = sadd.s32 1, %s5414_s19  ;;  %p4706_p0 = scmp.ge.s32.totalorder %s5418_s20, 1  ;;  %s5418_s20 = sphi %s5456_s20, %s16_s20   ;;  %s5414_s19 = sphi %s5454_s19, %s7084_s19   ;;  %s5410_s18 = sphi %s5452_s18, %s7083_s18  }
   0x3   : > { %p30_p1 = scmp.ge.s32.totalorder %s28_s21, 2  ;;  %p210_p2 = scmp.lt.s32.totalorder %s5418_s20, 3 }
   0x5   : > { %s7086_s21 = smov (%p30_p1, %s28_s21), 0  ;;  %p211_p3 = pnand %p4706_p0, %p210_p2 }
   0x7   : > { %214 = sbr.rel (%p211_p3) target bundleno = 571 (0x23b), region = 32 }
   0xe   : > { %v1052_v0 = vld [vmem:[%s6976_s1] sm:$0xf]  ;;  %vm1102_vm0 = vcmask 1043456   ;;  %p254_p4 = scmp.lt.s32.totalorder %s5410_s18, 1  ;;  %v282_v1 = vlaneseq  ;;  %v4758_v3 = vld [vmem:[%s6976_s1 + $0x4] sm:$0xf] }
   0xf   : > { %5360 = vmatprep.subr.msk.bf16.mxu1 %vm1102_vm0, %v1052_v0  ;;  %v1104_v2 = vsel %vm1102_vm0, %v1052_v0, 0  ;;  %5359 = vmatprep.subr.msk.bf16.mxu0 %vm1102_vm0, %v1052_v0  ;;  %v4775_v4 = vld [vmem:[%s6976_s1 + $0x8] sm:$0xf]  ;;  %vm1053_vm1 = vcmask 64512   ;;  %v5488_v6 = vsel %vm1102_vm0, %v4758_v3, 0  ;;  %v6981_v22 = vmov 0.0  }
  0x10   : > { %5358 = vmatpush3.bf16.msra.mxu1 %v1104_v2  ;;  %s7088_s18 = smov (!%p254_p4, %s5410_s18), 1  ;;  %v5484_v5 = vshrl.u32 %v282_v1, 7  ;;  %5052 = vmatpush3.bf16.msra.mxu0 %v1104_v2  ;;  %v5492_v7 = vsel %vm1102_vm0, %v4775_v4, 0  ;;  %v6985_v28 = vmov 1.0   ;;  %v5580_v1 = vld [vmem:[%s6976_s1 + $0xc] sm:$0xf] }
  0x11   : > { %5361 = vmatprep.subr.msk.bf16.mxu1 %vm1102_vm0, %v4758_v3  ;;  %5362 = vmatprep.subr.msk.bf16.mxu0 %vm1102_vm0, %v4775_v4  ;;  %s5369_s28 = smul.u32 320, %s7088_s18  ;;  %s4897_s23 = sshll.u32 %s7088_s18, 8 }
  0x12   : > { %v299_v8 = vadd.s32 128, %v5484_v5  ;;  %v301_v9 = vadd.s32 144, %v5484_v5  ;;  %v319_v10 = vand.u32 15, %v5484_v5  ;;  %v285_v11 = vadd.s32 16, %v5484_v5  ;;  %s280_s9 = scalar_lea.vmem %s6980_s5, %s7088_s18 }
  0x13   : > { %v303_v12 = vadd.s32 160, %v5484_v5  ;;  %v305_v13 = vadd.s32 176, %v5484_v5  ;;  %v5502_v14 = vadd.s32 32, %v5484_v5  ;;  %v5505_v15 = vadd.s32 48, %v5484_v5  ;;  %s5510_s6 = scalar_lea.vmem %s6975_s0, %s5369_s28  ;;  %s6682_s28 = scalar_lea.vmem %s6978_s3, %s4897_s23 }
  0x14   : > { %v431_v16 = vand.u32 15, %v299_v8  ;;  %v445_v17 = vand.u32 15, %v301_v9  ;;  %vm699_vm2 = vcmp.ne.s32.totalorder %v319_v10, 0  ;;  %v333_v18 = vand.u32 15, %v285_v11  ;;  %v972_v19 = vld [vmem:[%s5510_s6 + $0x8f] sm:$0xff]  ;;  %v973_v20 = vld [vmem:[%s5510_s6 + $0x97] sm:$0xff] }
  0x15   : > { %v974_v21 = vld [vmem:[%s5510_s6 + $0x9f] sm:$0xff]  ;;  %v4710_v23 = vsel %vm699_vm2, 1.0, %v6981_v22  ;;  %v459_v24 = vand.u32 15, %v303_v12  ;;  %v473_v25 = vand.u32 15, %v305_v13  ;;  %v5516_v26 = vpack.c.bf16 %v973_v20, %v972_v19  ;;  %v975_v27 = vld [vmem:[%s5510_s6 + $0xa7] sm:$0xff]  ;;  %v956_v30 = vld [vmem:[%s5510_s6 + $0xf] sm:$0xff] }
  0x16   : > { %vm715_vm3 = vcmp.ne.s32.totalorder %v431_v16, 0  ;;  %vm717_vm4 = vcmp.ne.s32.totalorder %v445_v17, 0  ;;  %v5520_v29 = vpack.c.bf16 %v6985_v28, %v4710_v23  ;;  %v957_v31 = vld [vmem:[%s5510_s6 + $0x17] sm:$0xff]  ;;  %v5526_v34 = vpack.c.bf16 %v975_v27, %v974_v21  ;;  %v958_v36 = vld [vmem:[%s5510_s6 + $0x1f] sm:$0xff]  ;;  %v959_v37 = vld [vmem:[%s5510_s6 + $0x27] sm:$0xff] }
  0x17   : > { %v4718_v32 = vsel %vm715_vm3, 1.0, %v6981_v22  ;;  %v4719_v33 = vsel %vm717_vm4, 1.0, %v6981_v22  ;;  %v988_v35 = vpack.c.bf16 %v957_v31, %v956_v30  ;;  %v2065_v38 = vld [vmem:[%s5510_s6 + $0x2f] sm:$0xff]  ;;  %vm701_vm5 = vcmp.ne.s32.totalorder %v333_v18, 0  ;;  %v2066_v42 = vld [vmem:[%s5510_s6 + $0x37] sm:$0xff]  ;;  %v3171_v43 = vld [vmem:[%s5510_s6 + $0x3f] sm:$0xff] }
  0x18   : > { %v5532_v39 = vpack.c.bf16 %v6985_v28, %v4718_v32  ;;  %v5535_v40 = vpack.c.bf16 %v6985_v28, %v4719_v33  ;;  %v5537_v41 = vpack.c.bf16 %v959_v37, %v958_v36  ;;  %v3172_v44 = vld [vmem:[%s5510_s6 + $0x47] sm:$0xff]  ;;  %v4711_v46 = vsel %vm701_vm5, 1.0, %v6981_v22  ;;  %v976_v49 = vld [vmem:[%s5510_s6 + $0xaf] sm:$0xff]  ;;  %v977_v50 = vld [vmem:[%s5510_s6 + $0xb7] sm:$0xff] }
  0x19   : > { %v1004_v45 = vmul.bf16 %v988_v35, %v5520_v29  ;;  %v5544_v47 = vpack.c.bf16 %v2066_v42, %v2065_v38  ;;  %v5546_v48 = vpack.c.bf16 %v3172_v44, %v3171_v43  ;;  %v978_v51 = vld [vmem:[%s5510_s6 + $0xbf] sm:$0xff]  ;;  %v5556_v54 = vpack.c.bf16 %v6985_v28, %v4711_v46  ;;  %v979_v55 = vld [vmem:[%s5510_s6 + $0xc7] sm:$0xff]  ;;  %v980_v63 = vld [vmem:[%s5510_s6 + $0xcf] sm:$0xff] }
  0x1a   : > { %v1012_v52 = vmul.bf16 %v5516_v26, %v5532_v39  ;;  %v1013_v53 = vmul.bf16 %v5526_v34, %v5535_v40  ;;  %vm719_vm6 = vcmp.ne.s32.totalorder %v459_v24, 0  ;;  %v5561_v57 = vpack.c.bf16 %v977_v50, %v976_v49  ;;  %v981_v0 = vld [vmem:[%s5510_s6 + $0xd7] sm:$0xff]  ;;  %v5590_v9 = vld [vmem:[%s6976_s1 + $0x10] sm:$0xf]  ;;  %v982_v19 = vld [vmem:[%s5510_s6 + $0xdf] sm:$0xff] }
  0x1b   : > { %5053 = vmatprep.mubr.msk.bf16.mxu0 %vm1053_vm1, %v1004_v45  ;;  %v4720_v56 = vsel %vm719_vm6, 1.0, %v6981_v22  ;;  %vm721_vm7 = vcmp.ne.s32.totalorder %v473_v25, 0  ;;  %v5563_v58 = vpack.c.bf16 %v979_v55, %v978_v51  ;;  %v1005_v59 = vmul.bf16 %v5537_v41, %v5556_v54  ;;  %v983_v20 = vld [vmem:[%s5510_s6 + $0xe7] sm:$0xff]  ;;  %v964_v24 = vld [vmem:[%s5510_s6 + $0x4f] sm:$0xff]  ;;  %v965_v33 = vld [vmem:[%s5510_s6 + $0x57] sm:$0xff] }
  0x1c   : > { %5069 = vmatprep.mubr.msk.bf16.mxu1 %vm1053_vm1, %v1012_v52  ;;  %v5573_v62 = vpack.c.bf16 %v6985_v28, %v4720_v56  ;;  %v4721_v2 = vsel %vm721_vm7, 1.0, %v6981_v22  ;;  %v347_v3 = vand.u32 15, %v5502_v14  ;;  %v361_v4 = vand.u32 15, %v5505_v15  ;;  %v966_v35 = vld [vmem:[%s5510_s6 + $0x5f] sm:$0xff]  ;;  %v967_v36 = vld [vmem:[%s5510_s6 + $0x67] sm:$0xff]  ;;  %v984_v46 = vld [vmem:[%s5510_s6 + $0xef] sm:$0xff] }
  0x1d   : > { %5070 = vmatmul.mubr.msk.bf16.vlgmr.msra.gmra.mrb[0].mxu1 %vm1053_vm1, %v1013_v53  ;;  %v307_v8 = vadd.s32 192, %v5484_v5  ;;  %5054 = vmatmul.mubr.msk.bf16.vlgmr.msra.gmra.mrb[0].mxu0 %vm1053_vm1, %v1005_v59  ;;  %v5597_v11 = vpack.c.bf16 %v6985_v28, %v4721_v2  ;;  %v309_v12 = vadd.s32 208, %v5484_v5  ;;  %v5601_v14 = vpack.c.bf16 %v981_v0, %v980_v63  ;;  %v985_v49 = vld [vmem:[%s5510_s6 + $0xf7] sm:$0xff]  ;;  %v1341_v60 = vld [vmem:[%s5510_s6 + $0x60] sm:$0xff] }
  0x1e   : > { %5086 = vmatpush3.bf16.msra.mxu1 %v5488_v6  ;;  %v1014_v10 = vmul.bf16 %v5561_v57, %v5573_v62  ;;  %5120 = vmatpush3.bf16.msra.mxu0 %v5492_v7  ;;  %vm703_vm8 = vcmp.ne.s32.totalorder %v347_v3, 0  ;;  %vm705_vm9 = vcmp.ne.s32.totalorder %v361_v4, 0  ;;  %v291_v21 = vadd.s32 64, %v5484_v5  ;;  %v986_v3 = vld [vmem:[%s5510_s6 + $0xff] sm:$0xff] }
  0x1f   : > { %v487_v13 = vand.u32 15, %v307_v8  ;;  %5363 = vmatprep.subr.msk.bf16.mxu1 %vm1102_vm0, %v5580_v1  ;;  %v1015_v6 = vmul.bf16 %v5563_v58, %v5597_v11  ;;  %v4712_v15 = vsel %vm703_vm8, 1.0, %v6981_v22  ;;  %v4713_v16 = vsel %vm705_vm9, 1.0, %v6981_v22  ;;  %5364 = vmatprep.subr.msk.bf16.mxu0 %vm1102_vm0, %v5590_v9 }
  0x20   : > { %5073 = vmatprep.mubr.msk.bf16.mxu1 %vm1053_vm1, %v1014_v10  ;;  %v501_v7 = vand.u32 15, %v309_v12  ;;  %v5613_v17 = vpack.c.bf16 %v6985_v28, %v4712_v15  ;;  %v5616_v18 = vpack.c.bf16 %v6985_v28, %v4713_v16  ;;  %v293_v25 = vadd.s32 80, %v5484_v5  ;;  %v987_v10 = vld [vmem:[%s5510_s6 + $0x107] sm:$0xff]  ;;  %v968_v12 = vld [vmem:[%s5510_s6 + $0x6f] sm:$0xff] }
  0x21   : > { %vm723_vm10 = vcmp.ne.s32.totalorder %v487_v13, 0  ;;  %v5635_v37 = vpack.c.bf16 %v983_v20, %v982_v19  ;;  %v375_v38 = vand.u32 15, %v291_v21  ;;  %v311_v45 = vadd.s32 224, %v5484_v5  ;;  %v969_v13 = vld [vmem:[%s5510_s6 + $0x77] sm:$0xff] }
  0x22   : > { %v4722_v23 = vsel %vm723_vm10, 1.0, %v6981_v22  ;;  %vm725_vm11 = vcmp.ne.s32.totalorder %v501_v7, 0  ;;  %v1006_v27 = vmul.bf16 %v5544_v47, %v5613_v17  ;;  %v1007_v30 = vmul.bf16 %v5546_v48, %v5616_v18 }
  0x23   : > { %v5629_v31 = vpack.c.bf16 %v6985_v28, %v4722_v23  ;;  %v4723_v32 = vsel %vm725_vm11, 1.0, %v6981_v22  ;;  %v389_v42 = vand.u32 15, %v293_v25  ;;  %v313_v50 = vadd.s32 240, %v5484_v5  ;;  %v971_v25 = vld [vmem:[%s5510_s6 + $0x87] sm:$0xff] }
  0x24   : > { %5057 = vmatprep.mubr.msk.bf16.mxu0 %vm1053_vm1, %v1006_v27  ;;  %v5642_v44 = vpack.c.bf16 %v6985_v28, %v4723_v32  ;;  %vm707_vm12 = vcmp.ne.s32.totalorder %v375_v38, 0  ;;  %v5649_v51 = vpack.c.bf16 %v965_v33, %v964_v24  ;;  %v5651_v52 = vpack.c.bf16 %v967_v36, %v966_v35  ;;  %v970_v24 = vld [vmem:[%s5510_s6 + $0x7f] sm:$0xff]  ;;  %v1689_v36 = vld [vmem:[%s5510_s6 + $0x11] sm:$0xff] }
  0x25   : > { %5074 = vmatmul.mubr.msk.bf16.gmra.mrb[4].mxu1 %vm1053_vm1, %v1015_v6  ;;  %v1016_v43 = vmul.bf16 %v5601_v14, %v5629_v31  ;;  %5058 = vmatmul.mubr.msk.bf16.gmra.mrb[4].mxu0 %vm1053_vm1, %v1007_v30  ;;  %vm709_vm13 = vcmp.ne.s32.totalorder %v389_v42, 0  ;;  %v4714_v53 = vsel %vm707_vm12, 1.0, %v6981_v22  ;;  %v515_v56 = vand.u32 15, %v311_v45  ;;  %v1690_v38 = vld [vmem:[%s5510_s6 + $0x19] sm:$0xff] }
  0x26   : > { %v4715_v55 = vsel %vm709_vm13, 1.0, %v6981_v22  ;;  %v529_v59 = vand.u32 15, %v313_v50  ;;  %v5657_v63 = vpack.c.bf16 %v6985_v28, %v4714_v53  ;;  %v5662_v2 = vpack.c.bf16 %v985_v49, %v984_v46  ;;  %v1331_v53 = vld [vmem:[%s5510_s6 + $0x10] sm:$0xff] }
  0x27   : > { %5077 = vmatprep.mubr.msk.bf16.mxu1 %vm1053_vm1, %v1016_v43  ;;  %v5660_v0 = vpack.c.bf16 %v6985_v28, %v4715_v55  ;;  %v295_v4 = vadd.s32 96, %v5484_v5  ;;  %v1017_v8 = vmul.bf16 %v5635_v37, %v5642_v44  ;;  %vm727_vm14 = vcmp.ne.s32.totalorder %v515_v56, 0  ;;  %v1332_v55 = vld [vmem:[%s5510_s6 + $0x18] sm:$0xff] }
  0x28   : > { %vm729_vm15 = vcmp.ne.s32.totalorder %v529_v59, 0  ;;  %v297_v6 = vadd.s32 112, %v5484_v5  ;;  %v1008_v15 = vmul.bf16 %v5649_v51, %v5657_v63  ;;  %v4724_v7 = vsel %vm727_vm14, 1.0, %v6981_v22 }
  0x29   : > { %v1009_v16 = vmul.bf16 %v5651_v52, %v5660_v0  ;;  %v4725_v19 = vsel %vm729_vm15, 1.0, %v6981_v22  ;;  %v5679_v20 = vpack.c.bf16 %v6985_v28, %v4724_v7  ;;  %v403_v21 = vand.u32 15, %v295_v4 }
  0x2a   : > { %v417_v23 = vand.u32 15, %v297_v6  ;;  %5061 = vmatprep.mubr.msk.bf16.mxu0 %vm1053_vm1, %v1008_v15  ;;  %v5684_v27 = vpack.c.bf16 %v987_v10, %v986_v3  ;;  %v5686_v30 = vpack.c.bf16 %v969_v13, %v968_v12  ;;  %v284_v32 = vadd.s32 8, %v5484_v5 }
  0x2b   : > { %v1018_v33 = vmul.bf16 %v5662_v2, %v5679_v20  ;;  %v5693_v35 = vpack.c.bf16 %v6985_v28, %v4725_v19  ;;  %vm711_vm2 = vcmp.ne.s32.totalorder %v403_v21, 0  ;;  %v5700_v45 = vpack.c.bf16 %v971_v25, %v970_v24  ;;  %v1692_v24 = vld [vmem:[%s5510_s6 + $0x29] sm:$0xff] }
  0x2c   : > { %7020 = vst [vmem:[#allocation3_spill] sm:$0xff] %v5684_v27  ;;  %vm713_vm3 = vcmp.ne.s32.totalorder %v417_v23, 0  ;;  %v4716_v42 = vsel %vm711_vm2, 1.0, %v6981_v22  ;;  %v326_v46 = vand.u32 15, %v284_v32  ;;  %v286_v56 = vadd.s32 24, %v5484_v5  ;;  %v1691_v23 = vld [vmem:[%s5510_s6 + $0x21] sm:$0xff] }
  0x2d   : > { %5078 = vmatmul.mubr.msk.bf16.gmra.mrb[8].mxu1 %vm1053_vm1, %v1017_v8  ;;  %7021 = vst [vmem:[#allocation4_spill] sm:$0xff] %v5693_v35  ;;  %5062 = vmatmul.mubr.msk.bf16.gmra.mrb[8].mxu0 %vm1053_vm1, %v1009_v16  ;;  %v4717_v43 = vsel %vm713_vm3, 1.0, %v6981_v22  ;;  %v5704_v49 = vpack.c.bf16 %v6985_v28, %v4716_v42  ;;  %v1721_v59 = vpack.c.bf16 %v1690_v38, %v1689_v36  ;;  %v288_v3 = vadd.s32 40, %v5484_v5  ;;  %v1694_v36 = vld [vmem:[%s5510_s6 + $0x39] sm:$0xff] }
  0x2e   : > { %5081 = vmatprep.mubr.msk.bf16.mxu1 %vm1053_vm1, %v1018_v33  ;;  %v5707_v50 = vpack.c.bf16 %v6985_v28, %v4717_v43  ;;  %vm812_vm4 = vcmp.ne.s32.totalorder %v326_v46, 15  ;;  %v1019_v4 = vmul.bf16 %v5684_v27, %v5693_v35  ;;  %v340_v12 = vand.u32 15, %v286_v56  ;;  %v1693_v33 = vld [vmem:[%s5510_s6 + $0x31] sm:$0xff]  ;;  %v1333_v42 = vld [vmem:[%s5510_s6 + $0x20] sm:$0xff]  ;;  %v1334_v43 = vld [vmem:[%s5510_s6 + $0x28] sm:$0xff] }
  0x2f   : > { %v1010_v8 = vmul.bf16 %v5686_v30, %v5704_v49  ;;  %v4726_v10 = vsel %vm812_vm4, 1.0, %v6981_v22  ;;  %v1363_v6 = vpack.c.bf16 %v1332_v55, %v1331_v53  ;;  %v354_v16 = vand.u32 15, %v288_v3  ;;  %v1335_v53 = vld [vmem:[%s5510_s6 + $0x30] sm:$0xff]  ;;  %v1336_v55 = vld [vmem:[%s5510_s6 + $0x38] sm:$0xff] }
  0x30   : > { %v1011_v13 = vmul.bf16 %v5700_v45, %v5707_v50  ;;  %v5721_v15 = vpack.c.bf16 %v4726_v10, %v6985_v28  ;;  %vm814_vm5 = vcmp.ne.s32.totalorder %v340_v12, 15  ;;  %v290_v7 = vadd.s32 56, %v5484_v5  ;;  %v1716_v27 = vld [vmem:[%s5510_s6 + $0xe9] sm:$0xff] }
  0x31   : > { %5065 = vmatprep.mubr.msk.bf16.mxu0 %vm1053_vm1, %v1010_v8  ;;  %v4727_v21 = vsel %vm814_vm5, 1.0, %v6981_v22  ;;  %vm816_vm6 = vcmp.ne.s32.totalorder %v354_v16, 15  ;;  %v292_v25 = vadd.s32 72, %v5484_v5  ;;  %v294_v3 = vadd.s32 88, %v5484_v5 }
  0x32   : > { %7022 = vst [vmem:[#allocation5_spill] sm:$0xff] %v5721_v15  ;;  %v1737_v19 = vmul.bf16 %v1721_v59, %v5721_v15  ;;  %v4728_v32 = vsel %vm816_vm6, 1.0, %v6981_v22  ;;  %v368_v38 = vand.u32 15, %v290_v7  ;;  %v5742_v56 = vpack.c.bf16 %v4727_v21, %v6985_v28  ;;  %v1696_v21 = vld [vmem:[%s5510_s6 + $0x49] sm:$0xff] }
  0x33   : > { %v382_v46 = vand.u32 15, %v292_v25  ;;  %v5744_v59 = vpack.c.bf16 %v1692_v24, %v1691_v23  ;;  %v5750_v8 = vpack.c.bf16 %v1694_v36, %v1693_v33  ;;  %v5752_v10 = vpack.c.bf16 %v1334_v43, %v1333_v42  ;;  %v5767_v24 = vld [vmem:[%s6976_s1 + $0x14] sm:$0xf]  ;;  %v1698_v33 = vld [vmem:[%s5510_s6 + $0x59] sm:$0xff]  ;;  %v1338_v42 = vld [vmem:[%s5510_s6 + $0x48] sm:$0xff] }
  0x34   : > { %7023 = vst [vmem:[#allocation6_spill] sm:$0xff] %v5742_v56  ;;  %vm818_vm7 = vcmp.ne.s32.totalorder %v368_v38, 15  ;;  %v296_v12 = vadd.s32 104, %v5484_v5  ;;  %v396_v23 = vand.u32 15, %v294_v3  ;;  %v5777_v36 = vld [vmem:[%s6976_s1 + $0x18] sm:$0xf] }
  0x35   : > { %5082 = vmatmul.mubr.msk.bf16.gmra.mrb[12].mxu1 %vm1053_vm1, %v1019_v4  ;;  %5066 = vmatmul.mubr.msk.bf16.gmra.mrb[12].mxu0 %vm1053_vm1, %v1011_v13  ;;  %7024 = vst [vmem:[#allocation7_spill] sm:$0xff] %v5744_v59  ;;  %v5748_v4 = vpack.c.bf16 %v4728_v32, %v6985_v28  ;;  %7026 = vst [vmem:[#allocation9_spill] sm:$0xff] %v5750_v8  ;;  %vm820_vm8 = vcmp.ne.s32.totalorder %v382_v46, 15  ;;  %v2210_v13 = vsel %vm1102_vm0, %v5580_v1, 0  ;;  %v4729_v7 = vsel %vm818_vm7, 1.0, %v6981_v22  ;;  %v1697_v32 = vld [vmem:[%s5510_s6 + $0x51] sm:$0xff] }
  0x36   : > { %5087 = vmatprep.mubr.msk.bf16.mxu1 %vm1053_vm1, %v1363_v6  ;;  %5121 = vmatprep.mubr.msk.bf16.mxu0 %vm1053_vm1, %v1737_v19  ;;  %v5757_v6 = vpack.c.bf16 %v1336_v55, %v1335_v53  ;;  %v1738_v16 = vmul.bf16 %v5744_v59, %v5742_v56  ;;  %v1695_v19 = vld [vmem:[%s5510_s6 + $0x41] sm:$0xff]  ;;  %v4730_v25 = vsel %vm820_vm8, 1.0, %v6981_v22  ;;  %v2568_v43 = vsel %vm1102_vm0, %v5590_v9, 0  ;;  %v1339_v46 = vld [vmem:[%s5510_s6 + $0x50] sm:$0xff]  ;;  %v1340_v55 = vld [vmem:[%s5510_s6 + $0x58] sm:$0xff] }
  0x37   : > { %7025 = vst [vmem:[#allocation8_spill] sm:$0xff] %v5748_v4  ;;  %v1739_v1 = vmul.bf16 %v5750_v8, %v5748_v4  ;;  %v1337_v38 = vld [vmem:[%s5510_s6 + $0x40] sm:$0xff]  ;;  %v410_v53 = vand.u32 15, %v296_v12  ;;  %v5790_v3 = vpack.c.bf16 %v4729_v7, %v6985_v28  ;;  %v5792_v61 = vpack.c.bf16 %v1696_v21, %v1695_v19  ;;  %v1342_v22 = vld [vmem:[%s5510_s6 + $0x68] sm:$0xff] }
  0x38   : > { %v302_v4 = vadd.s32 152, %v5484_v5  ;;  %v5799_v9 = vpack.c.bf16 %v4730_v25, %v6985_v28  ;;  %v5801_v12 = vpack.c.bf16 %v1698_v33, %v1697_v32  ;;  %vm5803_vm9 = vcmp.ne.s32.totalorder %v396_v23, 15  ;;  %v1702_v8 = vld [vmem:[%s5510_s6 + $0x79] sm:$0xff] }
  0x39   : > { %7027 = vst [vmem:[#allocation10_spill] sm:$0xff] %v5790_v3  ;;  %7028 = vst [vmem:[#allocation11_spill] sm:$0xff] %v5792_v61  ;;  %v298_v7 = vadd.s32 120, %v5484_v5  ;;  %v5810_v19 = vpack.c.bf16 %v1338_v42, %v1337_v38  ;;  %v304_v21 = vadd.s32 168, %v5484_v5  ;;  %v5814_v25 = vpack.c.bf16 %v1340_v55, %v1339_v46  ;;  %v1344_v38 = vld [vmem:[%s5510_s6 + $0x78] sm:$0xff]  ;;  %v1700_v46 = vld [vmem:[%s5510_s6 + $0x69] sm:$0xff] }
  0x3a   : > { %7029 = vst [vmem:[#allocation12_spill] sm:$0xff] %v5799_v9  ;;  %7030 = vst [vmem:[#allocation13_spill] sm:$0xff] %v5801_v12  ;;  %v5816_v23 = vpack.c.bf16 %v1342_v22, %v1341_v60  ;;  %vm824_vm10 = vcmp.ne.s32.totalorder %v410_v53, 15  ;;  %v300_v32 = vadd.s32 136, %v5484_v5  ;;  %v1740_v33 = vmul.bf16 %v5792_v61, %v5790_v3  ;;  %v1701_v61 = vld [vmem:[%s5510_s6 + $0x71] sm:$0xff] }
  0x3b   : > { %v466_v22 = vand.u32 15, %v304_v21  ;;  %v1741_v60 = vmul.bf16 %v5801_v12, %v5799_v9  ;;  %v424_v53 = vand.u32 15, %v298_v7  ;;  %v306_v28 = vadd.s32 184, %v5484_v5 }
  0x3c   : > { %v7034_v56 = vmov 1.0   ;;  %v438_v7 = vand.u32 15, %v300_v32  ;;  %v5860_v32 = vpack.c.bf16 %v1702_v8, %v1701_v61  ;;  %vm923_vm6 = vcmask 130048  }
  0x3d   : > { %5088 = vmatmul.mubr.msk.bf16.vlgmr.msra.gmra.mrb[16].mxu1 %vm1053_vm1, %v5752_v10  ;;  %5122 = vmatmul.mubr.msk.bf16.vlgmr.msra.gmra.mrb[16].mxu0 %vm1053_vm1, %v1738_v16  ;;  %v452_v16 = vand.u32 15, %v302_v4  ;;  %v7033_v4 = vmov 0.0   ;;  %vm832_vm12 = vcmp.ne.s32.totalorder %v466_v22, 15  ;;  %v480_v9 = vand.u32 15, %v306_v28 }
  0x3e   : > { %5154 = vmatpush3.bf16.msra.mxu1 %v2210_v13  ;;  %5091 = vmatprep.mubr.msk.bf16.mxu1 %vm1053_vm1, %v5757_v6  ;;  %v4731_v42 = vsel %vm5803_vm9, 1.0, %v7033_v4  ;;  %v4732_v3 = vsel %vm824_vm10, 1.0, %v7033_v4  ;;  %v308_v13 = vadd.s32 200, %v5484_v5  ;;  %v4736_v21 = vsel %vm832_vm12, 1.0, %v7033_v4  ;;  %7040 = vst [vmem:[#allocation19_spill] sm:$0xff] %v5860_v32  ;;  %942 = vst.msk [vmem:[#allocation2 + $0x90] sm:$0xff] %vm923_vm6, %v7033_v4 }
  0x3f   : > { %5365 = vmatprep.subr.msk.bf16.mxu1 %vm1102_vm0, %v5767_v24  ;;  %5188 = vmatpush3.bf16.msra.mxu0 %v2568_v43  ;;  %vm830_vm11 = vcmp.ne.s32.totalorder %v452_v16, 15  ;;  %v1699_v43 = vld [vmem:[%s5510_s6 + $0x61] sm:$0xff]  ;;  %v5849_v12 = vpack.c.bf16 %v4731_v42, %v7034_v56  ;;  %v5854_v22 = vpack.c.bf16 %v4736_v21, %v7034_v56  ;;  %vm834_vm13 = vcmp.ne.s32.totalorder %v480_v9, 15  ;;  %924 = vst.msk [vmem:[#allocation2] sm:$0xff] %vm923_vm6, %v7033_v4 }
  0x40   : > { %5125 = vmatprep.mubr.msk.bf16.mxu0 %vm1053_vm1, %v1739_v1  ;;  %5366 = vmatprep.subr.msk.bf16.mxu0 %vm1102_vm0, %v5777_v36  ;;  %v1343_v1 = vld [vmem:[%s5510_s6 + $0x70] sm:$0xff]  ;;  %v4735_v55 = vsel %vm830_vm11, 1.0, %v7033_v4  ;;  %v494_v15 = vand.u32 15, %v308_v13  ;;  %v310_v28 = vadd.s32 216, %v5484_v5  ;;  %vm826_vm14 = vcmp.ne.s32.totalorder %v424_v53, 15  ;;  %v1703_v53 = vld [vmem:[%s5510_s6 + $0x81] sm:$0xff] }
  0x41   : > { %v5838_v59 = vpack.c.bf16 %v4735_v55, %v7034_v56  ;;  %v5843_v16 = vpack.c.bf16 %v1344_v38, %v1343_v1  ;;  %7036 = vst [vmem:[#allocation15_spill] sm:$0xff] %v5849_v12  ;;  %v5851_v55 = vpack.c.bf16 %v1700_v46, %v1699_v43  ;;  %7038 = vst [vmem:[#allocation17_spill] sm:$0xff] %v5854_v22  ;;  %v4737_v38 = vsel %vm834_vm13, 1.0, %v7033_v4  ;;  %v1704_v13 = vld [vmem:[%s5510_s6 + $0x89] sm:$0xff] }
  0x42   : > { %v5858_v1 = vpack.c.bf16 %v4732_v3, %v7034_v56  ;;  %vm836_vm15 = vcmp.ne.s32.totalorder %v494_v15, 15  ;;  %v312_v42 = vadd.s32 232, %v5484_v5  ;;  %vm828_vm2 = vcmp.ne.s32.totalorder %v438_v7, 15  ;;  %v1347_v7 = vld [vmem:[%s5510_s6 + $0x90] sm:$0xff]  ;;  %925 = vst.msk [vmem:[#allocation2 + $0x8] sm:$0xff] %vm923_vm6, %v7033_v4  ;;  %926 = vst.msk [vmem:[#allocation2 + $0x10] sm:$0xff] %vm923_vm6, %v7033_v4 }
  0x43   : > { %7035 = vst [vmem:[#allocation14_spill] sm:$0xff] %v5838_v59  ;;  %7037 = vst [vmem:[#allocation16_spill] sm:$0xff] %v5851_v55  ;;  %v4738_v61 = vsel %vm836_vm15, 1.0, %v7033_v4  ;;  %v508_v8 = vand.u32 15, %v310_v28  ;;  %v1742_v3 = vmul.bf16 %v5851_v55, %v5849_v12  ;;  %v314_v15 = vadd.s32 248, %v5484_v5  ;;  %v1705_v5 = vld [vmem:[%s5510_s6 + $0x91] sm:$0xff] }
  0x44   : > { %7039 = vst [vmem:[#allocation18_spill] sm:$0xff] %v5858_v1  ;;  %v5873_v9 = vpack.c.bf16 %v4738_v61, %v7034_v56  ;;  %v1743_v43 = vmul.bf16 %v5860_v32, %v5858_v1  ;;  %v4733_v46 = vsel %vm826_vm14, 1.0, %v7033_v4  ;;  %v4734_v21 = vsel %vm828_vm2, 1.0, %v7033_v4  ;;  %v1348_v1 = vld [vmem:[%s5510_s6 + $0x98] sm:$0xff]  ;;  %927 = vst.msk [vmem:[#allocation2 + $0x18] sm:$0xff] %vm923_vm6, %v7033_v4 }
  0x45   : > { %5092 = vmatmul.mubr.msk.bf16.gmra.mrb[20].mxu1 %vm1053_vm1, %v5810_v19  ;;  %5126 = vmatmul.mubr.msk.bf16.gmra.mrb[20].mxu0 %vm1053_vm1, %v1740_v33  ;;  %v5867_v33 = vpack.c.bf16 %v4737_v38, %v7034_v56  ;;  %vm838_vm3 = vcmp.ne.s32.totalorder %v508_v8, 15  ;;  %v536_v38 = vand.u32 15, %v314_v15  ;;  %v1346_v15 = vld [vmem:[%s5510_s6 + $0x88] sm:$0xff]  ;;  %v5901_v32 = vpack.c.bf16 %v1704_v13, %v1703_v53  ;;  %928 = vst.msk [vmem:[#allocation2 + $0x20] sm:$0xff] %vm923_vm6, %v7033_v4 }
  0x46   : > { %5095 = vmatprep.mubr.msk.bf16.mxu1 %vm1053_vm1, %v5814_v25  ;;  %5129 = vmatprep.mubr.msk.bf16.mxu0 %vm1053_vm1, %v1741_v60  ;;  %v522_v60 = vand.u32 15, %v312_v42  ;;  %v4739_v28 = vsel %vm838_vm3, 1.0, %v7033_v4  ;;  %v1706_v42 = vld [vmem:[%s5510_s6 + $0x99] sm:$0xff]  ;;  %v5912_v55 = vpack.c.bf16 %v4733_v46, %v7034_v56  ;;  %v5932_v13 = vpack.c.bf16 %v1348_v1, %v1347_v7  ;;  %929 = vst.msk [vmem:[#allocation2 + $0x28] sm:$0xff] %vm923_vm6, %v7033_v4 }
  0x47   : > { %v5890_v61 = vpack.c.bf16 %v4739_v28, %v7034_v56  ;;  %7041 = vst [vmem:[#allocation20_spill] sm:$0xff] %v5901_v32  ;;  %vm842_vm5 = vcmp.ne.s32.totalorder %v536_v38, 15  ;;  %v1349_v7 = vld [vmem:[%s5510_s6 + $0xa0] sm:$0xff]  ;;  %v1351_v38 = vld [vmem:[%s5510_s6 + $0xb0] sm:$0xff]  ;;  %930 = vst.msk [vmem:[#allocation2 + $0x30] sm:$0xff] %vm923_vm6, %v7033_v4 }
  0x48   : > { %vm840_vm4 = vcmp.ne.s32.totalorder %v522_v60, 15  ;;  %v1345_v60 = vld [vmem:[%s5510_s6 + $0x80] sm:$0xff]  ;;  %7042 = vst [vmem:[#allocation21_spill] sm:$0xff] %v5912_v55  ;;  %v4741_v53 = vsel %vm842_vm5, 1.0, %v7033_v4  ;;  %931 = vst.msk [vmem:[#allocation2 + $0x38] sm:$0xff] %vm923_vm6, %v7033_v4 }
  0x49   : > { %v4740_v8 = vsel %vm840_vm4, 1.0, %v7033_v4  ;;  %v5926_v46 = vpack.c.bf16 %v4741_v53, %v7034_v56  ;;  %v5930_v35 = vpack.c.bf16 %v1346_v15, %v1345_v60  ;;  %v1710_v53 = vld [vmem:[%s5510_s6 + $0xb9] sm:$0xff]  ;;  %v1350_v15 = vld [vmem:[%s5510_s6 + $0xa8] sm:$0xff]  ;;  %932 = vst.msk [vmem:[#allocation2 + $0x40] sm:$0xff] %vm923_vm6, %v7033_v4  ;;  %933 = vst.msk [vmem:[#allocation2 + $0x48] sm:$0xff] %vm923_vm6, %v7033_v4 }
  0x4a   : > { %v5904_v12 = vpack.c.bf16 %v4740_v8, %v7034_v56  ;;  %v5923_v8 = vpack.c.bf16 %v1706_v42, %v1705_v5  ;;  %v1707_v5 = vld [vmem:[%s5510_s6 + $0xa1] sm:$0xff]  ;;  %v1708_v42 = vld [vmem:[%s5510_s6 + $0xa9] sm:$0xff]  ;;  %v1352_v60 = vld [vmem:[%s5510_s6 + $0xb8] sm:$0xff]  ;;  %934 = vst.msk [vmem:[#allocation2 + $0x50] sm:$0xff] %vm923_vm6, %v7033_v4 }
  0x4b   : > { %v5966_v28 = vpack.c.bf16 %v1352_v60, %v1351_v38  ;;  %v1353_v38 = vld [vmem:[%s5510_s6 + $0xc0] sm:$0xff]  ;;  %v1355_v60 = vld [vmem:[%s5510_s6 + $0xd0] sm:$0xff]  ;;  %935 = vst.msk [vmem:[#allocation2 + $0x58] sm:$0xff] %vm923_vm6, %v7033_v4  ;;  %936 = vst.msk [vmem:[#allocation2 + $0x60] sm:$0xff] %vm923_vm6, %v7033_v4 }
  0x4c   : > { %7044 = vst [vmem:[#allocation23_spill] sm:$0xff] %v5923_v8  ;;  %937 = vst.msk [vmem:[#allocation2 + $0x68] sm:$0xff] %vm923_vm6, %v7033_v4 }
  0x4d   : > { %5096 = vmatmul.mubr.msk.bf16.gmra.mrb[24].mxu1 %vm1053_vm1, %v5816_v23  ;;  %5130 = vmatmul.mubr.msk.bf16.gmra.mrb[24].mxu0 %vm1053_vm1, %v1742_v3  ;;  %v5921_v3 = vpack.c.bf16 %v4734_v21, %v7034_v56  ;;  %v1709_v56 = vld [vmem:[%s5510_s6 + $0xb1] sm:$0xff]  ;;  %938 = vst.msk [vmem:[#allocation2 + $0x70] sm:$0xff] %vm923_vm6, %v7033_v4  ;;  %939 = vst.msk [vmem:[#allocation2 + $0x78] sm:$0xff] %vm923_vm6, %v7033_v4 }
  0x4e   : > { %5099 = vmatprep.mubr.msk.bf16.mxu1 %vm1053_vm1, %v5843_v16  ;;  %5133 = vmatprep.mubr.msk.bf16.mxu0 %vm1053_vm1, %v1743_v43  ;;  %v1744_v43 = vmul.bf16 %v5901_v32, %v5912_v55  ;;  %v5964_v55 = vpack.c.bf16 %v1350_v15, %v1349_v7  ;;  %v1712_v32 = vld [vmem:[%s5510_s6 + $0xc9] sm:$0xff]  ;;  %v1356_v7 = vld [vmem:[%s5510_s6 + $0xd8] sm:$0xff]  ;;  %940 = vst.msk [vmem:[#allocation2 + $0x80] sm:$0xff] %vm923_vm6, %v7033_v4  ;;  %941 = vst.msk [vmem:[#allocation2 + $0x88] sm:$0xff] %vm923_vm6, %v7033_v4 }
  0x4f   : > { %7043 = vst [vmem:[#allocation22_spill] sm:$0xff] %v5921_v3  ;;  %v1745_v21 = vmul.bf16 %v5923_v8, %v5921_v3  ;;  %v5957_v3 = vpack.c.bf16 %v1708_v42, %v1707_v5  ;;  %v5962_v8 = vpack.c.bf16 %v1710_v53, %v1709_v56  ;;  %v1711_v42 = vld [vmem:[%s5510_s6 + $0xc1] sm:$0xff]  ;;  %v1714_v56 = vld [vmem:[%s5510_s6 + $0xd9] sm:$0xff]  ;;  %943 = vst.msk [vmem:[#allocation2 + $0x98] sm:$0xff] %vm923_vm6, %v7033_v4 }
  0x50   : > { %v1354_v53 = vld [vmem:[%s5510_s6 + $0xc8] sm:$0xff]  ;;  %v5985_v15 = vpack.c.bf16 %v1712_v32, %v1711_v42  ;;  %v1717_v32 = vld [vmem:[%s5510_s6 + $0xf1] sm:$0xff]  ;;  %v1357_v42 = vld [vmem:[%s5510_s6 + $0xe0] sm:$0xff]  ;;  %944 = vst.msk [vmem:[#allocation2 + $0xa0] sm:$0xff] %vm923_vm6, %v7033_v4 }
  0x51   : > { %7045 = vst [vmem:[#allocation24_spill] sm:$0xff] %v5957_v3  ;;  %7046 = vst [vmem:[#allocation25_spill] sm:$0xff] %v5962_v8  ;;  %v1747_v5 = vmul.bf16 %v5962_v8, %v5854_v22  ;;  %v5990_v22 = vpack.c.bf16 %v1354_v53, %v1353_v38  ;;  %v5992_v8 = vpack.c.bf16 %v1356_v7, %v1355_v60  ;;  %v1360_v38 = vld [vmem:[%s5510_s6 + $0xf8] sm:$0xff] }
  0x52   : > { %945 = vst.msk [vmem:[#allocation2 + $0xa8] sm:$0xff] %vm923_vm6, %v7033_v4  ;;  %946 = vst.msk [vmem:[#allocation2 + $0xb0] sm:$0xff] %vm923_vm6, %v7033_v4 }
  0x53   : > { %947 = vst.msk [vmem:[#allocation2 + $0xb8] sm:$0xff] %vm923_vm6, %v7033_v4  ;;  %948 = vst.msk [vmem:[#allocation2 + $0xc0] sm:$0xff] %vm923_vm6, %v7033_v4 }
  0x54   : > { %949 = vst.msk [vmem:[#allocation2 + $0xc8] sm:$0xff] %vm923_vm6, %v7033_v4  ;;  %950 = vst.msk [vmem:[#allocation2 + $0xd0] sm:$0xff] %vm923_vm6, %v7033_v4 }
  0x55   : > { %5100 = vmatmul.mubr.msk.bf16.gmra.mrb[28].mxu1 %vm1053_vm1, %v5930_v35  ;;  %5134 = vmatmul.mubr.msk.bf16.gmra.mrb[28].mxu0 %vm1053_vm1, %v1744_v43  ;;  %v1746_v43 = vmul.bf16 %v5957_v3, %v5838_v59  ;;  %v1748_v59 = vmul.bf16 %v5985_v15, %v5867_v33  ;;  %v1715_v3 = vld [vmem:[%s5510_s6 + $0xe1] sm:$0xff]  ;;  %951 = vst.msk [vmem:[#allocation2 + $0xd8] sm:$0xff] %vm923_vm6, %v7033_v4  ;;  %952 = vst.msk [vmem:[#allocation2 + $0xe0] sm:$0xff] %vm923_vm6, %v7033_v4 }
  0x56   : > { %5103 = vmatprep.mubr.msk.bf16.mxu1 %vm1053_vm1, %v5932_v13  ;;  %5137 = vmatprep.mubr.msk.bf16.mxu0 %vm1053_vm1, %v1745_v21  ;;  %v1713_v21 = vld [vmem:[%s5510_s6 + $0xd1] sm:$0xff]  ;;  %v6011_v53 = vpack.c.bf16 %v1716_v27, %v1715_v3  ;;  %953 = vst.msk [vmem:[#allocation2 + $0xe8] sm:$0xff] %vm923_vm6, %v7033_v4  ;;  %954 = vst.msk [vmem:[#allocation2 + $0xf0] sm:$0xff] %vm923_vm6, %v7033_v4 }
  0x57   : > { %v5988_v1 = vpack.c.bf16 %v1714_v56, %v1713_v21  ;;  %v1358_v21 = vld [vmem:[%s5510_s6 + $0xe8] sm:$0xff]  ;;  %v1359_v56 = vld [vmem:[%s5510_s6 + $0xf0] sm:$0xff]  ;;  %955 = vst.msk [vmem:[#allocation2 + $0xf8] sm:$0xff] %vm923_vm6, %v7033_v4 }
  0x58   : > { %v6016_v7 = vpack.c.bf16 %v1358_v21, %v1357_v42  ;;  %v6082_v27 = vpack.c.bf16 %v1360_v38, %v1359_v56  ;;  %v1362_v42 = vld [vmem:[%s5510_s6 + $0x108] sm:$0xff]  ;;  %v7047_v38 = vmul.bf16 %v5537_v41, %v5520_v29  ;;  %v3316_v41 = vsel %vm1102_vm0, %v5777_v36, 0 }
  0x59   : > { %v7053_v36 = vmul.bf16 %v5700_v45, %v5704_v49 }
  0x5d   : > { %5104 = vmatmul.mubr.msk.bf16.gmra.mrb[32].mxu1 %vm1053_vm1, %v5964_v55  ;;  %5138 = vmatmul.mubr.msk.bf16.gmra.mrb[32].mxu0 %vm1053_vm1, %v1746_v43  ;;  %v1749_v43 = vmul.bf16 %v5988_v1, %v5873_v9 }
  0x5e   : > { %5107 = vmatprep.mubr.msk.bf16.mxu1 %vm1053_vm1, %v5966_v28  ;;  %5141 = vmatprep.mubr.msk.bf16.mxu0 %vm1053_vm1, %v1747_v5  ;;  %v1718_v5 = vld [vmem:[%s5510_s6 + $0xf9] sm:$0xff] }
  0x5f   : > { %v6014_v60 = vpack.c.bf16 %v1718_v5, %v1717_v32  ;;  %v1720_v32 = vld [vmem:[%s5510_s6 + $0x109] sm:$0xff]  ;;  %v1361_v5 = vld [vmem:[%s5510_s6 + $0x100] sm:$0xff] }
  0x60   : > { %v1378_v21 = vpack.c.bf16 %v1362_v42, %v1361_v5  ;;  %v7057_v42 = vld [vmem:[#allocation5_spill] sm:$0xff] }
  0x61   : > { %v1751_v3 = vmul.bf16 %v6014_v60, %v5904_v12 }
  0x65   : > { %5108 = vmatmul.mubr.msk.bf16.gmra.mrb[36].mxu1 %vm1053_vm1, %v5990_v22  ;;  %5142 = vmatmul.mubr.msk.bf16.gmra.mrb[36].mxu0 %vm1053_vm1, %v1748_v59  ;;  %v1750_v59 = vmul.bf16 %v6011_v53, %v5890_v61 }
  0x66   : > { %5111 = vmatprep.mubr.msk.bf16.mxu1 %vm1053_vm1, %v5992_v8  ;;  %5145 = vmatprep.mubr.msk.bf16.mxu0 %vm1053_vm1, %v1749_v43  ;;  %v1719_v43 = vld [vmem:[%s5510_s6 + $0x101] sm:$0xff] }
  0x67   : > { %v6097_v4 = vpack.c.bf16 %v1720_v32, %v1719_v43  ;;  %v7048_v43 = vmul.bf16 %v5544_v47, %v5556_v54  ;;  %v7049_v32 = vmul.bf16 %v5546_v48, %v5613_v17  ;;  %v7050_v47 = vmul.bf16 %v5649_v51, %v5616_v18 }
  0x69   : > { %v1752_v56 = vmul.bf16 %v6097_v4, %v5926_v46 }
  0x6d   : > { %5112 = vmatmul.mubr.msk.bf16.gmra.mrb[40].mxu1 %vm1053_vm1, %v6016_v7  ;;  %5146 = vmatmul.mubr.msk.bf16.gmra.mrb[40].mxu0 %vm1053_vm1, %v1750_v59  ;;  %v2942_v59 = vsel %vm1102_vm0, %v5767_v24, 0  ;;  %v7051_v24 = vmul.bf16 %v5651_v52, %v5657_v63 }
  0x6e   : > { %5115 = vmatprep.mubr.msk.bf16.mxu1 %vm1053_vm1, %v6082_v27  ;;  %5149 = vmatprep.mubr.msk.bf16.mxu0 %vm1053_vm1, %v1751_v3  ;;  %v4860_v3 = vld [vmem:[%s6976_s1 + $0x1c] sm:$0xf] }
  0x75   : > { %5116 = vmatmul.mubr.msk.bf16.gmra.mrb[44].mxu1 %vm1053_vm1, %v1378_v21  ;;  %5150 = vmatmul.mubr.msk.bf16.gmra.mrb[44].mxu0 %vm1053_vm1, %v1752_v56  ;;  %v7058_v56 = vld [vmem:[#allocation7_spill] sm:$0xff] }
  0x76   : > { %5155 = vmatprep.mubr.msk.bf16.mxu1 %vm1053_vm1, %v7047_v38  ;;  %5189 = vmatprep.mubr.msk.bf16.mxu0 %vm1053_vm1, %v5752_v10  ;;  %v4877_v10 = vld [vmem:[%s6976_s1 + $0x20] sm:$0xf]  ;;  %v2843_v38 = vmul.bf16 %v7058_v56, %v7057_v42 }
  0x7d   : > { %5156 = vmatmul.mubr.msk.bf16.vlgmr.msra.gmra.mrb[48].mxu1 %vm1053_vm1, %v7048_v43  ;;  %5190 = vmatmul.mubr.msk.bf16.vlgmr.msra.gmra.mrb[48].mxu0 %vm1053_vm1, %v5757_v6  ;;  %v7052_v6 = vmul.bf16 %v5686_v30, %v5660_v0 }
  0x7e   : > { %5222 = vmatpush3.bf16.msra.mxu1 %v2942_v59  ;;  %5159 = vmatprep.mubr.msk.bf16.mxu1 %vm1053_vm1, %v7049_v32  ;;  %v7061_v32 = vld [vmem:[#allocation8_spill] sm:$0xff] }
  0x7f   : > { %5367 = vmatprep.subr.msk.bf16.mxu1 %vm1102_vm0, %v4860_v3  ;;  %5256 = vmatpush3.bf16.msra.mxu0 %v3316_v41 }
  0x80   : > { %5193 = vmatprep.mubr.msk.bf16.mxu0 %vm1053_vm1, %v5810_v19  ;;  %5368 = vmatprep.subr.msk.bf16.mxu0 %vm1102_vm0, %v4877_v10  ;;  %v2119_v19 = vmul.bf16 %v5526_v34, %v5532_v39  ;;  %v2121_v34 = vmul.bf16 %v5563_v58, %v5573_v62  ;;  %v2124_v58 = vmul.bf16 %v5662_v2, %v5642_v44  ;;  %v2468_v2 = vld [vmem:[%s5510_s6 + $0x118] sm:$0xff] }
  0x85   : > { %5160 = vmatmul.mubr.msk.bf16.gmra.mrb[52].mxu1 %vm1053_vm1, %v7050_v47  ;;  %5194 = vmatmul.mubr.msk.bf16.gmra.mrb[52].mxu0 %vm1053_vm1, %v5814_v25  ;;  %v7054_v25 = vmul.bf16 %v5516_v26, %v5707_v50  ;;  %v2122_v26 = vmul.bf16 %v5601_v14, %v5597_v11  ;;  %v7055_v14 = vld [vmem:[#allocation3_spill] sm:$0xff] }
  0x86   : > { %5163 = vmatprep.mubr.msk.bf16.mxu1 %vm1053_vm1, %v7051_v24  ;;  %5197 = vmatprep.mubr.msk.bf16.mxu0 %vm1053_vm1, %v5816_v23  ;;  %v2125_v23 = vmul.bf16 %v7055_v14, %v5679_v20  ;;  %v7062_v47 = vld [vmem:[#allocation11_spill] sm:$0xff] }
  0x87   : > { %v2845_v24 = vmul.bf16 %v7062_v47, %v7061_v32  ;;  %v7072_v14 = vld [vmem:[#allocation19_spill] sm:$0xff] }
  0x88   : > { %v3187_v47 = vld [vmem:[%s5510_s6 + $0xbf] sm:$0xff] }
  0x8d   : > { %5164 = vmatmul.mubr.msk.bf16.gmra.mrb[56].mxu1 %vm1053_vm1, %v7052_v6  ;;  %5198 = vmatmul.mubr.msk.bf16.gmra.mrb[56].mxu0 %vm1053_vm1, %v5843_v16  ;;  %v2093_v16 = vld [vmem:[%s5510_s6 + $0x10f] sm:$0xff]  ;;  %v3674_v6 = vsel %vm1102_vm0, %v4860_v3, 0  ;;  %v7065_v3 = vld [vmem:[#allocation10_spill] sm:$0xff] }
  0x8e   : > { %5167 = vmatprep.mubr.msk.bf16.mxu1 %vm1053_vm1, %v7053_v36  ;;  %5201 = vmatprep.mubr.msk.bf16.mxu0 %vm1053_vm1, %v5930_v35  ;;  %v2120_v35 = vmul.bf16 %v5561_v57, %v5535_v40  ;;  %v2123_v57 = vmul.bf16 %v5635_v37, %v5629_v31  ;;  %v2094_v37 = vld [vmem:[%s5510_s6 + $0x117] sm:$0xff]  ;;  %v7063_v36 = vmul.bf16 %v5546_v48, %v5556_v54  ;;  %v3181_v48 = vld [vmem:[%s5510_s6 + $0x8f] sm:$0xff] }
  0x8f   : > { %v3182_v54 = vld [vmem:[%s5510_s6 + $0x97] sm:$0xff] }
  0x95   : > { %5168 = vmatmul.mubr.msk.bf16.gmra.mrb[60].mxu1 %vm1053_vm1, %v7054_v25  ;;  %5202 = vmatmul.mubr.msk.bf16.gmra.mrb[60].mxu0 %vm1053_vm1, %v5932_v13  ;;  %v2467_v13 = vld [vmem:[%s5510_s6 + $0x110] sm:$0xff] }
  0x96   : > { %5171 = vmatprep.mubr.msk.bf16.mxu1 %vm1053_vm1, %v2119_v19  ;;  %5205 = vmatprep.mubr.msk.bf16.mxu0 %vm1053_vm1, %v5964_v55  ;;  %v6196_v55 = vpack.c.bf16 %v2094_v37, %v2093_v16  ;;  %v2484_v59 = vpack.c.bf16 %v2468_v2, %v2467_v13  ;;  %v7064_v19 = vmul.bf16 %v5649_v51, %v5613_v17  ;;  %v7066_v25 = vld [vmem:[#allocation13_spill] sm:$0xff]  ;;  %v7073_v16 = vld [vmem:[#allocation18_spill] sm:$0xff]  ;;  %v7074_v37 = vld [vmem:[#allocation20_spill] sm:$0xff] }
  0x97   : > { %v7070_v17 = vmul.bf16 %v5686_v30, %v5657_v63  ;;  %v3207_v51 = vpack.c.bf16 %v3182_v54, %v3181_v48  ;;  %v3183_v13 = vld [vmem:[%s5510_s6 + $0x9f] sm:$0xff]  ;;  %v3186_v63 = vld [vmem:[%s5510_s6 + $0xb7] sm:$0xff]  ;;  %v7075_v30 = vmul.bf16 %v5700_v45, %v5660_v0  ;;  %v3188_v0 = vld [vmem:[%s5510_s6 + $0xc7] sm:$0xff] }
  0x98   : > { %v3189_v45 = vld [vmem:[%s5510_s6 + $0xcf] sm:$0xff]  ;;  %v3192_v48 = vld [vmem:[%s5510_s6 + $0xe7] sm:$0xff] }
  0x99   : > { %v3193_v54 = vld [vmem:[%s5510_s6 + $0xef] sm:$0xff] }
  0x9d   : > { %5172 = vmatmul.mubr.msk.bf16.gmra.mrb[64].mxu1 %vm1053_vm1, %v2120_v35  ;;  %5206 = vmatmul.mubr.msk.bf16.gmra.mrb[64].mxu0 %vm1053_vm1, %v5966_v28  ;;  %v3170_v28 = vld [vmem:[%s5510_s6 + $0x37] sm:$0xff]  ;;  %v7067_v35 = vld [vmem:[#allocation12_spill] sm:$0xff] }
  0x9e   : > { %5175 = vmatprep.mubr.msk.bf16.mxu1 %vm1053_vm1, %v2121_v34  ;;  %5209 = vmatprep.mubr.msk.bf16.mxu0 %vm1053_vm1, %v5990_v22  ;;  %v3169_v22 = vld [vmem:[%s5510_s6 + $0x2f] sm:$0xff] }
  0x9f   : > { %v7068_v34 = vld [vmem:[#allocation16_spill] sm:$0xff] }
  0xa5   : > { %5176 = vmatmul.mubr.msk.bf16.gmra.mrb[68].mxu1 %vm1053_vm1, %v2122_v26  ;;  %5210 = vmatmul.mubr.msk.bf16.gmra.mrb[68].mxu0 %vm1053_vm1, %v5992_v8  ;;  %v3201_v8 = vpack.c.bf16 %v3170_v28, %v3169_v22  ;;  %v2847_v26 = vmul.bf16 %v7068_v34, %v7067_v35  ;;  %v2849_v22 = vmul.bf16 %v7074_v37, %v7073_v16  ;;  %v3196_v37 = vld [vmem:[%s5510_s6 + $0x107] sm:$0xff] }
  0xa6   : > { %5179 = vmatprep.mubr.msk.bf16.mxu1 %vm1053_vm1, %v2123_v57  ;;  %5213 = vmatprep.mubr.msk.bf16.mxu0 %vm1053_vm1, %v6016_v7  ;;  %v7056_v7 = vld [vmem:[#allocation4_spill] sm:$0xff]  ;;  %v7069_v57 = vmul.bf16 %v5651_v52, %v5616_v18  ;;  %v3223_v28 = vmul.bf16 %v3207_v51, %v5704_v49 }
  0xa7   : > { %v2126_v5 = vmul.bf16 %v6196_v55, %v7056_v7  ;;  %v3217_v43 = vmul.bf16 %v3201_v8, %v5520_v29  ;;  %v4048_v29 = vsel %vm1102_vm0, %v4877_v10, 0  ;;  %v2846_v10 = vmul.bf16 %v7066_v25, %v7065_v3  ;;  %v3184_v18 = vld [vmem:[%s5510_s6 + $0xa7] sm:$0xff]  ;;  %v3185_v52 = vld [vmem:[%s5510_s6 + $0xaf] sm:$0xff] }
  0xa8   : > { %v3208_v2 = vpack.c.bf16 %v3184_v18, %v3183_v13  ;;  %v3209_v49 = vpack.c.bf16 %v3186_v63, %v3185_v52  ;;  %v7076_v8 = vld [vmem:[#allocation21_spill] sm:$0xff]  ;;  %v3231_v13 = vmul.bf16 %v6196_v55, %v5679_v20  ;;  %v3199_v18 = vld [vmem:[%s5510_s6 + $0x11f] sm:$0xff]  ;;  %v3200_v52 = vld [vmem:[%s5510_s6 + $0x127] sm:$0xff]  ;;  %vm4447_vm0 = vcmask 122880  }
  0xa9   : > { %v1039_v20 = vld [vmem:[#allocation2 + $0x98] sm:$0xff]  ;;  %v1020_v55 = vld [vmem:[#allocation2] sm:$0xff] }
  0xad   : > { %5180 = vmatmul.mubr.msk.bf16.gmra.mrb[72].mxu1 %vm1053_vm1, %v2124_v58  ;;  %5214 = vmatmul.mubr.msk.bf16.gmra.mrb[72].mxu0 %vm1053_vm1, %v6082_v27  ;;  %v7059_v27 = vld [vmem:[#allocation6_spill] sm:$0xff]  ;;  %v7071_v58 = vld [vmem:[#allocation15_spill] sm:$0xff] }
  0xae   : > { %5183 = vmatprep.mubr.msk.bf16.mxu1 %vm1053_vm1, %v2125_v23  ;;  %5217 = vmatprep.mubr.msk.bf16.mxu0 %vm1053_vm1, %v1378_v21  ;;  %v7060_v21 = vld [vmem:[#allocation9_spill] sm:$0xff]  ;;  %v2848_v23 = vmul.bf16 %v7072_v14, %v7071_v58 }
  0xaf   : > { %v2844_v41 = vmul.bf16 %v7060_v21, %v7059_v27  ;;  %v3224_v21 = vmul.bf16 %v3208_v2, %v5707_v50  ;;  %v1038_v2 = vld [vmem:[#allocation2 + $0x90] sm:$0xff] }
  0xb5   : > { %5184 = vmatmul.mubr.msk.bf16.gmra.mrb[76].mxu1 %vm1053_vm1, %v2126_v5  ;;  %5218 = vmatmul.mubr.msk.bf16.gmra.mrb[76].mxu0 %vm1053_vm1, %v2484_v59  ;;  %v7077_v5 = vld [vmem:[#allocation23_spill] sm:$0xff]  ;;  %v7079_v59 = vld [vmem:[#allocation24_spill] sm:$0xff] }
  0xb6   : > { %5223 = vmatprep.mubr.msk.bf16.mxu1 %vm1053_vm1, %v2843_v38  ;;  %5257 = vmatprep.mubr.msk.bf16.mxu0 %vm1053_vm1, %v3217_v43  ;;  %v2850_v56 = vmul.bf16 %v7077_v5, %v7076_v8  ;;  %v7078_v38 = vld [vmem:[#allocation22_spill] sm:$0xff]  ;;  %v3216_v5 = vpack.c.bf16 %v3200_v52, %v3199_v18 }
  0xb7   : > { %v2851_v43 = vmul.bf16 %v7079_v59, %v7078_v38  ;;  %v1043_v52 = vld [vmem:[#allocation2 + $0xb8] sm:$0xff] }
  0xbd   : > { %5224 = vmatmul.mubr.msk.bf16.vlgmr.msra.gmra.mrb[80].mxu1 %vm1053_vm1, %v2844_v41  ;;  %5258 = vmatmul.mubr.msk.bf16.vlgmr.msra.gmra.mrb[80].mxu0 %vm1053_vm1, %v7063_v36  ;;  %v3225_v41 = vmul.bf16 %v3209_v49, %v5532_v39  ;;  %v7081_v36 = vld [vmem:[#allocation25_spill] sm:$0xff]  ;;  %v1036_v49 = vld [vmem:[#allocation2 + $0x80] sm:$0xff] }
  0xbe   : > { %5290 = vmatpush3.bf16.msra.mxu1 %v3674_v6  ;;  %5227 = vmatprep.mubr.msk.bf16.mxu1 %vm1053_vm1, %v2845_v24  ;;  %v3190_v24 = vld [vmem:[%s5510_s6 + $0xd7] sm:$0xff]  ;;  %v3210_v6 = vpack.c.bf16 %v3188_v0, %v3187_v47  ;;  %v1037_v47 = vld [vmem:[#allocation2 + $0x88] sm:$0xff] }
  0xbf   : > { %5324 = vmatpush3.bf16.msra.mxu0 %v4048_v29  ;;  %5261 = vmatprep.mubr.msk.bf16.mxu0 %vm1053_vm1, %v7064_v19  ;;  %v3211_v50 = vpack.c.bf16 %v3190_v24, %v3189_v45  ;;  %v7080_v29 = vld [vmem:[#allocation14_spill] sm:$0xff]  ;;  %v7082_v19 = vld [vmem:[#allocation17_spill] sm:$0xff] }
  0xc0   : > { %v2852_v39 = vmul.bf16 %v7081_v36, %v7080_v29  ;;  %v2853_v25 = vmul.bf16 %v5985_v15, %v7082_v19  ;;  %v2855_v15 = vmul.bf16 %v6011_v53, %v5873_v9  ;;  %v2856_v53 = vmul.bf16 %v6014_v60, %v5890_v61  ;;  %v3902_v60 = vld [vmem:[%s5510_s6 + $0x39] sm:$0xff] }
  0xc1   : > { %v3227_v34 = vmul.bf16 %v3211_v50, %v5573_v62  ;;  %v2854_v62 = vmul.bf16 %v5988_v1, %v5867_v33  ;;  %v1023_v24 = vld [vmem:[#allocation2 + $0x18] sm:$0xff] }
  0xc5   : > { %5228 = vmatmul.mubr.msk.bf16.gmra.mrb[84].mxu1 %vm1053_vm1, %v2846_v10  ;;  %5262 = vmatmul.mubr.msk.bf16.gmra.mrb[84].mxu0 %vm1053_vm1, %v7069_v57  ;;  %v3226_v10 = vmul.bf16 %v3210_v6, %v5535_v40  ;;  %v3194_v57 = vld [vmem:[%s5510_s6 + $0xf7] sm:$0xff] }
  0xc6   : > { %5231 = vmatprep.mubr.msk.bf16.mxu1 %vm1053_vm1, %v2847_v26  ;;  %5265 = vmatprep.mubr.msk.bf16.mxu0 %vm1053_vm1, %v7070_v17  ;;  %v3191_v26 = vld [vmem:[%s5510_s6 + $0xdf] sm:$0xff]  ;;  %v3213_v40 = vpack.c.bf16 %v3194_v57, %v3193_v54  ;;  %v3232_v57 = vmul.bf16 %v3216_v5, %v7056_v7  ;;  %v1042_v7 = vld [vmem:[#allocation2 + $0xb0] sm:$0xff] }
  0xc7   : > { %v3212_v17 = vpack.c.bf16 %v3192_v48, %v3191_v26 }
  0xc8   : > { %v3229_v14 = vmul.bf16 %v3213_v40, %v5629_v31  ;;  %v2825_v31 = vld [vmem:[%s5510_s6 + $0x111] sm:$0xff] }
  0xc9   : > { %v3228_v51 = vmul.bf16 %v3212_v17, %v5597_v11  ;;  %v2857_v11 = vmul.bf16 %v6097_v4, %v5904_v12  ;;  %v1022_v4 = vld [vmem:[#allocation2 + $0x10] sm:$0xff] }
  0xcd   : > { %5232 = vmatmul.mubr.msk.bf16.gmra.mrb[88].mxu1 %vm1053_vm1, %v2848_v23  ;;  %5266 = vmatmul.mubr.msk.bf16.gmra.mrb[88].mxu0 %vm1053_vm1, %v7075_v30  ;;  %v3195_v23 = vld [vmem:[%s5510_s6 + $0xff] sm:$0xff]  ;;  %v3901_v30 = vld [vmem:[%s5510_s6 + $0x31] sm:$0xff] }
  0xce   : > { %5235 = vmatprep.mubr.msk.bf16.mxu1 %vm1053_vm1, %v2849_v22  ;;  %5269 = vmatprep.mubr.msk.bf16.mxu0 %vm1053_vm1, %v3223_v28  ;;  %v3214_v1 = vpack.c.bf16 %v3196_v37, %v3195_v23  ;;  %v2826_v22 = vld [vmem:[%s5510_s6 + $0x119] sm:$0xff]  ;;  %v3905_v37 = vld [vmem:[%s5510_s6 + $0x51] sm:$0xff] }
  0xcf   : > { %v6315_v63 = vpack.c.bf16 %v2826_v22, %v2825_v31  ;;  %v1026_v31 = vld [vmem:[#allocation2 + $0x30] sm:$0xff] }
  0xd0   : > { %v3230_v28 = vmul.bf16 %v3214_v1, %v5642_v44  ;;  %v3543_v44 = vld [vmem:[%s5510_s6 + $0x30] sm:$0xff]  ;;  %v3906_v1 = vld [vmem:[%s5510_s6 + $0x59] sm:$0xff] }
  0xd1   : > { %v2858_v0 = vmul.bf16 %v6315_v63, %v5926_v46  ;;  %v3547_v22 = vld [vmem:[%s5510_s6 + $0x50] sm:$0xff] }
  0xd5   : > { %5236 = vmatmul.mubr.msk.bf16.gmra.mrb[92].mxu1 %vm1053_vm1, %v2850_v56  ;;  %5270 = vmatmul.mubr.msk.bf16.gmra.mrb[92].mxu0 %vm1053_vm1, %v3224_v21  ;;  %v3544_v56 = vld [vmem:[%s5510_s6 + $0x38] sm:$0xff] }
  0xd6   : > { %5239 = vmatprep.mubr.msk.bf16.mxu1 %vm1053_vm1, %v2851_v43  ;;  %5273 = vmatprep.mubr.msk.bf16.mxu0 %vm1053_vm1, %v3225_v41  ;;  %v3933_v43 = vpack.c.bf16 %v3902_v60, %v3901_v30  ;;  %v1024_v30 = vld [vmem:[#allocation2 + $0x20] sm:$0xff]  ;;  %v3935_v60 = vpack.c.bf16 %v3906_v1, %v3905_v37 }
  0xdd   : > { %5240 = vmatmul.mubr.msk.bf16.gmra.mrb[96].mxu1 %vm1053_vm1, %v2852_v39  ;;  %5274 = vmatmul.mubr.msk.bf16.gmra.mrb[96].mxu0 %vm1053_vm1, %v3226_v10  ;;  %v3575_v10 = vpack.c.bf16 %v3544_v56, %v3543_v44  ;;  %v1027_v56 = vld [vmem:[#allocation2 + $0x38] sm:$0xff] }
  0xde   : > { %5243 = vmatprep.mubr.msk.bf16.mxu1 %vm1053_vm1, %v2853_v25  ;;  %5277 = vmatprep.mubr.msk.bf16.mxu0 %vm1053_vm1, %v3227_v34  ;;  %v1021_v25 = vld [vmem:[#allocation2 + $0x8] sm:$0xff] }
  0xe5   : > { %5244 = vmatmul.mubr.msk.bf16.gmra.mrb[100].mxu1 %vm1053_vm1, %v2854_v62  ;;  %5278 = vmatmul.mubr.msk.bf16.gmra.mrb[100].mxu0 %vm1053_vm1, %v3228_v51  ;;  %v3903_v51 = vld [vmem:[%s5510_s6 + $0x41] sm:$0xff] }
  0xe6   : > { %5247 = vmatprep.mubr.msk.bf16.mxu1 %vm1053_vm1, %v2855_v15  ;;  %5281 = vmatprep.mubr.msk.bf16.mxu0 %vm1053_vm1, %v3229_v14  ;;  %v3949_v15 = vmul.bf16 %v3933_v43, %v7057_v42  ;;  %v3904_v14 = vld [vmem:[%s5510_s6 + $0x49] sm:$0xff]  ;;  %v3545_v42 = vld [vmem:[%s5510_s6 + $0x40] sm:$0xff] }
  0xed   : > { %5248 = vmatmul.mubr.msk.bf16.gmra.mrb[104].mxu1 %vm1053_vm1, %v2856_v53  ;;  %5282 = vmatmul.mubr.msk.bf16.gmra.mrb[104].mxu0 %vm1053_vm1, %v3230_v28  ;;  %v1040_v53 = vld [vmem:[#allocation2 + $0xa0] sm:$0xff]  ;;  %v3548_v28 = vld [vmem:[%s5510_s6 + $0x58] sm:$0xff] }
  0xee   : > { %5251 = vmatprep.mubr.msk.bf16.mxu1 %vm1053_vm1, %v2857_v11  ;;  %5285 = vmatprep.mubr.msk.bf16.mxu0 %vm1053_vm1, %v3231_v13  ;;  %v3546_v11 = vld [vmem:[%s5510_s6 + $0x48] sm:$0xff]  ;;  %v3934_v13 = vpack.c.bf16 %v3904_v14, %v3903_v51 }
  0xef   : > { %v3576_v5 = vpack.c.bf16 %v3546_v11, %v3545_v42  ;;  %v1045_v42 = vld [vmem:[#allocation2 + $0xc8] sm:$0xff] }
  0xf0   : > { %v5071_v59 = vpop.f32.mrb[0].mxu1  ;;  %v5055_v45 = vpop.f32.mrb[0].mxu0 }
  0xf1   : > { %v1285_v21 = vadd.f32 %v5071_v59, %v1038_v2  ;;  %v1204_v41 = vpop.f32.mrb[1].mxu1  ;;  %v1269_v36 = vadd.f32 %v5055_v45, %v1022_v4  ;;  %v1140_v39 = vpop.f32.mrb[1].mxu0  ;;  %v1041_v4 = vld [vmem:[#allocation2 + $0xa8] sm:$0xff] }
  0xf2   : > { %v1283_v6 = vadd.f32 %v1204_v41, %v1036_v49  ;;  %v5072_v50 = vpop.f32.mrb[2].mxu1  ;;  %v1267_v48 = vadd.f32 %v1140_v39, %v1020_v55  ;;  %v5056_v54 = vpop.f32.mrb[2].mxu0  ;;  %v3577_v41 = vpack.c.bf16 %v3548_v28, %v3547_v22  ;;  %v1031_v22 = vld [vmem:[#allocation2 + $0x58] sm:$0xff] }
  0xf3   : > { %1317 = vst.msk [vmem:[#allocation2 + $0x90] sm:$0xff] %vm923_vm6, %v1285_v21  ;;  %v1286_v34 = vadd.f32 %v5072_v50, %v1039_v20  ;;  %v1207_v26 = vpop.f32.mrb[3].mxu1  ;;  %1301 = vst.msk [vmem:[#allocation2 + $0x10] sm:$0xff] %vm923_vm6, %v1269_v36  ;;  %v1270_v40 = vadd.f32 %v5056_v54, %v1023_v24  ;;  %v1143_v62 = vpop.f32.mrb[3].mxu0  ;;  %v1025_v21 = vld [vmem:[#allocation2 + $0x28] sm:$0xff]  ;;  %v3910_v54 = vld [vmem:[%s5510_s6 + $0x79] sm:$0xff] }
  0xf4   : > { %1315 = vst.msk [vmem:[#allocation2 + $0x80] sm:$0xff] %vm923_vm6, %v1283_v6  ;;  %v1284_v17 = vadd.f32 %v1207_v26, %v1037_v47  ;;  %1299 = vst.msk [vmem:[#allocation2] sm:$0xff] %vm923_vm6, %v1267_v48  ;;  %v1268_v23 = vadd.f32 %v1143_v62, %v1021_v25  ;;  %v3950_v6 = vmul.bf16 %v3934_v13, %v7059_v27  ;;  %v1046_v27 = vld [vmem:[#allocation2 + $0xd0] sm:$0xff] }
  0xf5   : > { %1318 = vst.msk [vmem:[#allocation2 + $0x98] sm:$0xff] %vm923_vm6, %v1286_v34  ;;  %5252 = vmatmul.mubr.msk.bf16.gmra.mrb[108].mxu1 %vm1053_vm1, %v2858_v0  ;;  %1302 = vst.msk [vmem:[#allocation2 + $0x18] sm:$0xff] %vm923_vm6, %v1270_v40  ;;  %5286 = vmatmul.mubr.msk.bf16.gmra.mrb[108].mxu0 %vm1053_vm1, %v3232_v57  ;;  %v3951_v25 = vmul.bf16 %v3935_v60, %v7061_v32  ;;  %v3908_v34 = vld [vmem:[%s5510_s6 + $0x69] sm:$0xff]  ;;  %v3909_v48 = vld [vmem:[%s5510_s6 + $0x71] sm:$0xff] }
  0xf6   : > { %1316 = vst.msk [vmem:[#allocation2 + $0x88] sm:$0xff] %vm923_vm6, %v1284_v17  ;;  %5291 = vmatprep.mubr.msk.bf16.mxu1 %vm1053_vm1, %v3575_v10  ;;  %1300 = vst.msk [vmem:[#allocation2 + $0x8] sm:$0xff] %vm923_vm6, %v1268_v23  ;;  %5325 = vmatprep.mubr.msk.bf16.mxu0 %vm1053_vm1, %v3949_v15  ;;  %v3907_v10 = vld [vmem:[%s5510_s6 + $0x61] sm:$0xff]  ;;  %v1030_v40 = vld [vmem:[#allocation2 + $0x50] sm:$0xff]  ;;  %v3937_v37 = vpack.c.bf16 %v3910_v54, %v3909_v48 }
  0xf7   : > { %v1044_v57 = vld [vmem:[#allocation2 + $0xc0] sm:$0xff]  ;;  %v3550_v17 = vld [vmem:[%s5510_s6 + $0x68] sm:$0xff]  ;;  %v3551_v62 = vld [vmem:[%s5510_s6 + $0x70] sm:$0xff]  ;;  %v3936_v51 = vpack.c.bf16 %v3908_v34, %v3907_v10 }
  0xf8   : > { %v5075_v18 = vpop.f32.mrb[4].mxu1  ;;  %v5059_v44 = vpop.f32.mrb[4].mxu0  ;;  %v3549_v32 = vld [vmem:[%s5510_s6 + $0x60] sm:$0xff]  ;;  %v3552_v15 = vld [vmem:[%s5510_s6 + $0x78] sm:$0xff]  ;;  %v1049_v54 = vld [vmem:[#allocation2 + $0xe8] sm:$0xff] }
  0xf9   : > { %v1289_v2 = vadd.f32 %v5075_v18, %v1042_v7  ;;  %v1220_v49 = vpop.f32.mrb[5].mxu1  ;;  %v1273_v55 = vadd.f32 %v5059_v44, %v1026_v31  ;;  %v1156_v43 = vpop.f32.mrb[5].mxu0  ;;  %v1047_v7 = vld [vmem:[#allocation2 + $0xd8] sm:$0xff]  ;;  %v1028_v23 = vld [vmem:[#allocation2 + $0x40] sm:$0xff]  ;;  %v3578_v11 = vpack.c.bf16 %v3550_v17, %v3549_v32  ;;  %v3579_v60 = vpack.c.bf16 %v3552_v15, %v3551_v62 }
  0xfa   : > { %v1287_v59 = vadd.f32 %v1220_v49, %v1040_v53  ;;  %v5076_v20 = vpop.f32.mrb[6].mxu1  ;;  %v1271_v45 = vadd.f32 %v1156_v43, %v1024_v30  ;;  %v5060_v24 = vpop.f32.mrb[6].mxu0  ;;  %v1029_v30 = vld [vmem:[#allocation2 + $0x48] sm:$0xff]  ;;  %v3952_v44 = vmul.bf16 %v3936_v51, %v7065_v3  ;;  %v1050_v3 = vld [vmem:[#allocation2 + $0xf0] sm:$0xff]  ;;  %v1051_v10 = vld [vmem:[#allocation2 + $0xf8] sm:$0xff] }
  0xfb   : > { %1321 = vst.msk [vmem:[#allocation2 + $0xb0] sm:$0xff] %vm923_vm6, %v1289_v2  ;;  %v1290_v47 = vadd.f32 %v5076_v20, %v1043_v52  ;;  %v1223_v0 = vpop.f32.mrb[7].mxu1  ;;  %1305 = vst.msk [vmem:[#allocation2 + $0x30] sm:$0xff] %vm923_vm6, %v1273_v55  ;;  %v1274_v36 = vadd.f32 %v5060_v24, %v1027_v56  ;;  %v1159_v39 = vpop.f32.mrb[7].mxu0  ;;  %v3953_v55 = vmul.bf16 %v3937_v37, %v7067_v35  ;;  %v3911_v43 = vld [vmem:[%s5510_s6 + $0x81] sm:$0xff]  ;;  %v1035_v17 = vld [vmem:[#allocation2 + $0x78] sm:$0xff] }
  0xfc   : > { %1319 = vst.msk [vmem:[#allocation2 + $0xa0] sm:$0xff] %vm923_vm6, %v1287_v59  ;;  %v1288_v50 = vadd.f32 %v1223_v0, %v1041_v4  ;;  %1303 = vst.msk [vmem:[#allocation2 + $0x20] sm:$0xff] %vm923_vm6, %v1271_v45  ;;  %v1272_v26 = vadd.f32 %v1159_v39, %v1025_v21  ;;  %v3912_v21 = vld [vmem:[%s5510_s6 + $0x89] sm:$0xff]  ;;  %v3914_v0 = vld [vmem:[%s5510_s6 + $0x99] sm:$0xff] }
  0xfd   : > { %1322 = vst.msk [vmem:[#allocation2 + $0xb8] sm:$0xff] %vm923_vm6, %v1290_v47  ;;  %5292 = vmatmul.mubr.msk.bf16.vlgmr.msra.gmra.mrb[112].mxu1 %vm1053_vm1, %v3576_v5  ;;  %1306 = vst.msk [vmem:[#allocation2 + $0x38] sm:$0xff] %vm923_vm6, %v1274_v36  ;;  %5326 = vmatmul.mubr.msk.bf16.vlgmr.msra.gmra.mrb[112].mxu0 %vm1053_vm1, %v3950_v6  ;;  %v3913_v47 = vld [vmem:[%s5510_s6 + $0x91] sm:$0xff]  ;;  %v1048_v45 = vld [vmem:[#allocation2 + $0xe0] sm:$0xff]  ;;  %v3938_v39 = vpack.c.bf16 %v3912_v21, %v3911_v43 }
  0xfe   : > { %1320 = vst.msk [vmem:[#allocation2 + $0xa8] sm:$0xff] %vm923_vm6, %v1288_v50  ;;  %5295 = vmatprep.mubr.msk.bf16.mxu1 %vm1053_vm1, %v3577_v41  ;;  %1304 = vst.msk [vmem:[#allocation2 + $0x28] sm:$0xff] %vm923_vm6, %v1272_v26  ;;  %5329 = vmatprep.mubr.msk.bf16.mxu0 %vm1053_vm1, %v3951_v25  ;;  %v3553_v35 = vld [vmem:[%s5510_s6 + $0x80] sm:$0xff]  ;;  %v3554_v24 = vld [vmem:[%s5510_s6 + $0x88] sm:$0xff] }
  0xff   : > { %v1034_v6 = vld [vmem:[#allocation2 + $0x70] sm:$0xff]  ;;  %v3556_v36 = vld [vmem:[%s5510_s6 + $0x98] sm:$0xff]  ;;  %v1032_v34 = vld [vmem:[#allocation2 + $0x60] sm:$0xff] }
 0x100   : > { %v5079_v14 = vpop.f32.mrb[8].mxu1  ;;  %v5063_v31 = vpop.f32.mrb[8].mxu0  ;;  %v3555_v50 = vld [vmem:[%s5510_s6 + $0x90] sm:$0xff] }
 0x101   : > { %v1293_v1 = vadd.f32 %v5079_v14, %v1046_v27  ;;  %v1236_v53 = vpop.f32.mrb[9].mxu1  ;;  %v1277_v18 = vadd.f32 %v5063_v31, %v1030_v40  ;;  %v1172_v52 = vpop.f32.mrb[9].mxu0  ;;  %v3939_v27 = vpack.c.bf16 %v3914_v0, %v3913_v47  ;;  %v1033_v14 = vld [vmem:[#allocation2 + $0x68] sm:$0xff] }
 0x102   : > { %v1291_v28 = vadd.f32 %v1236_v53, %v1044_v57  ;;  %v5080_v13 = vpop.f32.mrb[10].mxu1  ;;  %v1275_v4 = vadd.f32 %v1172_v52, %v1028_v23  ;;  %v5064_v5 = vpop.f32.mrb[10].mxu0  ;;  %v3580_v57 = vpack.c.bf16 %v3554_v24, %v3553_v35  ;;  %v3917_v52 = vld [vmem:[%s5510_s6 + $0xb1] sm:$0xff]  ;;  %v1380_v35 = vld [vmem:[#allocation2 + $0x8] sm:$0xff] }
 0x103   : > { %1325 = vst.msk [vmem:[#allocation2 + $0xd0] sm:$0xff] %vm923_vm6, %v1293_v1  ;;  %v1294_v2 = vadd.f32 %v5080_v13, %v1047_v7  ;;  %v1239_v49 = vpop.f32.mrb[11].mxu1  ;;  %1309 = vst.msk [vmem:[#allocation2 + $0x50] sm:$0xff] %vm923_vm6, %v1277_v18  ;;  %v1278_v59 = vadd.f32 %v5064_v5, %v1031_v22  ;;  %v1175_v20 = vpop.f32.mrb[11].mxu0  ;;  %v3581_v7 = vpack.c.bf16 %v3556_v36, %v3555_v50  ;;  %v3915_v13 = vld [vmem:[%s5510_s6 + $0xa1] sm:$0xff]  ;;  %v3916_v18 = vld [vmem:[%s5510_s6 + $0xa9] sm:$0xff] }
 0x104   : > { %1323 = vst.msk [vmem:[#allocation2 + $0xc0] sm:$0xff] %vm923_vm6, %v1291_v28  ;;  %v1292_v56 = vadd.f32 %v1239_v49, %v1045_v42  ;;  %1307 = vst.msk [vmem:[#allocation2 + $0x40] sm:$0xff] %vm923_vm6, %v1275_v4  ;;  %v1276_v41 = vadd.f32 %v1175_v20, %v1029_v30  ;;  %v3954_v42 = vmul.bf16 %v3938_v39, %v7071_v58  ;;  %v3918_v30 = vld [vmem:[%s5510_s6 + $0xb9] sm:$0xff]  ;;  %v1381_v5 = vld [vmem:[#allocation2 + $0x10] sm:$0xff] }
 0x105   : > { %1326 = vst.msk [vmem:[#allocation2 + $0xd8] sm:$0xff] %vm923_vm6, %v1294_v2  ;;  %5296 = vmatmul.mubr.msk.bf16.gmra.mrb[116].mxu1 %vm1053_vm1, %v3578_v11  ;;  %1310 = vst.msk [vmem:[#allocation2 + $0x58] sm:$0xff] %vm923_vm6, %v1278_v59  ;;  %5330 = vmatmul.mubr.msk.bf16.gmra.mrb[116].mxu0 %vm1053_vm1, %v3952_v44  ;;  %v3955_v28 = vmul.bf16 %v3939_v27, %v7073_v16  ;;  %v3557_v16 = vld [vmem:[%s5510_s6 + $0xa0] sm:$0xff]  ;;  %v3559_v2 = vld [vmem:[%s5510_s6 + $0xb0] sm:$0xff]  ;;  %v3940_v4 = vpack.c.bf16 %v3916_v18, %v3915_v13 }
 0x106   : > { %1324 = vst.msk [vmem:[#allocation2 + $0xc8] sm:$0xff] %vm923_vm6, %v1292_v56  ;;  %5299 = vmatprep.mubr.msk.bf16.mxu1 %vm1053_vm1, %v3579_v60  ;;  %1308 = vst.msk [vmem:[#allocation2 + $0x48] sm:$0xff] %vm923_vm6, %v1276_v41  ;;  %5333 = vmatprep.mubr.msk.bf16.mxu0 %vm1053_vm1, %v3953_v55  ;;  %v3558_v60 = vld [vmem:[%s5510_s6 + $0xa8] sm:$0xff]  ;;  %v3560_v49 = vld [vmem:[%s5510_s6 + $0xb8] sm:$0xff]  ;;  %v3941_v56 = vpack.c.bf16 %v3918_v30, %v3917_v52 }
 0x107   : > { %v1379_v20 = vld [vmem:[#allocation2] sm:$0xff]  ;;  %v3582_v43 = vpack.c.bf16 %v3558_v60, %v3557_v16  ;;  %v3583_v0 = vpack.c.bf16 %v3560_v49, %v3559_v2  ;;  %v3956_v50 = vmul.bf16 %v3940_v4, %v7076_v8  ;;  %v1384_v13 = vld [vmem:[#allocation2 + $0x28] sm:$0xff] }
 0x108   : > { %v5083_v25 = vpop.f32.mrb[12].mxu1  ;;  %v5067_v32 = vpop.f32.mrb[12].mxu0  ;;  %v3561_v8 = vld [vmem:[%s5510_s6 + $0xc0] sm:$0xff] }
 0x109   : > { %v1297_v26 = vadd.f32 %v5083_v25, %v1050_v3  ;;  %v1252_v48 = vpop.f32.mrb[13].mxu1  ;;  %v1281_v15 = vadd.f32 %v5067_v32, %v1034_v6  ;;  %v1188_v51 = vpop.f32.mrb[13].mxu0  ;;  %v1382_v3 = vld [vmem:[#allocation2 + $0x18] sm:$0xff]  ;;  %v3957_v25 = vmul.bf16 %v3941_v56, %v7078_v38  ;;  %v3923_v4 = vld [vmem:[%s5510_s6 + $0xe1] sm:$0xff] }
 0x10a   : > { %v1295_v40 = vadd.f32 %v1252_v48, %v1048_v45  ;;  %v5084_v62 = vpop.f32.mrb[14].mxu1  ;;  %v1279_v1 = vadd.f32 %v1188_v51, %v1032_v34  ;;  %v5068_v53 = vpop.f32.mrb[14].mxu0  ;;  %v3920_v34 = vld [vmem:[%s5510_s6 + $0xc9] sm:$0xff]  ;;  %v3922_v48 = vld [vmem:[%s5510_s6 + $0xd9] sm:$0xff] }
 0x10b   : > { %1329 = vst.msk [vmem:[#allocation2 + $0xf0] sm:$0xff] %vm923_vm6, %v1297_v26  ;;  %v1298_v23 = vadd.f32 %v5084_v62, %v1051_v10  ;;  %v1255_v37 = vpop.f32.mrb[15].mxu1  ;;  %1313 = vst.msk [vmem:[#allocation2 + $0x70] sm:$0xff] %vm923_vm6, %v1281_v15  ;;  %v1282_v31 = vadd.f32 %v5068_v53, %v1035_v17  ;;  %v1191_v22 = vpop.f32.mrb[15].mxu0  ;;  %v3919_v10 = vld [vmem:[%s5510_s6 + $0xc1] sm:$0xff]  ;;  %v3921_v26 = vld [vmem:[%s5510_s6 + $0xd1] sm:$0xff] }
 0x10c   : > { %1327 = vst.msk [vmem:[#allocation2 + $0xe0] sm:$0xff] %vm923_vm6, %v1295_v40  ;;  %v1296_v11 = vadd.f32 %v1255_v37, %v1049_v54  ;;  %1311 = vst.msk [vmem:[#allocation2 + $0x60] sm:$0xff] %vm923_vm6, %v1279_v1  ;;  %v1280_v58 = vadd.f32 %v1191_v22, %v1033_v14  ;;  %v3562_v54 = vld [vmem:[%s5510_s6 + $0xc8] sm:$0xff]  ;;  %v3564_v32 = vld [vmem:[%s5510_s6 + $0xd8] sm:$0xff]  ;;  %v3942_v38 = vpack.c.bf16 %v3920_v34, %v3919_v10 }
 0x10d   : > { %1330 = vst.msk [vmem:[#allocation2 + $0xf8] sm:$0xff] %vm923_vm6, %v1298_v23  ;;  %5300 = vmatmul.mubr.msk.bf16.gmra.mrb[120].mxu1 %vm1053_vm1, %v3580_v57  ;;  %1314 = vst.msk [vmem:[#allocation2 + $0x78] sm:$0xff] %vm923_vm6, %v1282_v31  ;;  %5334 = vmatmul.mubr.msk.bf16.gmra.mrb[120].mxu0 %vm1053_vm1, %v3954_v42  ;;  %v3563_v57 = vld [vmem:[%s5510_s6 + $0xd0] sm:$0xff]  ;;  %v3943_v62 = vpack.c.bf16 %v3922_v48, %v3921_v26  ;;  %v1383_v51 = vld [vmem:[#allocation2 + $0x20] sm:$0xff] }
 0x10e   : > { %1328 = vst.msk [vmem:[#allocation2 + $0xe8] sm:$0xff] %vm923_vm6, %v1296_v11  ;;  %5303 = vmatprep.mubr.msk.bf16.mxu1 %vm1053_vm1, %v3581_v7  ;;  %1312 = vst.msk [vmem:[#allocation2 + $0x68] sm:$0xff] %vm923_vm6, %v1280_v58  ;;  %5337 = vmatprep.mubr.msk.bf16.mxu0 %vm1053_vm1, %v3955_v28  ;;  %v1385_v17 = vld [vmem:[#allocation2 + $0x30] sm:$0xff]  ;;  %v3584_v7 = vpack.c.bf16 %v3562_v54, %v3561_v8  ;;  %v1386_v1 = vld [vmem:[#allocation2 + $0x38] sm:$0xff]  ;;  %v3585_v11 = vpack.c.bf16 %v3564_v32, %v3563_v57 }
 0x10f   : > { %v3958_v52 = vmul.bf16 %v3942_v38, %v7080_v29  ;;  %v3959_v49 = vmul.bf16 %v3943_v62, %v7082_v19  ;;  %v3565_v19 = vld [vmem:[%s5510_s6 + $0xe0] sm:$0xff]  ;;  %v1388_v54 = vld [vmem:[#allocation2 + $0x48] sm:$0xff] }
 0x110   : > { %v5089_v44 = vpop.f32.mrb[16].mxu1  ;;  %v5123_v47 = vpop.f32.mrb[16].mxu0 }
 0x111   : > { %v1627_v59 = vadd.f32 %v5089_v44, %v1381_v5  ;;  %v1498_v55 = vpop.f32.mrb[17].mxu1  ;;  %v1872_v6 = vpop.f32.mrb[17].mxu0  ;;  %v3924_v5 = vld [vmem:[%s5510_s6 + $0xe9] sm:$0xff] }
 0x112   : > { %v1625_v21 = vadd.f32 %v1498_v55, %v1379_v20  ;;  %v5090_v41 = vpop.f32.mrb[18].mxu1  ;;  %v5124_v39 = vpop.f32.mrb[18].mxu0  ;;  %v3926_v20 = vld [vmem:[%s5510_s6 + $0xf9] sm:$0xff] }
 0x113   : > { %1659 = vst.msk [vmem:[#allocation2 + $0x10] sm:$0xff] %vm923_vm6, %v1627_v59  ;;  %v1628_v45 = vadd.f32 %v5090_v41, %v1382_v3  ;;  %v1501_v24 = vpop.f32.mrb[19].mxu1  ;;  %v1875_v27 = vpop.f32.mrb[19].mxu0  ;;  %v3925_v59 = vld [vmem:[%s5510_s6 + $0xf1] sm:$0xff]  ;;  %v3944_v41 = vpack.c.bf16 %v3924_v5, %v3923_v4 }
 0x114   : > { %1657 = vst.msk [vmem:[#allocation2] sm:$0xff] %vm923_vm6, %v1625_v21  ;;  %v1626_v36 = vadd.f32 %v1501_v24, %v1380_v35  ;;  %v3567_v21 = vld [vmem:[%s5510_s6 + $0xf0] sm:$0xff]  ;;  %v3568_v3 = vld [vmem:[%s5510_s6 + $0xf8] sm:$0xff]  ;;  %v1387_v24 = vld [vmem:[#allocation2 + $0x40] sm:$0xff] }
 0x115   : > { %1660 = vst.msk [vmem:[#allocation2 + $0x18] sm:$0xff] %vm923_vm6, %v1628_v45  ;;  %5304 = vmatmul.mubr.msk.bf16.gmra.mrb[124].mxu1 %vm1053_vm1, %v3582_v43  ;;  %5338 = vmatmul.mubr.msk.bf16.gmra.mrb[124].mxu0 %vm1053_vm1, %v3956_v50  ;;  %v3566_v43 = vld [vmem:[%s5510_s6 + $0xe8] sm:$0xff]  ;;  %v3945_v45 = vpack.c.bf16 %v3926_v20, %v3925_v59  ;;  %v3960_v38 = vmul.bf16 %v3944_v41, %v5867_v33 }
 0x116   : > { %1658 = vst.msk [vmem:[#allocation2 + $0x8] sm:$0xff] %vm923_vm6, %v1626_v36  ;;  %5307 = vmatprep.mubr.msk.bf16.mxu1 %vm1053_vm1, %v3583_v0  ;;  %5341 = vmatprep.mubr.msk.bf16.mxu0 %vm1053_vm1, %v3957_v25  ;;  %v3586_v50 = vpack.c.bf16 %v3566_v43, %v3565_v19  ;;  %v1390_v25 = vld [vmem:[#allocation2 + $0x58] sm:$0xff]  ;;  %v3963_v41 = vmul.bf16 %v6315_v63, %v5904_v12  ;;  %v3574_v12 = vld [vmem:[%s5510_s6 + $0x128] sm:$0xff] }
 0x118   : > { %v5093_v40 = vpop.f32.mrb[20].mxu1  ;;  %v5127_v42 = vpop.f32.mrb[20].mxu0 }
 0x119   : > { %v1631_v15 = vadd.f32 %v5093_v40, %v1385_v17  ;;  %v1514_v14 = vpop.f32.mrb[21].mxu1  ;;  %v1888_v58 = vpop.f32.mrb[21].mxu0 }
 0x11a   : > { %v1755_v23 = vld [vmem:[#allocation2 + $0x10] sm:$0xff]  ;;  %v1629_v37 = vadd.f32 %v1514_v14, %v1383_v51  ;;  %v5094_v53 = vpop.f32.mrb[22].mxu1  ;;  %v5128_v2 = vpop.f32.mrb[22].mxu0  ;;  %v3961_v51 = vmul.bf16 %v3945_v45, %v5873_v9  ;;  %v3927_v14 = vld [vmem:[%s5510_s6 + $0x101] sm:$0xff] }
 0x11b   : > { %v2001_v31 = vadd.f32 %v5123_v47, %v1755_v23  ;;  %1663 = vst.msk [vmem:[#allocation2 + $0x30] sm:$0xff] %vm923_vm6, %v1631_v15  ;;  %v1753_v22 = vld [vmem:[#allocation2] sm:$0xff]  ;;  %v1632_v28 = vadd.f32 %v5094_v53, %v1386_v1  ;;  %v1517_v18 = vpop.f32.mrb[23].mxu1  ;;  %v1891_v56 = vpop.f32.mrb[23].mxu0  ;;  %v1389_v47 = vld [vmem:[#allocation2 + $0x50] sm:$0xff]  ;;  %v3570_v53 = vld [vmem:[%s5510_s6 + $0x108] sm:$0xff] }
 0x11c   : > { %v1999_v30 = vadd.f32 %v1872_v6, %v1753_v22  ;;  %1661 = vst.msk [vmem:[#allocation2 + $0x20] sm:$0xff] %vm923_vm6, %v1629_v37  ;;  %v1756_v16 = vld [vmem:[#allocation2 + $0x18] sm:$0xff]  ;;  %v1630_v60 = vadd.f32 %v1517_v18, %v1384_v13  ;;  %v3569_v9 = vld [vmem:[%s5510_s6 + $0x100] sm:$0xff]  ;;  %v1393_v22 = vld [vmem:[#allocation2 + $0x70] sm:$0xff] }
 0x11d   : > { %2033 = vst.msk [vmem:[#allocation2 + $0x10] sm:$0xff] %vm923_vm6, %v2001_v31  ;;  %v2002_v44 = vadd.f32 %v5124_v39, %v1756_v16  ;;  %1664 = vst.msk [vmem:[#allocation2 + $0x38] sm:$0xff] %vm923_vm6, %v1632_v28  ;;  %v1754_v29 = vld [vmem:[#allocation2 + $0x8] sm:$0xff]  ;;  %5308 = vmatmul.mubr.msk.bf16.gmra.mrb[128].mxu1 %vm1053_vm1, %v3584_v7  ;;  %5342 = vmatmul.mubr.msk.bf16.gmra.mrb[128].mxu0 %vm1053_vm1, %v3958_v52  ;;  %v1391_v18 = vld [vmem:[#allocation2 + $0x60] sm:$0xff]  ;;  %v3588_v52 = vpack.c.bf16 %v3570_v53, %v3569_v9 }
 0x11e   : > { %2031 = vst.msk [vmem:[#allocation2] sm:$0xff] %vm923_vm6, %v1999_v30  ;;  %v2000_v55 = vadd.f32 %v1875_v27, %v1754_v29  ;;  %1662 = vst.msk [vmem:[#allocation2 + $0x28] sm:$0xff] %vm923_vm6, %v1630_v60  ;;  %5311 = vmatprep.mubr.msk.bf16.mxu1 %vm1053_vm1, %v3585_v11  ;;  %5345 = vmatprep.mubr.msk.bf16.mxu0 %vm1053_vm1, %v3959_v49  ;;  %v3587_v27 = vpack.c.bf16 %v3568_v3, %v3567_v21  ;;  %v3928_v7 = vld [vmem:[%s5510_s6 + $0x109] sm:$0xff]  ;;  %v3572_v11 = vld [vmem:[%s5510_s6 + $0x118] sm:$0xff] }
 0x11f   : > { %2034 = vst.msk [vmem:[#allocation2 + $0x18] sm:$0xff] %vm923_vm6, %v2002_v44  ;;  %v3946_v31 = vpack.c.bf16 %v3928_v7, %v3927_v14  ;;  %v1394_v60 = vld [vmem:[#allocation2 + $0x78] sm:$0xff] }
 0x120   : > { %2032 = vst.msk [vmem:[#allocation2 + $0x8] sm:$0xff] %vm923_vm6, %v2000_v55  ;;  %v5097_v0 = vpop.f32.mrb[24].mxu1  ;;  %v5131_v34 = vpop.f32.mrb[24].mxu0 }
 0x121   : > { %v1635_v35 = vadd.f32 %v5097_v0, %v1389_v47  ;;  %v1530_v6 = vpop.f32.mrb[25].mxu1  ;;  %v1904_v32 = vpop.f32.mrb[25].mxu0  ;;  %v3962_v55 = vmul.bf16 %v3946_v31, %v5890_v61  ;;  %v3931_v47 = vld [vmem:[%s5510_s6 + $0x121] sm:$0xff]  ;;  %v3932_v0 = vld [vmem:[%s5510_s6 + $0x129] sm:$0xff] }
 0x122   : > { %v1759_v36 = vld [vmem:[#allocation2 + $0x30] sm:$0xff]  ;;  %v1633_v39 = vadd.f32 %v1530_v6, %v1387_v24  ;;  %v5098_v10 = vpop.f32.mrb[26].mxu1  ;;  %v5132_v15 = vpop.f32.mrb[26].mxu0  ;;  %v3573_v6 = vld [vmem:[%s5510_s6 + $0x120] sm:$0xff]  ;;  %v3948_v63 = vpack.c.bf16 %v3932_v0, %v3931_v47 }
 0x123   : > { %v2005_v26 = vadd.f32 %v5127_v42, %v1759_v36  ;;  %1667 = vst.msk [vmem:[#allocation2 + $0x50] sm:$0xff] %vm923_vm6, %v1635_v35  ;;  %v1757_v48 = vld [vmem:[#allocation2 + $0x20] sm:$0xff]  ;;  %v1636_v8 = vadd.f32 %v5098_v10, %v1390_v25  ;;  %v1533_v57 = vpop.f32.mrb[27].mxu1  ;;  %v1907_v37 = vpop.f32.mrb[27].mxu0  ;;  %v3571_v42 = vld [vmem:[%s5510_s6 + $0x110] sm:$0xff]  ;;  %s274_s6 = scalar_lea.vmem %s6979_s4, %s7088_s18 }
 0x124   : > { %v2003_v17 = vadd.f32 %v1888_v58, %v1757_v48  ;;  %1665 = vst.msk [vmem:[#allocation2 + $0x40] sm:$0xff] %vm923_vm6, %v1633_v39  ;;  %v1760_v40 = vld [vmem:[#allocation2 + $0x38] sm:$0xff]  ;;  %v1634_v62 = vadd.f32 %v1533_v57, %v1388_v54  ;;  %v3589_v4 = vpack.c.bf16 %v3572_v11, %v3571_v42  ;;  %v1395_v25 = vld [vmem:[#allocation2 + $0x80] sm:$0xff] }
 0x125   : > { %2037 = vst.msk [vmem:[#allocation2 + $0x30] sm:$0xff] %vm923_vm6, %v2005_v26  ;;  %v2006_v23 = vadd.f32 %v5128_v2, %v1760_v40  ;;  %1668 = vst.msk [vmem:[#allocation2 + $0x58] sm:$0xff] %vm923_vm6, %v1636_v8  ;;  %v1758_v33 = vld [vmem:[#allocation2 + $0x28] sm:$0xff]  ;;  %5312 = vmatmul.mubr.msk.bf16.gmra.mrb[132].mxu1 %vm1053_vm1, %v3586_v50  ;;  %5346 = vmatmul.mubr.msk.bf16.gmra.mrb[132].mxu0 %vm1053_vm1, %v3960_v38  ;;  %v1397_v50 = vld [vmem:[#allocation2 + $0x90] sm:$0xff] }
 0x126   : > { %2035 = vst.msk [vmem:[#allocation2 + $0x20] sm:$0xff] %vm923_vm6, %v2003_v17  ;;  %v2004_v1 = vadd.f32 %v1891_v56, %v1758_v33  ;;  %1666 = vst.msk [vmem:[#allocation2 + $0x48] sm:$0xff] %vm923_vm6, %v1634_v62  ;;  %5315 = vmatprep.mubr.msk.bf16.mxu1 %vm1053_vm1, %v3587_v27  ;;  %5349 = vmatprep.mubr.msk.bf16.mxu0 %vm1053_vm1, %v3961_v51  ;;  %v1392_v56 = vld [vmem:[#allocation2 + $0x68] sm:$0xff]  ;;  %v1398_v48 = vld [vmem:[#allocation2 + $0x98] sm:$0xff] }
 0x127   : > { %2038 = vst.msk [vmem:[#allocation2 + $0x38] sm:$0xff] %vm923_vm6, %v2006_v23  ;;  %v1396_v17 = vld [vmem:[#allocation2 + $0x88] sm:$0xff]  ;;  %v1399_v11 = vld [vmem:[#allocation2 + $0xa0] sm:$0xff] }
 0x128   : > { %2036 = vst.msk [vmem:[#allocation2 + $0x28] sm:$0xff] %vm923_vm6, %v2004_v1  ;;  %v5101_v28 = vpop.f32.mrb[28].mxu1  ;;  %v5135_v49 = vpop.f32.mrb[28].mxu0 }
 0x129   : > { %v1639_v13 = vadd.f32 %v5101_v28, %v1393_v22  ;;  %v1546_v58 = vpop.f32.mrb[29].mxu1  ;;  %v1920_v20 = vpop.f32.mrb[29].mxu0 }
 0x12a   : > { %v1763_v30 = vld [vmem:[#allocation2 + $0x50] sm:$0xff]  ;;  %v1637_v16 = vadd.f32 %v1546_v58, %v1391_v18  ;;  %v5102_v2 = vpop.f32.mrb[30].mxu1  ;;  %v5136_v3 = vpop.f32.mrb[30].mxu0 }
 0x12b   : > { %v2009_v5 = vadd.f32 %v5131_v34, %v1763_v30  ;;  %1671 = vst.msk [vmem:[#allocation2 + $0x70] sm:$0xff] %vm923_vm6, %v1639_v13  ;;  %v1761_v44 = vld [vmem:[#allocation2 + $0x40] sm:$0xff]  ;;  %v1640_v29 = vadd.f32 %v5102_v2, %v1394_v60  ;;  %v1549_v59 = vpop.f32.mrb[31].mxu1  ;;  %v1923_v61 = vpop.f32.mrb[31].mxu0  ;;  %v3590_v34 = vpack.c.bf16 %v3574_v12, %v3573_v6  ;;  %v1402_v13 = vld [vmem:[#allocation2 + $0xb8] sm:$0xff]  ;;  %v1400_v60 = vld [vmem:[#allocation2 + $0xa8] sm:$0xff] }
 0x12c   : > { %v2007_v19 = vadd.f32 %v1904_v32, %v1761_v44  ;;  %1669 = vst.msk [vmem:[#allocation2 + $0x60] sm:$0xff] %vm923_vm6, %v1637_v16  ;;  %v1764_v43 = vld [vmem:[#allocation2 + $0x58] sm:$0xff]  ;;  %v1638_v21 = vadd.f32 %v1549_v59, %v1392_v56 }
 0x12d   : > { %2041 = vst.msk [vmem:[#allocation2 + $0x50] sm:$0xff] %vm923_vm6, %v2009_v5  ;;  %v2010_v45 = vadd.f32 %v5132_v15, %v1764_v43  ;;  %1672 = vst.msk [vmem:[#allocation2 + $0x78] sm:$0xff] %vm923_vm6, %v1640_v29  ;;  %v1762_v35 = vld [vmem:[#allocation2 + $0x48] sm:$0xff]  ;;  %5316 = vmatmul.mubr.msk.bf16.gmra.mrb[136].mxu1 %vm1053_vm1, %v3588_v52  ;;  %5350 = vmatmul.mubr.msk.bf16.gmra.mrb[136].mxu0 %vm1053_vm1, %v3962_v55  ;;  %v3964_v15 = vmul.bf16 %v3948_v63, %v5926_v46  ;;  %v1401_v46 = vld [vmem:[#allocation2 + $0xb0] sm:$0xff] }
 0x12e   : > { %2039 = vst.msk [vmem:[#allocation2 + $0x40] sm:$0xff] %vm923_vm6, %v2007_v19  ;;  %v2008_v24 = vadd.f32 %v1907_v37, %v1762_v35  ;;  %1670 = vst.msk [vmem:[#allocation2 + $0x68] sm:$0xff] %vm923_vm6, %v1638_v21  ;;  %5319 = vmatprep.mubr.msk.bf16.mxu1 %vm1053_vm1, %v3589_v4  ;;  %5353 = vmatprep.mubr.msk.bf16.mxu0 %vm1053_vm1, %v3963_v41  ;;  %v1405_v19 = vld [vmem:[#allocation2 + $0xd0] sm:$0xff]  ;;  %v1404_v63 = vld [vmem:[#allocation2 + $0xc8] sm:$0xff] }
 0x12f   : > { %2042 = vst.msk [vmem:[#allocation2 + $0x58] sm:$0xff] %vm923_vm6, %v2010_v45  ;;  %v1406_v45 = vld [vmem:[#allocation2 + $0xd8] sm:$0xff] }
 0x130   : > { %2040 = vst.msk [vmem:[#allocation2 + $0x48] sm:$0xff] %vm923_vm6, %v2008_v24  ;;  %v5105_v36 = vpop.f32.mrb[32].mxu1  ;;  %v5139_v54 = vpop.f32.mrb[32].mxu0 }
 0x131   : > { %v1643_v39 = vadd.f32 %v5105_v36, %v1397_v50  ;;  %v1562_v10 = vpop.f32.mrb[33].mxu1  ;;  %v1936_v62 = vpop.f32.mrb[33].mxu0 }
 0x132   : > { %v1767_v27 = vld [vmem:[#allocation2 + $0x70] sm:$0xff]  ;;  %v1641_v26 = vadd.f32 %v1562_v10, %v1395_v25  ;;  %v5106_v8 = vpop.f32.mrb[34].mxu1  ;;  %v5140_v23 = vpop.f32.mrb[34].mxu0 }
 0x133   : > { %v2013_v57 = vadd.f32 %v5135_v49, %v1767_v27  ;;  %1675 = vst.msk [vmem:[#allocation2 + $0x90] sm:$0xff] %vm923_vm6, %v1643_v39  ;;  %v1765_v32 = vld [vmem:[#allocation2 + $0x60] sm:$0xff]  ;;  %v1644_v38 = vadd.f32 %v5106_v8, %v1398_v48  ;;  %v1565_v40 = vpop.f32.mrb[35].mxu1  ;;  %v1939_v1 = vpop.f32.mrb[35].mxu0 }
 0x134   : > { %v2011_v51 = vadd.f32 %v1920_v20, %v1765_v32  ;;  %1673 = vst.msk [vmem:[#allocation2 + $0x80] sm:$0xff] %vm923_vm6, %v1641_v26  ;;  %v1768_v14 = vld [vmem:[#allocation2 + $0x78] sm:$0xff]  ;;  %v1642_v7 = vadd.f32 %v1565_v40, %v1396_v17 }
 0x135   : > { %2045 = vst.msk [vmem:[#allocation2 + $0x70] sm:$0xff] %vm923_vm6, %v2013_v57  ;;  %v2014_v33 = vadd.f32 %v5136_v3, %v1768_v14  ;;  %1676 = vst.msk [vmem:[#allocation2 + $0x98] sm:$0xff] %vm923_vm6, %v1644_v38  ;;  %v1766_v37 = vld [vmem:[#allocation2 + $0x68] sm:$0xff]  ;;  %5320 = vmatmul.mubr.msk.bf16.gmra.mrb[140].mxu1 %vm1053_vm1, %v3590_v34  ;;  %5354 = vmatmul.mubr.msk.bf16.gmra.mrb[140].mxu0 %vm1053_vm1, %v3964_v15  ;;  %v1403_v3 = vld [vmem:[#allocation2 + $0xc0] sm:$0xff] }
 0x136   : > { %2043 = vst.msk [vmem:[#allocation2 + $0x60] sm:$0xff] %vm923_vm6, %v2011_v51  ;;  %v2012_v9 = vadd.f32 %v1923_v61, %v1766_v37  ;;  %1674 = vst.msk [vmem:[#allocation2 + $0x88] sm:$0xff] %vm923_vm6, %v1642_v7  ;;  %v1407_v38 = vld [vmem:[#allocation2 + $0xe0] sm:$0xff]  ;;  %v1410_v15 = vld [vmem:[#allocation2 + $0xf8] sm:$0xff] }
 0x137   : > { %2046 = vst.msk [vmem:[#allocation2 + $0x78] sm:$0xff] %vm923_vm6, %v2014_v33  ;;  %v1408_v37 = vld [vmem:[#allocation2 + $0xe8] sm:$0xff] }
 0x138   : > { %2044 = vst.msk [vmem:[#allocation2 + $0x68] sm:$0xff] %vm923_vm6, %v2012_v9  ;;  %v5109_v53 = vpop.f32.mrb[36].mxu1  ;;  %v5143_v58 = vpop.f32.mrb[36].mxu0 }
 0x139   : > { %v1647_v42 = vadd.f32 %v5109_v53, %v1401_v46  ;;  %v1578_v31 = vpop.f32.mrb[37].mxu1  ;;  %v1952_v49 = vpop.f32.mrb[37].mxu0 }
 0x13a   : > { %v1771_v22 = vld [vmem:[#allocation2 + $0x90] sm:$0xff]  ;;  %v1645_v28 = vadd.f32 %v1578_v31, %v1399_v11  ;;  %v5110_v18 = vpop.f32.mrb[38].mxu1  ;;  %v5144_v29 = vpop.f32.mrb[38].mxu0 }
 0x13b   : > { %v2017_v52 = vadd.f32 %v5139_v54, %v1771_v22  ;;  %1679 = vst.msk [vmem:[#allocation2 + $0xb0] sm:$0xff] %vm923_vm6, %v1647_v42  ;;  %v1769_v30 = vld [vmem:[#allocation2 + $0x80] sm:$0xff]  ;;  %v1648_v16 = vadd.f32 %v5110_v18, %v1402_v13  ;;  %v1581_v2 = vpop.f32.mrb[39].mxu1  ;;  %v1955_v20 = vpop.f32.mrb[39].mxu0  ;;  %v1409_v54 = vld [vmem:[#allocation2 + $0xf0] sm:$0xff] }
 0x13c   : > { %v2015_v4 = vadd.f32 %v1936_v62, %v1769_v30  ;;  %1677 = vst.msk [vmem:[#allocation2 + $0xa0] sm:$0xff] %vm923_vm6, %v1645_v28  ;;  %v1772_v5 = vld [vmem:[#allocation2 + $0x98] sm:$0xff]  ;;  %v1646_v44 = vadd.f32 %v1581_v2, %v1400_v60  ;;  %v2129_v18 = vld [vmem:[#allocation2 + $0x10] sm:$0xff]  ;;  %v2127_v30 = vld [vmem:[#allocation2] sm:$0xff] }
 0x13d   : > { %2049 = vst.msk [vmem:[#allocation2 + $0x90] sm:$0xff] %vm923_vm6, %v2017_v52  ;;  %v2018_v56 = vadd.f32 %v5140_v23, %v1772_v5  ;;  %1680 = vst.msk [vmem:[#allocation2 + $0xb8] sm:$0xff] %vm923_vm6, %v1648_v16  ;;  %v1770_v59 = vld [vmem:[#allocation2 + $0x88] sm:$0xff] }
 0x13e   : > { %2047 = vst.msk [vmem:[#allocation2 + $0x80] sm:$0xff] %vm923_vm6, %v2015_v4  ;;  %v2016_v55 = vadd.f32 %v1939_v1, %v1770_v59  ;;  %1678 = vst.msk [vmem:[#allocation2 + $0xa8] sm:$0xff] %vm923_vm6, %v1646_v44  ;;  %v2128_v59 = vld [vmem:[#allocation2 + $0x8] sm:$0xff] }
 0x13f   : > { %2050 = vst.msk [vmem:[#allocation2 + $0x98] sm:$0xff] %vm923_vm6, %v2018_v56 }
 0x140   : > { %2048 = vst.msk [vmem:[#allocation2 + $0x88] sm:$0xff] %vm923_vm6, %v2016_v55  ;;  %v5113_v43 = vpop.f32.mrb[40].mxu1  ;;  %v5147_v61 = vpop.f32.mrb[40].mxu0 }
 0x141   : > { %v1651_v21 = vadd.f32 %v5113_v43, %v1405_v19  ;;  %v1594_v41 = vpop.f32.mrb[41].mxu1  ;;  %v1968_v36 = vpop.f32.mrb[41].mxu0 }
 0x142   : > { %v1775_v47 = vld [vmem:[#allocation2 + $0xb0] sm:$0xff]  ;;  %v1649_v0 = vadd.f32 %v1594_v41, %v1403_v3  ;;  %v5114_v35 = vpop.f32.mrb[42].mxu1  ;;  %v5148_v34 = vpop.f32.mrb[42].mxu0 }
 0x143   : > { %v2021_v24 = vadd.f32 %v5143_v58, %v1775_v47  ;;  %1683 = vst.msk [vmem:[#allocation2 + $0xd0] sm:$0xff] %vm923_vm6, %v1651_v21  ;;  %v1773_v6 = vld [vmem:[#allocation2 + $0xa0] sm:$0xff]  ;;  %v1652_v12 = vadd.f32 %v5114_v35, %v1406_v45  ;;  %v1597_v50 = vpop.f32.mrb[43].mxu1  ;;  %v1971_v48 = vpop.f32.mrb[43].mxu0  ;;  %v2133_v35 = vld [vmem:[#allocation2 + $0x30] sm:$0xff] }
 0x144   : > { %v2019_v39 = vadd.f32 %v1952_v49, %v1773_v6  ;;  %1681 = vst.msk [vmem:[#allocation2 + $0xc0] sm:$0xff] %vm923_vm6, %v1649_v0  ;;  %v1776_v25 = vld [vmem:[#allocation2 + $0xb8] sm:$0xff]  ;;  %v1650_v10 = vadd.f32 %v1597_v50, %v1404_v63  ;;  %v2131_v6 = vld [vmem:[#allocation2 + $0x20] sm:$0xff] }
 0x145   : > { %2053 = vst.msk [vmem:[#allocation2 + $0xb0] sm:$0xff] %vm923_vm6, %v2021_v24  ;;  %v2022_v27 = vadd.f32 %v5144_v29, %v1776_v25  ;;  %1684 = vst.msk [vmem:[#allocation2 + $0xd8] sm:$0xff] %vm923_vm6, %v1652_v12  ;;  %v1774_v26 = vld [vmem:[#allocation2 + $0xa8] sm:$0xff]  ;;  %v2130_v49 = vld [vmem:[#allocation2 + $0x18] sm:$0xff] }
 0x146   : > { %2051 = vst.msk [vmem:[#allocation2 + $0xa0] sm:$0xff] %vm923_vm6, %v2019_v39  ;;  %v2020_v8 = vadd.f32 %v1955_v20, %v1774_v26  ;;  %1682 = vst.msk [vmem:[#allocation2 + $0xc8] sm:$0xff] %vm923_vm6, %v1650_v10  ;;  %v2132_v26 = vld [vmem:[#allocation2 + $0x28] sm:$0xff] }
 0x147   : > { %2054 = vst.msk [vmem:[#allocation2 + $0xb8] sm:$0xff] %vm923_vm6, %v2022_v27 }
 0x148   : > { %2052 = vst.msk [vmem:[#allocation2 + $0xa8] sm:$0xff] %vm923_vm6, %v2020_v8  ;;  %v5117_v57 = vpop.f32.mrb[44].mxu1  ;;  %v5151_v14 = vpop.f32.mrb[44].mxu0 }
 0x149   : > { %v1655_v32 = vadd.f32 %v5117_v57, %v1409_v54  ;;  %v1610_v17 = vpop.f32.mrb[45].mxu1  ;;  %v1984_v9 = vpop.f32.mrb[45].mxu0 }
 0x14a   : > { %v1779_v40 = vld [vmem:[#allocation2 + $0xd0] sm:$0xff]  ;;  %v1653_v62 = vadd.f32 %v1610_v17, %v1407_v38  ;;  %v5118_v51 = vpop.f32.mrb[46].mxu1  ;;  %v5152_v11 = vpop.f32.mrb[46].mxu0 }
 0x14b   : > { %v2025_v7 = vadd.f32 %v5147_v61, %v1779_v40  ;;  %1687 = vst.msk [vmem:[#allocation2 + $0xf0] sm:$0xff] %vm923_vm6, %v1655_v32  ;;  %v1777_v23 = vld [vmem:[#allocation2 + $0xc0] sm:$0xff]  ;;  %v1656_v33 = vadd.f32 %v5118_v51, %v1410_v15  ;;  %v1613_v1 = vpop.f32.mrb[47].mxu1  ;;  %v1987_v28 = vpop.f32.mrb[47].mxu0  ;;  %v2137_v51 = vld [vmem:[#allocation2 + $0x50] sm:$0xff] }
 0x14c   : > { %v2023_v46 = vadd.f32 %v1968_v36, %v1777_v23  ;;  %1685 = vst.msk [vmem:[#allocation2 + $0xe0] sm:$0xff] %vm923_vm6, %v1653_v62  ;;  %v1780_v53 = vld [vmem:[#allocation2 + $0xd8] sm:$0xff]  ;;  %v1654_v42 = vadd.f32 %v1613_v1, %v1408_v37  ;;  %v2135_v23 = vld [vmem:[#allocation2 + $0x40] sm:$0xff] }
 0x14d   : > { %2057 = vst.msk [vmem:[#allocation2 + $0xd0] sm:$0xff] %vm923_vm6, %v2025_v7  ;;  %v2026_v31 = vadd.f32 %v5148_v34, %v1780_v53  ;;  %1688 = vst.msk [vmem:[#allocation2 + $0xf8] sm:$0xff] %vm923_vm6, %v1656_v33  ;;  %v1778_v22 = vld [vmem:[#allocation2 + $0xc8] sm:$0xff]  ;;  %v2134_v36 = vld [vmem:[#allocation2 + $0x38] sm:$0xff] }
 0x14e   : > { %2055 = vst.msk [vmem:[#allocation2 + $0xc0] sm:$0xff] %vm923_vm6, %v2023_v46  ;;  %v2024_v13 = vadd.f32 %v1971_v48, %v1778_v22  ;;  %1686 = vst.msk [vmem:[#allocation2 + $0xe8] sm:$0xff] %vm923_vm6, %v1654_v42  ;;  %v2136_v22 = vld [vmem:[#allocation2 + $0x48] sm:$0xff] }
 0x14f   : > { %2058 = vst.msk [vmem:[#allocation2 + $0xd8] sm:$0xff] %vm923_vm6, %v2026_v31 }
 0x150   : > { %2056 = vst.msk [vmem:[#allocation2 + $0xc8] sm:$0xff] %vm923_vm6, %v2024_v13  ;;  %v5157_v58 = vpop.f32.mrb[48].mxu1  ;;  %v5191_v5 = vpop.f32.mrb[48].mxu0 }
 0x151   : > { %v2375_v52 = vadd.f32 %v5157_v58, %v2129_v18  ;;  %v2246_v16 = vpop.f32.mrb[49].mxu1  ;;  %v2604_v55 = vpop.f32.mrb[49].mxu0 }
 0x152   : > { %v1783_v60 = vld [vmem:[#allocation2 + $0xf0] sm:$0xff]  ;;  %v2373_v2 = vadd.f32 %v2246_v16, %v2127_v30  ;;  %v5158_v4 = vpop.f32.mrb[50].mxu1  ;;  %v5192_v3 = vpop.f32.mrb[50].mxu0 }
 0x153   : > { %v2029_v44 = vadd.f32 %v5151_v14, %v1783_v60  ;;  %v1781_v29 = vld [vmem:[#allocation2 + $0xe0] sm:$0xff]  ;;  %2407 = vst.msk [vmem:[#allocation2 + $0x10] sm:$0xff] %vm923_vm6, %v2375_v52  ;;  %v2376_v56 = vadd.f32 %v5158_v4, %v2130_v49  ;;  %v2249_v20 = vpop.f32.mrb[51].mxu1  ;;  %v2607_v0 = vpop.f32.mrb[51].mxu0  ;;  %v2141_v4 = vld [vmem:[#allocation2 + $0x70] sm:$0xff] }
 0x154   : > { %v2027_v19 = vadd.f32 %v1984_v9, %v1781_v29  ;;  %v1784_v43 = vld [vmem:[#allocation2 + $0xf8] sm:$0xff]  ;;  %2405 = vst.msk [vmem:[#allocation2] sm:$0xff] %vm923_vm6, %v2373_v2  ;;  %v2374_v21 = vadd.f32 %v2249_v20, %v2128_v59  ;;  %v2139_v29 = vld [vmem:[#allocation2 + $0x60] sm:$0xff] }
 0x155   : > { %2061 = vst.msk [vmem:[#allocation2 + $0xf0] sm:$0xff] %vm923_vm6, %v2029_v44  ;;  %v2030_v41 = vadd.f32 %v5152_v11, %v1784_v43  ;;  %v1782_v47 = vld [vmem:[#allocation2 + $0xe8] sm:$0xff]  ;;  %2408 = vst.msk [vmem:[#allocation2 + $0x18] sm:$0xff] %vm923_vm6, %v2376_v56  ;;  %v2138_v9 = vld [vmem:[#allocation2 + $0x58] sm:$0xff] }
 0x156   : > { %2059 = vst.msk [vmem:[#allocation2 + $0xe0] sm:$0xff] %vm923_vm6, %v2027_v19  ;;  %v2028_v45 = vadd.f32 %v1987_v28, %v1782_v47  ;;  %2406 = vst.msk [vmem:[#allocation2 + $0x8] sm:$0xff] %vm923_vm6, %v2374_v21  ;;  %v2140_v47 = vld [vmem:[#allocation2 + $0x68] sm:$0xff] }
 0x157   : > { %2062 = vst.msk [vmem:[#allocation2 + $0xf8] sm:$0xff] %vm923_vm6, %v2030_v41 }
 0x158   : > { %2060 = vst.msk [vmem:[#allocation2 + $0xe8] sm:$0xff] %vm923_vm6, %v2028_v45  ;;  %v5161_v61 = vpop.f32.mrb[52].mxu1  ;;  %v5195_v25 = vpop.f32.mrb[52].mxu0 }
 0x159   : > { %v2379_v24 = vadd.f32 %v5161_v61, %v2133_v35  ;;  %v2262_v12 = vpop.f32.mrb[53].mxu1  ;;  %v2620_v8 = vpop.f32.mrb[53].mxu0 }
 0x15a   : > { %v2487_v63 = vld [vmem:[#allocation2 + $0x10] sm:$0xff]  ;;  %v2377_v50 = vadd.f32 %v2262_v12, %v2131_v6  ;;  %v5162_v39 = vpop.f32.mrb[54].mxu1  ;;  %v5196_v38 = vpop.f32.mrb[54].mxu0 }
 0x15b   : > { %v2733_v10 = vadd.f32 %v5191_v5, %v2487_v63  ;;  %2411 = vst.msk [vmem:[#allocation2 + $0x30] sm:$0xff] %vm923_vm6, %v2379_v24  ;;  %v2485_v34 = vld [vmem:[#allocation2] sm:$0xff]  ;;  %v2380_v27 = vadd.f32 %v5162_v39, %v2134_v36  ;;  %v2265_v48 = vpop.f32.mrb[55].mxu1  ;;  %v2623_v62 = vpop.f32.mrb[55].mxu0  ;;  %v2145_v39 = vld [vmem:[#allocation2 + $0x90] sm:$0xff] }
 0x15c   : > { %v2731_v54 = vadd.f32 %v2604_v55, %v2485_v34  ;;  %2409 = vst.msk [vmem:[#allocation2 + $0x20] sm:$0xff] %vm923_vm6, %v2377_v50  ;;  %v2488_v57 = vld [vmem:[#allocation2 + $0x18] sm:$0xff]  ;;  %v2378_v32 = vadd.f32 %v2265_v48, %v2132_v26  ;;  %v2143_v34 = vld [vmem:[#allocation2 + $0x80] sm:$0xff] }
 0x15d   : > { %2765 = vst.msk [vmem:[#allocation2 + $0x10] sm:$0xff] %vm923_vm6, %v2733_v10  ;;  %v2734_v17 = vadd.f32 %v5192_v3, %v2488_v57  ;;  %2412 = vst.msk [vmem:[#allocation2 + $0x38] sm:$0xff] %vm923_vm6, %v2380_v27  ;;  %v2486_v40 = vld [vmem:[#allocation2 + $0x8] sm:$0xff]  ;;  %v2142_v55 = vld [vmem:[#allocation2 + $0x78] sm:$0xff] }
 0x15e   : > { %2763 = vst.msk [vmem:[#allocation2] sm:$0xff] %vm923_vm6, %v2731_v54  ;;  %v2732_v15 = vadd.f32 %v2607_v0, %v2486_v40  ;;  %2410 = vst.msk [vmem:[#allocation2 + $0x28] sm:$0xff] %vm923_vm6, %v2378_v32  ;;  %v2144_v40 = vld [vmem:[#allocation2 + $0x88] sm:$0xff] }
 0x15f   : > { %2766 = vst.msk [vmem:[#allocation2 + $0x18] sm:$0xff] %vm923_vm6, %v2734_v17 }
 0x160   : > { %2764 = vst.msk [vmem:[#allocation2 + $0x8] sm:$0xff] %vm923_vm6, %v2732_v15  ;;  %v5165_v14 = vpop.f32.mrb[56].mxu1  ;;  %v5199_v53 = vpop.f32.mrb[56].mxu0 }
 0x161   : > { %v2383_v7 = vadd.f32 %v5165_v14, %v2137_v51  ;;  %v2278_v33 = vpop.f32.mrb[57].mxu1  ;;  %v2636_v13 = vpop.f32.mrb[57].mxu0 }
 0x162   : > { %v2491_v37 = vld [vmem:[#allocation2 + $0x30] sm:$0xff]  ;;  %v2381_v1 = vadd.f32 %v2278_v33, %v2135_v23  ;;  %v5166_v46 = vpop.f32.mrb[58].mxu1  ;;  %v5200_v30 = vpop.f32.mrb[58].mxu0 }
 0x163   : > { %v2737_v42 = vadd.f32 %v5195_v25, %v2491_v37  ;;  %2415 = vst.msk [vmem:[#allocation2 + $0x50] sm:$0xff] %vm923_vm6, %v2383_v7  ;;  %v2489_v11 = vld [vmem:[#allocation2 + $0x20] sm:$0xff]  ;;  %v2384_v31 = vadd.f32 %v5166_v46, %v2138_v9  ;;  %v2281_v28 = vpop.f32.mrb[59].mxu1  ;;  %v2639_v2 = vpop.f32.mrb[59].mxu0  ;;  %v2149_v46 = vld [vmem:[#allocation2 + $0xb0] sm:$0xff] }
 0x164   : > { %v2735_v18 = vadd.f32 %v2620_v8, %v2489_v11  ;;  %2413 = vst.msk [vmem:[#allocation2 + $0x40] sm:$0xff] %vm923_vm6, %v2381_v1  ;;  %v2492_v58 = vld [vmem:[#allocation2 + $0x38] sm:$0xff]  ;;  %v2382_v52 = vadd.f32 %v2281_v28, %v2136_v22  ;;  %v2147_v11 = vld [vmem:[#allocation2 + $0xa0] sm:$0xff] }
 0x165   : > { %2769 = vst.msk [vmem:[#allocation2 + $0x30] sm:$0xff] %vm923_vm6, %v2737_v42  ;;  %v2738_v16 = vadd.f32 %v5196_v38, %v2492_v58  ;;  %2416 = vst.msk [vmem:[#allocation2 + $0x58] sm:$0xff] %vm923_vm6, %v2384_v31  ;;  %v2490_v60 = vld [vmem:[#allocation2 + $0x28] sm:$0xff]  ;;  %v2146_v8 = vld [vmem:[#allocation2 + $0x98] sm:$0xff] }
 0x166   : > { %2767 = vst.msk [vmem:[#allocation2 + $0x20] sm:$0xff] %vm923_vm6, %v2735_v18  ;;  %v2736_v49 = vadd.f32 %v2623_v62, %v2490_v60  ;;  %2414 = vst.msk [vmem:[#allocation2 + $0x48] sm:$0xff] %vm923_vm6, %v2382_v52  ;;  %v2148_v60 = vld [vmem:[#allocation2 + $0xa8] sm:$0xff] }
 0x167   : > { %2770 = vst.msk [vmem:[#allocation2 + $0x38] sm:$0xff] %vm923_vm6, %v2738_v16 }
 0x168   : > { %2768 = vst.msk [vmem:[#allocation2 + $0x28] sm:$0xff] %vm923_vm6, %v2736_v49  ;;  %v5169_v5 = vpop.f32.mrb[60].mxu1  ;;  %v5203_v43 = vpop.f32.mrb[60].mxu0 }
 0x169   : > { %v2387_v44 = vadd.f32 %v5169_v5, %v2141_v4  ;;  %v2294_v56 = vpop.f32.mrb[61].mxu1  ;;  %v2652_v45 = vpop.f32.mrb[61].mxu0 }
 0x16a   : > { %v2495_v59 = vld [vmem:[#allocation2 + $0x50] sm:$0xff]  ;;  %v2385_v20 = vadd.f32 %v2294_v56, %v2139_v29  ;;  %v5170_v19 = vpop.f32.mrb[62].mxu1  ;;  %v5204_v6 = vpop.f32.mrb[62].mxu0 }
 0x16b   : > { %v2741_v21 = vadd.f32 %v5199_v53, %v2495_v59  ;;  %2419 = vst.msk [vmem:[#allocation2 + $0x70] sm:$0xff] %vm923_vm6, %v2387_v44  ;;  %v2493_v3 = vld [vmem:[#allocation2 + $0x40] sm:$0xff]  ;;  %v2388_v41 = vadd.f32 %v5170_v19, %v2142_v55  ;;  %v2297_v0 = vpop.f32.mrb[63].mxu1  ;;  %v2655_v50 = vpop.f32.mrb[63].mxu0  ;;  %v2153_v19 = vld [vmem:[#allocation2 + $0xd0] sm:$0xff] }
 0x16c   : > { %v2739_v35 = vadd.f32 %v2636_v13, %v2493_v3  ;;  %2417 = vst.msk [vmem:[#allocation2 + $0x60] sm:$0xff] %vm923_vm6, %v2385_v20  ;;  %v2496_v61 = vld [vmem:[#allocation2 + $0x58] sm:$0xff]  ;;  %v2386_v24 = vadd.f32 %v2297_v0, %v2140_v47  ;;  %v2151_v3 = vld [vmem:[#allocation2 + $0xc0] sm:$0xff] }
 0x16d   : > { %2773 = vst.msk [vmem:[#allocation2 + $0x50] sm:$0xff] %vm923_vm6, %v2741_v21  ;;  %v2742_v12 = vadd.f32 %v5200_v30, %v2496_v61  ;;  %2420 = vst.msk [vmem:[#allocation2 + $0x78] sm:$0xff] %vm923_vm6, %v2388_v41  ;;  %v2494_v63 = vld [vmem:[#allocation2 + $0x48] sm:$0xff]  ;;  %v2150_v13 = vld [vmem:[#allocation2 + $0xb8] sm:$0xff] }
 0x16e   : > { %2771 = vst.msk [vmem:[#allocation2 + $0x40] sm:$0xff] %vm923_vm6, %v2739_v35  ;;  %v2740_v36 = vadd.f32 %v2639_v2, %v2494_v63  ;;  %2418 = vst.msk [vmem:[#allocation2 + $0x68] sm:$0xff] %vm923_vm6, %v2386_v24  ;;  %v2152_v63 = vld [vmem:[#allocation2 + $0xc8] sm:$0xff] }
 0x16f   : > { %2774 = vst.msk [vmem:[#allocation2 + $0x58] sm:$0xff] %vm923_vm6, %v2742_v12 }
 0x170   : > { %2772 = vst.msk [vmem:[#allocation2 + $0x48] sm:$0xff] %vm923_vm6, %v2740_v36  ;;  %v5173_v25 = vpop.f32.mrb[64].mxu1  ;;  %v5207_v57 = vpop.f32.mrb[64].mxu0 }
 0x171   : > { %v2391_v10 = vadd.f32 %v5173_v25, %v2145_v39  ;;  %v2310_v27 = vpop.f32.mrb[65].mxu1  ;;  %v2668_v15 = vpop.f32.mrb[65].mxu0 }
 0x172   : > { %v2499_v26 = vld [vmem:[#allocation2 + $0x70] sm:$0xff]  ;;  %v2389_v48 = vadd.f32 %v2310_v27, %v2143_v34  ;;  %v5174_v54 = vpop.f32.mrb[66].mxu1  ;;  %v5208_v23 = vpop.f32.mrb[66].mxu0 }
 0x173   : > { %v2745_v32 = vadd.f32 %v5203_v43, %v2499_v26  ;;  %2423 = vst.msk [vmem:[#allocation2 + $0x90] sm:$0xff] %vm923_vm6, %v2391_v10  ;;  %v2497_v38 = vld [vmem:[#allocation2 + $0x60] sm:$0xff]  ;;  %v2392_v17 = vadd.f32 %v5174_v54, %v2146_v8  ;;  %v2313_v62 = vpop.f32.mrb[67].mxu1  ;;  %v2671_v1 = vpop.f32.mrb[67].mxu0  ;;  %v2157_v54 = vld [vmem:[#allocation2 + $0xf0] sm:$0xff] }
 0x174   : > { %v2743_v51 = vadd.f32 %v2652_v45, %v2497_v38  ;;  %2421 = vst.msk [vmem:[#allocation2 + $0x80] sm:$0xff] %vm923_vm6, %v2389_v48  ;;  %v2500_v14 = vld [vmem:[#allocation2 + $0x78] sm:$0xff]  ;;  %v2390_v7 = vadd.f32 %v2313_v62, %v2144_v40  ;;  %v2155_v38 = vld [vmem:[#allocation2 + $0xe0] sm:$0xff] }
 0x175   : > { %2777 = vst.msk [vmem:[#allocation2 + $0x70] sm:$0xff] %vm923_vm6, %v2745_v32  ;;  %v2746_v33 = vadd.f32 %v5204_v6, %v2500_v14  ;;  %2424 = vst.msk [vmem:[#allocation2 + $0x98] sm:$0xff] %vm923_vm6, %v2392_v17  ;;  %v2498_v37 = vld [vmem:[#allocation2 + $0x68] sm:$0xff]  ;;  %v2154_v45 = vld [vmem:[#allocation2 + $0xd8] sm:$0xff] }
 0x176   : > { %2775 = vst.msk [vmem:[#allocation2 + $0x60] sm:$0xff] %vm923_vm6, %v2743_v51  ;;  %v2744_v9 = vadd.f32 %v2655_v50, %v2498_v37  ;;  %2422 = vst.msk [vmem:[#allocation2 + $0x88] sm:$0xff] %vm923_vm6, %v2390_v7  ;;  %v2156_v37 = vld [vmem:[#allocation2 + $0xe8] sm:$0xff] }
 0x177   : > { %2778 = vst.msk [vmem:[#allocation2 + $0x78] sm:$0xff] %vm923_vm6, %v2746_v33 }
 0x178   : > { %2776 = vst.msk [vmem:[#allocation2 + $0x68] sm:$0xff] %vm923_vm6, %v2744_v9  ;;  %v5177_v53 = vpop.f32.mrb[68].mxu1  ;;  %v5211_v58 = vpop.f32.mrb[68].mxu0 }
 0x179   : > { %v2395_v42 = vadd.f32 %v5177_v53, %v2149_v46  ;;  %v2326_v31 = vpop.f32.mrb[69].mxu1  ;;  %v2684_v49 = vpop.f32.mrb[69].mxu0 }
 0x17a   : > { %v2503_v22 = vld [vmem:[#allocation2 + $0x90] sm:$0xff]  ;;  %v2393_v28 = vadd.f32 %v2326_v31, %v2147_v11  ;;  %v5178_v18 = vpop.f32.mrb[70].mxu1  ;;  %v5212_v29 = vpop.f32.mrb[70].mxu0 }
 0x17b   : > { %v2749_v52 = vadd.f32 %v5207_v57, %v2503_v22  ;;  %2427 = vst.msk [vmem:[#allocation2 + $0xb0] sm:$0xff] %vm923_vm6, %v2395_v42  ;;  %v2501_v30 = vld [vmem:[#allocation2 + $0x80] sm:$0xff]  ;;  %v2396_v16 = vadd.f32 %v5178_v18, %v2150_v13  ;;  %v2329_v2 = vpop.f32.mrb[71].mxu1  ;;  %v2687_v20 = vpop.f32.mrb[71].mxu0  ;;  %v2861_v18 = vld [vmem:[#allocation2 + $0x10] sm:$0xff] }
 0x17c   : > { %v2747_v4 = vadd.f32 %v2668_v15, %v2501_v30  ;;  %2425 = vst.msk [vmem:[#allocation2 + $0xa0] sm:$0xff] %vm923_vm6, %v2393_v28  ;;  %v2504_v5 = vld [vmem:[#allocation2 + $0x98] sm:$0xff]  ;;  %v2394_v44 = vadd.f32 %v2329_v2, %v2148_v60  ;;  %v2859_v30 = vld [vmem:[#allocation2] sm:$0xff] }
 0x17d   : > { %2781 = vst.msk [vmem:[#allocation2 + $0x90] sm:$0xff] %vm923_vm6, %v2749_v52  ;;  %v2750_v56 = vadd.f32 %v5208_v23, %v2504_v5  ;;  %2428 = vst.msk [vmem:[#allocation2 + $0xb8] sm:$0xff] %vm923_vm6, %v2396_v16  ;;  %v2502_v59 = vld [vmem:[#allocation2 + $0x88] sm:$0xff]  ;;  %v2158_v15 = vld [vmem:[#allocation2 + $0xf8] sm:$0xff] }
 0x17e   : > { %2779 = vst.msk [vmem:[#allocation2 + $0x80] sm:$0xff] %vm923_vm6, %v2747_v4  ;;  %v2748_v55 = vadd.f32 %v2671_v1, %v2502_v59  ;;  %2426 = vst.msk [vmem:[#allocation2 + $0xa8] sm:$0xff] %vm923_vm6, %v2394_v44  ;;  %v2860_v59 = vld [vmem:[#allocation2 + $0x8] sm:$0xff] }
 0x17f   : > { %2782 = vst.msk [vmem:[#allocation2 + $0x98] sm:$0xff] %vm923_vm6, %v2750_v56 }
 0x180   : > { %2780 = vst.msk [vmem:[#allocation2 + $0x88] sm:$0xff] %vm923_vm6, %v2748_v55  ;;  %v5181_v43 = vpop.f32.mrb[72].mxu1  ;;  %v5215_v61 = vpop.f32.mrb[72].mxu0 }
 0x181   : > { %v2399_v21 = vadd.f32 %v5181_v43, %v2153_v19  ;;  %v2342_v41 = vpop.f32.mrb[73].mxu1  ;;  %v2700_v36 = vpop.f32.mrb[73].mxu0 }
 0x182   : > { %v2507_v47 = vld [vmem:[#allocation2 + $0xb0] sm:$0xff]  ;;  %v2397_v0 = vadd.f32 %v2342_v41, %v2151_v3  ;;  %v5182_v35 = vpop.f32.mrb[74].mxu1  ;;  %v5216_v34 = vpop.f32.mrb[74].mxu0 }
 0x183   : > { %v2753_v24 = vadd.f32 %v5211_v58, %v2507_v47  ;;  %2431 = vst.msk [vmem:[#allocation2 + $0xd0] sm:$0xff] %vm923_vm6, %v2399_v21  ;;  %v2505_v6 = vld [vmem:[#allocation2 + $0xa0] sm:$0xff]  ;;  %v2400_v12 = vadd.f32 %v5182_v35, %v2154_v45  ;;  %v2345_v50 = vpop.f32.mrb[75].mxu1  ;;  %v2703_v48 = vpop.f32.mrb[75].mxu0  ;;  %v2865_v35 = vld [vmem:[#allocation2 + $0x30] sm:$0xff] }
 0x184   : > { %v2751_v39 = vadd.f32 %v2684_v49, %v2505_v6  ;;  %2429 = vst.msk [vmem:[#allocation2 + $0xc0] sm:$0xff] %vm923_vm6, %v2397_v0  ;;  %v2508_v25 = vld [vmem:[#allocation2 + $0xb8] sm:$0xff]  ;;  %v2398_v10 = vadd.f32 %v2345_v50, %v2152_v63  ;;  %v2863_v6 = vld [vmem:[#allocation2 + $0x20] sm:$0xff] }
 0x185   : > { %2785 = vst.msk [vmem:[#allocation2 + $0xb0] sm:$0xff] %vm923_vm6, %v2753_v24  ;;  %v2754_v27 = vadd.f32 %v5212_v29, %v2508_v25  ;;  %2432 = vst.msk [vmem:[#allocation2 + $0xd8] sm:$0xff] %vm923_vm6, %v2400_v12  ;;  %v2506_v26 = vld [vmem:[#allocation2 + $0xa8] sm:$0xff]  ;;  %v2862_v49 = vld [vmem:[#allocation2 + $0x18] sm:$0xff] }
 0x186   : > { %2783 = vst.msk [vmem:[#allocation2 + $0xa0] sm:$0xff] %vm923_vm6, %v2751_v39  ;;  %v2752_v8 = vadd.f32 %v2687_v20, %v2506_v26  ;;  %2430 = vst.msk [vmem:[#allocation2 + $0xc8] sm:$0xff] %vm923_vm6, %v2398_v10  ;;  %v2864_v26 = vld [vmem:[#allocation2 + $0x28] sm:$0xff] }
 0x187   : > { %2786 = vst.msk [vmem:[#allocation2 + $0xb8] sm:$0xff] %vm923_vm6, %v2754_v27 }
 0x188   : > { %2784 = vst.msk [vmem:[#allocation2 + $0xa8] sm:$0xff] %vm923_vm6, %v2752_v8  ;;  %v5185_v57 = vpop.f32.mrb[76].mxu1  ;;  %v5219_v14 = vpop.f32.mrb[76].mxu0 }
 0x189   : > { %v2403_v32 = vadd.f32 %v5185_v57, %v2157_v54  ;;  %v2358_v17 = vpop.f32.mrb[77].mxu1  ;;  %v2716_v9 = vpop.f32.mrb[77].mxu0 }
 0x18a   : > { %v2511_v40 = vld [vmem:[#allocation2 + $0xd0] sm:$0xff]  ;;  %v2401_v62 = vadd.f32 %v2358_v17, %v2155_v38  ;;  %v5186_v51 = vpop.f32.mrb[78].mxu1  ;;  %v5220_v11 = vpop.f32.mrb[78].mxu0 }
 0x18b   : > { %v2757_v7 = vadd.f32 %v5215_v61, %v2511_v40  ;;  %2435 = vst.msk [vmem:[#allocation2 + $0xf0] sm:$0xff] %vm923_vm6, %v2403_v32  ;;  %v2509_v23 = vld [vmem:[#allocation2 + $0xc0] sm:$0xff]  ;;  %v2404_v33 = vadd.f32 %v5186_v51, %v2158_v15  ;;  %v2361_v1 = vpop.f32.mrb[79].mxu1  ;;  %v2719_v28 = vpop.f32.mrb[79].mxu0  ;;  %v2869_v51 = vld [vmem:[#allocation2 + $0x50] sm:$0xff] }
 0x18c   : > { %v2755_v46 = vadd.f32 %v2700_v36, %v2509_v23  ;;  %2433 = vst.msk [vmem:[#allocation2 + $0xe0] sm:$0xff] %vm923_vm6, %v2401_v62  ;;  %v2512_v53 = vld [vmem:[#allocation2 + $0xd8] sm:$0xff]  ;;  %v2402_v42 = vadd.f32 %v2361_v1, %v2156_v37  ;;  %v2867_v23 = vld [vmem:[#allocation2 + $0x40] sm:$0xff] }
 0x18d   : > { %2789 = vst.msk [vmem:[#allocation2 + $0xd0] sm:$0xff] %vm923_vm6, %v2757_v7  ;;  %v2758_v31 = vadd.f32 %v5216_v34, %v2512_v53  ;;  %2436 = vst.msk [vmem:[#allocation2 + $0xf8] sm:$0xff] %vm923_vm6, %v2404_v33  ;;  %v2510_v22 = vld [vmem:[#allocation2 + $0xc8] sm:$0xff]  ;;  %v2866_v36 = vld [vmem:[#allocation2 + $0x38] sm:$0xff] }
 0x18e   : > { %2787 = vst.msk [vmem:[#allocation2 + $0xc0] sm:$0xff] %vm923_vm6, %v2755_v46  ;;  %v2756_v13 = vadd.f32 %v2703_v48, %v2510_v22  ;;  %2434 = vst.msk [vmem:[#allocation2 + $0xe8] sm:$0xff] %vm923_vm6, %v2402_v42  ;;  %v2868_v22 = vld [vmem:[#allocation2 + $0x48] sm:$0xff] }
 0x18f   : > { %2790 = vst.msk [vmem:[#allocation2 + $0xd8] sm:$0xff] %vm923_vm6, %v2758_v31 }
 0x190   : > { %2788 = vst.msk [vmem:[#allocation2 + $0xc8] sm:$0xff] %vm923_vm6, %v2756_v13  ;;  %v5225_v58 = vpop.f32.mrb[80].mxu1  ;;  %v5259_v5 = vpop.f32.mrb[80].mxu0 }
 0x191   : > { %v3107_v52 = vadd.f32 %v5225_v58, %v2861_v18  ;;  %v2978_v16 = vpop.f32.mrb[81].mxu1  ;;  %v3352_v55 = vpop.f32.mrb[81].mxu0 }
 0x192   : > { %v2515_v60 = vld [vmem:[#allocation2 + $0xf0] sm:$0xff]  ;;  %v3105_v2 = vadd.f32 %v2978_v16, %v2859_v30  ;;  %v5226_v4 = vpop.f32.mrb[82].mxu1  ;;  %v5260_v3 = vpop.f32.mrb[82].mxu0 }
 0x193   : > { %v2761_v44 = vadd.f32 %v5219_v14, %v2515_v60  ;;  %v2513_v29 = vld [vmem:[#allocation2 + $0xe0] sm:$0xff]  ;;  %3139 = vst.msk [vmem:[#allocation2 + $0x10] sm:$0xff] %vm923_vm6, %v3107_v52  ;;  %v3108_v56 = vadd.f32 %v5226_v4, %v2862_v49  ;;  %v2981_v20 = vpop.f32.mrb[83].mxu1  ;;  %v3355_v0 = vpop.f32.mrb[83].mxu0  ;;  %v2873_v4 = vld [vmem:[#allocation2 + $0x70] sm:$0xff] }
 0x194   : > { %v2759_v19 = vadd.f32 %v2716_v9, %v2513_v29  ;;  %v2516_v43 = vld [vmem:[#allocation2 + $0xf8] sm:$0xff]  ;;  %3137 = vst.msk [vmem:[#allocation2] sm:$0xff] %vm923_vm6, %v3105_v2  ;;  %v3106_v21 = vadd.f32 %v2981_v20, %v2860_v59  ;;  %v2871_v29 = vld [vmem:[#allocation2 + $0x60] sm:$0xff] }
 0x195   : > { %2793 = vst.msk [vmem:[#allocation2 + $0xf0] sm:$0xff] %vm923_vm6, %v2761_v44  ;;  %v2762_v41 = vadd.f32 %v5220_v11, %v2516_v43  ;;  %v2514_v47 = vld [vmem:[#allocation2 + $0xe8] sm:$0xff]  ;;  %3140 = vst.msk [vmem:[#allocation2 + $0x18] sm:$0xff] %vm923_vm6, %v3108_v56  ;;  %v2870_v9 = vld [vmem:[#allocation2 + $0x58] sm:$0xff] }
 0x196   : > { %2791 = vst.msk [vmem:[#allocation2 + $0xe0] sm:$0xff] %vm923_vm6, %v2759_v19  ;;  %v2760_v45 = vadd.f32 %v2719_v28, %v2514_v47  ;;  %3138 = vst.msk [vmem:[#allocation2 + $0x8] sm:$0xff] %vm923_vm6, %v3106_v21  ;;  %v2872_v47 = vld [vmem:[#allocation2 + $0x68] sm:$0xff] }
 0x197   : > { %2794 = vst.msk [vmem:[#allocation2 + $0xf8] sm:$0xff] %vm923_vm6, %v2762_v41 }
 0x198   : > { %2792 = vst.msk [vmem:[#allocation2 + $0xe8] sm:$0xff] %vm923_vm6, %v2760_v45  ;;  %v5229_v61 = vpop.f32.mrb[84].mxu1  ;;  %v5263_v25 = vpop.f32.mrb[84].mxu0 }
 0x199   : > { %v3111_v24 = vadd.f32 %v5229_v61, %v2865_v35  ;;  %v2994_v12 = vpop.f32.mrb[85].mxu1  ;;  %v3368_v8 = vpop.f32.mrb[85].mxu0 }
 0x19a   : > { %v3235_v63 = vld [vmem:[#allocation2 + $0x10] sm:$0xff]  ;;  %v3109_v50 = vadd.f32 %v2994_v12, %v2863_v6  ;;  %v5230_v39 = vpop.f32.mrb[86].mxu1  ;;  %v5264_v38 = vpop.f32.mrb[86].mxu0 }
 0x19b   : > { %v3481_v10 = vadd.f32 %v5259_v5, %v3235_v63  ;;  %3143 = vst.msk [vmem:[#allocation2 + $0x30] sm:$0xff] %vm923_vm6, %v3111_v24  ;;  %v3233_v34 = vld [vmem:[#allocation2] sm:$0xff]  ;;  %v3112_v27 = vadd.f32 %v5230_v39, %v2866_v36  ;;  %v2997_v48 = vpop.f32.mrb[87].mxu1  ;;  %v3371_v62 = vpop.f32.mrb[87].mxu0  ;;  %v2877_v39 = vld [vmem:[#allocation2 + $0x90] sm:$0xff] }
 0x19c   : > { %v3479_v54 = vadd.f32 %v3352_v55, %v3233_v34  ;;  %3141 = vst.msk [vmem:[#allocation2 + $0x20] sm:$0xff] %vm923_vm6, %v3109_v50  ;;  %v3236_v57 = vld [vmem:[#allocation2 + $0x18] sm:$0xff]  ;;  %v3110_v32 = vadd.f32 %v2997_v48, %v2864_v26  ;;  %v2875_v34 = vld [vmem:[#allocation2 + $0x80] sm:$0xff] }
 0x19d   : > { %3513 = vst.msk [vmem:[#allocation2 + $0x10] sm:$0xff] %vm923_vm6, %v3481_v10  ;;  %v3482_v17 = vadd.f32 %v5260_v3, %v3236_v57  ;;  %3144 = vst.msk [vmem:[#allocation2 + $0x38] sm:$0xff] %vm923_vm6, %v3112_v27  ;;  %v3234_v40 = vld [vmem:[#allocation2 + $0x8] sm:$0xff]  ;;  %v2874_v55 = vld [vmem:[#allocation2 + $0x78] sm:$0xff] }
 0x19e   : > { %3511 = vst.msk [vmem:[#allocation2] sm:$0xff] %vm923_vm6, %v3479_v54  ;;  %v3480_v15 = vadd.f32 %v3355_v0, %v3234_v40  ;;  %3142 = vst.msk [vmem:[#allocation2 + $0x28] sm:$0xff] %vm923_vm6, %v3110_v32  ;;  %v2876_v40 = vld [vmem:[#allocation2 + $0x88] sm:$0xff] }
 0x19f   : > { %3514 = vst.msk [vmem:[#allocation2 + $0x18] sm:$0xff] %vm923_vm6, %v3482_v17 }
 0x1a0   : > { %3512 = vst.msk [vmem:[#allocation2 + $0x8] sm:$0xff] %vm923_vm6, %v3480_v15  ;;  %v5233_v14 = vpop.f32.mrb[88].mxu1  ;;  %v5267_v53 = vpop.f32.mrb[88].mxu0 }
 0x1a1   : > { %v3115_v7 = vadd.f32 %v5233_v14, %v2869_v51  ;;  %v3010_v33 = vpop.f32.mrb[89].mxu1  ;;  %v3384_v13 = vpop.f32.mrb[89].mxu0 }
 0x1a2   : > { %v3239_v37 = vld [vmem:[#allocation2 + $0x30] sm:$0xff]  ;;  %v3113_v1 = vadd.f32 %v3010_v33, %v2867_v23  ;;  %v5234_v46 = vpop.f32.mrb[90].mxu1  ;;  %v5268_v30 = vpop.f32.mrb[90].mxu0 }
 0x1a3   : > { %v3485_v42 = vadd.f32 %v5263_v25, %v3239_v37  ;;  %3147 = vst.msk [vmem:[#allocation2 + $0x50] sm:$0xff] %vm923_vm6, %v3115_v7  ;;  %v3237_v11 = vld [vmem:[#allocation2 + $0x20] sm:$0xff]  ;;  %v3116_v31 = vadd.f32 %v5234_v46, %v2870_v9  ;;  %v3013_v28 = vpop.f32.mrb[91].mxu1  ;;  %v3387_v2 = vpop.f32.mrb[91].mxu0  ;;  %v2881_v46 = vld [vmem:[#allocation2 + $0xb0] sm:$0xff] }
 0x1a4   : > { %v3483_v18 = vadd.f32 %v3368_v8, %v3237_v11  ;;  %3145 = vst.msk [vmem:[#allocation2 + $0x40] sm:$0xff] %vm923_vm6, %v3113_v1  ;;  %v3240_v58 = vld [vmem:[#allocation2 + $0x38] sm:$0xff]  ;;  %v3114_v52 = vadd.f32 %v3013_v28, %v2868_v22  ;;  %v2879_v11 = vld [vmem:[#allocation2 + $0xa0] sm:$0xff] }
 0x1a5   : > { %3517 = vst.msk [vmem:[#allocation2 + $0x30] sm:$0xff] %vm923_vm6, %v3485_v42  ;;  %v3486_v16 = vadd.f32 %v5264_v38, %v3240_v58  ;;  %3148 = vst.msk [vmem:[#allocation2 + $0x58] sm:$0xff] %vm923_vm6, %v3116_v31  ;;  %v3238_v60 = vld [vmem:[#allocation2 + $0x28] sm:$0xff]  ;;  %v2878_v8 = vld [vmem:[#allocation2 + $0x98] sm:$0xff] }
 0x1a6   : > { %3515 = vst.msk [vmem:[#allocation2 + $0x20] sm:$0xff] %vm923_vm6, %v3483_v18  ;;  %v3484_v49 = vadd.f32 %v3371_v62, %v3238_v60  ;;  %3146 = vst.msk [vmem:[#allocation2 + $0x48] sm:$0xff] %vm923_vm6, %v3114_v52  ;;  %v2880_v60 = vld [vmem:[#allocation2 + $0xa8] sm:$0xff] }
 0x1a7   : > { %3518 = vst.msk [vmem:[#allocation2 + $0x38] sm:$0xff] %vm923_vm6, %v3486_v16 }
 0x1a8   : > { %3516 = vst.msk [vmem:[#allocation2 + $0x28] sm:$0xff] %vm923_vm6, %v3484_v49  ;;  %v5237_v5 = vpop.f32.mrb[92].mxu1  ;;  %v5271_v43 = vpop.f32.mrb[92].mxu0 }
 0x1a9   : > { %v3119_v44 = vadd.f32 %v5237_v5, %v2873_v4  ;;  %v3026_v56 = vpop.f32.mrb[93].mxu1  ;;  %v3400_v45 = vpop.f32.mrb[93].mxu0 }
 0x1aa   : > { %v3243_v59 = vld [vmem:[#allocation2 + $0x50] sm:$0xff]  ;;  %v3117_v20 = vadd.f32 %v3026_v56, %v2871_v29  ;;  %v5238_v19 = vpop.f32.mrb[94].mxu1  ;;  %v5272_v6 = vpop.f32.mrb[94].mxu0 }
 0x1ab   : > { %v3489_v21 = vadd.f32 %v5267_v53, %v3243_v59  ;;  %3151 = vst.msk [vmem:[#allocation2 + $0x70] sm:$0xff] %vm923_vm6, %v3119_v44  ;;  %v3241_v3 = vld [vmem:[#allocation2 + $0x40] sm:$0xff]  ;;  %v3120_v41 = vadd.f32 %v5238_v19, %v2874_v55  ;;  %v3029_v0 = vpop.f32.mrb[95].mxu1  ;;  %v3403_v50 = vpop.f32.mrb[95].mxu0  ;;  %v2885_v19 = vld [vmem:[#allocation2 + $0xd0] sm:$0xff] }
 0x1ac   : > { %v3487_v35 = vadd.f32 %v3384_v13, %v3241_v3  ;;  %3149 = vst.msk [vmem:[#allocation2 + $0x60] sm:$0xff] %vm923_vm6, %v3117_v20  ;;  %v3244_v61 = vld [vmem:[#allocation2 + $0x58] sm:$0xff]  ;;  %v3118_v24 = vadd.f32 %v3029_v0, %v2872_v47  ;;  %v2883_v3 = vld [vmem:[#allocation2 + $0xc0] sm:$0xff] }
 0x1ad   : > { %3521 = vst.msk [vmem:[#allocation2 + $0x50] sm:$0xff] %vm923_vm6, %v3489_v21  ;;  %v3490_v12 = vadd.f32 %v5268_v30, %v3244_v61  ;;  %3152 = vst.msk [vmem:[#allocation2 + $0x78] sm:$0xff] %vm923_vm6, %v3120_v41  ;;  %v3242_v63 = vld [vmem:[#allocation2 + $0x48] sm:$0xff]  ;;  %v2882_v13 = vld [vmem:[#allocation2 + $0xb8] sm:$0xff] }
 0x1ae   : > { %3519 = vst.msk [vmem:[#allocation2 + $0x40] sm:$0xff] %vm923_vm6, %v3487_v35  ;;  %v3488_v36 = vadd.f32 %v3387_v2, %v3242_v63  ;;  %3150 = vst.msk [vmem:[#allocation2 + $0x68] sm:$0xff] %vm923_vm6, %v3118_v24  ;;  %v2884_v63 = vld [vmem:[#allocation2 + $0xc8] sm:$0xff] }
 0x1af   : > { %3522 = vst.msk [vmem:[#allocation2 + $0x58] sm:$0xff] %vm923_vm6, %v3490_v12 }
 0x1b0   : > { %3520 = vst.msk [vmem:[#allocation2 + $0x48] sm:$0xff] %vm923_vm6, %v3488_v36  ;;  %v5241_v25 = vpop.f32.mrb[96].mxu1  ;;  %v5275_v57 = vpop.f32.mrb[96].mxu0 }
 0x1b1   : > { %v3123_v10 = vadd.f32 %v5241_v25, %v2877_v39  ;;  %v3042_v27 = vpop.f32.mrb[97].mxu1  ;;  %v3416_v15 = vpop.f32.mrb[97].mxu0 }
 0x1b2   : > { %v3247_v26 = vld [vmem:[#allocation2 + $0x70] sm:$0xff]  ;;  %v3121_v48 = vadd.f32 %v3042_v27, %v2875_v34  ;;  %v5242_v54 = vpop.f32.mrb[98].mxu1  ;;  %v5276_v23 = vpop.f32.mrb[98].mxu0 }
 0x1b3   : > { %v3493_v32 = vadd.f32 %v5271_v43, %v3247_v26  ;;  %3155 = vst.msk [vmem:[#allocation2 + $0x90] sm:$0xff] %vm923_vm6, %v3123_v10  ;;  %v3245_v38 = vld [vmem:[#allocation2 + $0x60] sm:$0xff]  ;;  %v3124_v17 = vadd.f32 %v5242_v54, %v2878_v8  ;;  %v3045_v62 = vpop.f32.mrb[99].mxu1  ;;  %v3419_v1 = vpop.f32.mrb[99].mxu0  ;;  %v2889_v54 = vld [vmem:[#allocation2 + $0xf0] sm:$0xff] }
 0x1b4   : > { %v3491_v51 = vadd.f32 %v3400_v45, %v3245_v38  ;;  %3153 = vst.msk [vmem:[#allocation2 + $0x80] sm:$0xff] %vm923_vm6, %v3121_v48  ;;  %v3248_v14 = vld [vmem:[#allocation2 + $0x78] sm:$0xff]  ;;  %v3122_v7 = vadd.f32 %v3045_v62, %v2876_v40  ;;  %v2887_v38 = vld [vmem:[#allocation2 + $0xe0] sm:$0xff] }
 0x1b5   : > { %3525 = vst.msk [vmem:[#allocation2 + $0x70] sm:$0xff] %vm923_vm6, %v3493_v32  ;;  %v3494_v33 = vadd.f32 %v5272_v6, %v3248_v14  ;;  %3156 = vst.msk [vmem:[#allocation2 + $0x98] sm:$0xff] %vm923_vm6, %v3124_v17  ;;  %v3246_v37 = vld [vmem:[#allocation2 + $0x68] sm:$0xff]  ;;  %v2886_v45 = vld [vmem:[#allocation2 + $0xd8] sm:$0xff] }
 0x1b6   : > { %3523 = vst.msk [vmem:[#allocation2 + $0x60] sm:$0xff] %vm923_vm6, %v3491_v51  ;;  %v3492_v9 = vadd.f32 %v3403_v50, %v3246_v37  ;;  %3154 = vst.msk [vmem:[#allocation2 + $0x88] sm:$0xff] %vm923_vm6, %v3122_v7  ;;  %v2888_v37 = vld [vmem:[#allocation2 + $0xe8] sm:$0xff] }
 0x1b7   : > { %3526 = vst.msk [vmem:[#allocation2 + $0x78] sm:$0xff] %vm923_vm6, %v3494_v33 }
 0x1b8   : > { %3524 = vst.msk [vmem:[#allocation2 + $0x68] sm:$0xff] %vm923_vm6, %v3492_v9  ;;  %v5245_v53 = vpop.f32.mrb[100].mxu1  ;;  %v5279_v58 = vpop.f32.mrb[100].mxu0 }
 0x1b9   : > { %v3127_v42 = vadd.f32 %v5245_v53, %v2881_v46  ;;  %v3058_v31 = vpop.f32.mrb[101].mxu1  ;;  %v3432_v49 = vpop.f32.mrb[101].mxu0 }
 0x1ba   : > { %v3251_v22 = vld [vmem:[#allocation2 + $0x90] sm:$0xff]  ;;  %v3125_v28 = vadd.f32 %v3058_v31, %v2879_v11  ;;  %v5246_v18 = vpop.f32.mrb[102].mxu1  ;;  %v5280_v29 = vpop.f32.mrb[102].mxu0 }
 0x1bb   : > { %v3497_v52 = vadd.f32 %v5275_v57, %v3251_v22  ;;  %3159 = vst.msk [vmem:[#allocation2 + $0xb0] sm:$0xff] %vm923_vm6, %v3127_v42  ;;  %v3249_v30 = vld [vmem:[#allocation2 + $0x80] sm:$0xff]  ;;  %v3128_v16 = vadd.f32 %v5246_v18, %v2882_v13  ;;  %v3061_v2 = vpop.f32.mrb[103].mxu1  ;;  %v3435_v20 = vpop.f32.mrb[103].mxu0  ;;  %v3593_v18 = vld [vmem:[#allocation2 + $0x10] sm:$0xff] }
 0x1bc   : > { %v3495_v4 = vadd.f32 %v3416_v15, %v3249_v30  ;;  %3157 = vst.msk [vmem:[#allocation2 + $0xa0] sm:$0xff] %vm923_vm6, %v3125_v28  ;;  %v3252_v5 = vld [vmem:[#allocation2 + $0x98] sm:$0xff]  ;;  %v3126_v44 = vadd.f32 %v3061_v2, %v2880_v60  ;;  %v3591_v30 = vld [vmem:[#allocation2] sm:$0xff] }
 0x1bd   : > { %3529 = vst.msk [vmem:[#allocation2 + $0x90] sm:$0xff] %vm923_vm6, %v3497_v52  ;;  %v3498_v56 = vadd.f32 %v5276_v23, %v3252_v5  ;;  %3160 = vst.msk [vmem:[#allocation2 + $0xb8] sm:$0xff] %vm923_vm6, %v3128_v16  ;;  %v3250_v59 = vld [vmem:[#allocation2 + $0x88] sm:$0xff]  ;;  %v2890_v15 = vld [vmem:[#allocation2 + $0xf8] sm:$0xff] }
 0x1be   : > { %3527 = vst.msk [vmem:[#allocation2 + $0x80] sm:$0xff] %vm923_vm6, %v3495_v4  ;;  %v3496_v55 = vadd.f32 %v3419_v1, %v3250_v59  ;;  %3158 = vst.msk [vmem:[#allocation2 + $0xa8] sm:$0xff] %vm923_vm6, %v3126_v44  ;;  %v3592_v59 = vld [vmem:[#allocation2 + $0x8] sm:$0xff] }
 0x1bf   : > { %3530 = vst.msk [vmem:[#allocation2 + $0x98] sm:$0xff] %vm923_vm6, %v3498_v56 }
 0x1c0   : > { %3528 = vst.msk [vmem:[#allocation2 + $0x88] sm:$0xff] %vm923_vm6, %v3496_v55  ;;  %v5249_v43 = vpop.f32.mrb[104].mxu1  ;;  %v5283_v61 = vpop.f32.mrb[104].mxu0 }
 0x1c1   : > { %v3131_v21 = vadd.f32 %v5249_v43, %v2885_v19  ;;  %v3074_v41 = vpop.f32.mrb[105].mxu1  ;;  %v3448_v36 = vpop.f32.mrb[105].mxu0 }
 0x1c2   : > { %v3255_v47 = vld [vmem:[#allocation2 + $0xb0] sm:$0xff]  ;;  %v3129_v0 = vadd.f32 %v3074_v41, %v2883_v3  ;;  %v5250_v35 = vpop.f32.mrb[106].mxu1  ;;  %v5284_v34 = vpop.f32.mrb[106].mxu0 }
 0x1c3   : > { %v3501_v24 = vadd.f32 %v5279_v58, %v3255_v47  ;;  %3163 = vst.msk [vmem:[#allocation2 + $0xd0] sm:$0xff] %vm923_vm6, %v3131_v21  ;;  %v3253_v6 = vld [vmem:[#allocation2 + $0xa0] sm:$0xff]  ;;  %v3132_v12 = vadd.f32 %v5250_v35, %v2886_v45  ;;  %v3077_v50 = vpop.f32.mrb[107].mxu1  ;;  %v3451_v48 = vpop.f32.mrb[107].mxu0  ;;  %v3597_v35 = vld [vmem:[#allocation2 + $0x30] sm:$0xff] }
 0x1c4   : > { %v3499_v39 = vadd.f32 %v3432_v49, %v3253_v6  ;;  %3161 = vst.msk [vmem:[#allocation2 + $0xc0] sm:$0xff] %vm923_vm6, %v3129_v0  ;;  %v3256_v25 = vld [vmem:[#allocation2 + $0xb8] sm:$0xff]  ;;  %v3130_v10 = vadd.f32 %v3077_v50, %v2884_v63  ;;  %v3595_v6 = vld [vmem:[#allocation2 + $0x20] sm:$0xff] }
 0x1c5   : > { %3533 = vst.msk [vmem:[#allocation2 + $0xb0] sm:$0xff] %vm923_vm6, %v3501_v24  ;;  %v3502_v27 = vadd.f32 %v5280_v29, %v3256_v25  ;;  %3164 = vst.msk [vmem:[#allocation2 + $0xd8] sm:$0xff] %vm923_vm6, %v3132_v12  ;;  %v3254_v26 = vld [vmem:[#allocation2 + $0xa8] sm:$0xff]  ;;  %v3594_v49 = vld [vmem:[#allocation2 + $0x18] sm:$0xff] }
 0x1c6   : > { %3531 = vst.msk [vmem:[#allocation2 + $0xa0] sm:$0xff] %vm923_vm6, %v3499_v39  ;;  %v3500_v8 = vadd.f32 %v3435_v20, %v3254_v26  ;;  %3162 = vst.msk [vmem:[#allocation2 + $0xc8] sm:$0xff] %vm923_vm6, %v3130_v10  ;;  %v3596_v26 = vld [vmem:[#allocation2 + $0x28] sm:$0xff] }
 0x1c7   : > { %3534 = vst.msk [vmem:[#allocation2 + $0xb8] sm:$0xff] %vm923_vm6, %v3502_v27 }
 0x1c8   : > { %3532 = vst.msk [vmem:[#allocation2 + $0xa8] sm:$0xff] %vm923_vm6, %v3500_v8  ;;  %v5253_v57 = vpop.f32.mrb[108].mxu1  ;;  %v5287_v14 = vpop.f32.mrb[108].mxu0 }
 0x1c9   : > { %v3135_v32 = vadd.f32 %v5253_v57, %v2889_v54  ;;  %v3090_v17 = vpop.f32.mrb[109].mxu1  ;;  %v3464_v9 = vpop.f32.mrb[109].mxu0 }
 0x1ca   : > { %v3259_v40 = vld [vmem:[#allocation2 + $0xd0] sm:$0xff]  ;;  %v3133_v62 = vadd.f32 %v3090_v17, %v2887_v38  ;;  %v5254_v51 = vpop.f32.mrb[110].mxu1  ;;  %v5288_v11 = vpop.f32.mrb[110].mxu0 }
 0x1cb   : > { %v3505_v7 = vadd.f32 %v5283_v61, %v3259_v40  ;;  %3167 = vst.msk [vmem:[#allocation2 + $0xf0] sm:$0xff] %vm923_vm6, %v3135_v32  ;;  %v3257_v23 = vld [vmem:[#allocation2 + $0xc0] sm:$0xff]  ;;  %v3136_v33 = vadd.f32 %v5254_v51, %v2890_v15  ;;  %v3093_v1 = vpop.f32.mrb[111].mxu1  ;;  %v3467_v28 = vpop.f32.mrb[111].mxu0  ;;  %v3601_v51 = vld [vmem:[#allocation2 + $0x50] sm:$0xff] }
 0x1cc   : > { %v3503_v46 = vadd.f32 %v3448_v36, %v3257_v23  ;;  %3165 = vst.msk [vmem:[#allocation2 + $0xe0] sm:$0xff] %vm923_vm6, %v3133_v62  ;;  %v3260_v53 = vld [vmem:[#allocation2 + $0xd8] sm:$0xff]  ;;  %v3134_v42 = vadd.f32 %v3093_v1, %v2888_v37  ;;  %v3599_v23 = vld [vmem:[#allocation2 + $0x40] sm:$0xff] }
 0x1cd   : > { %3537 = vst.msk [vmem:[#allocation2 + $0xd0] sm:$0xff] %vm923_vm6, %v3505_v7  ;;  %v3506_v31 = vadd.f32 %v5284_v34, %v3260_v53  ;;  %3168 = vst.msk [vmem:[#allocation2 + $0xf8] sm:$0xff] %vm923_vm6, %v3136_v33  ;;  %v3258_v22 = vld [vmem:[#allocation2 + $0xc8] sm:$0xff]  ;;  %v3598_v36 = vld [vmem:[#allocation2 + $0x38] sm:$0xff] }
 0x1ce   : > { %3535 = vst.msk [vmem:[#allocation2 + $0xc0] sm:$0xff] %vm923_vm6, %v3503_v46  ;;  %v3504_v13 = vadd.f32 %v3451_v48, %v3258_v22  ;;  %3166 = vst.msk [vmem:[#allocation2 + $0xe8] sm:$0xff] %vm923_vm6, %v3134_v42  ;;  %v6676_v37 = vld [vmem:[%s6977_s2] ss:$0 sm:$0xff]  ;;  %v3602_v46 = vld [vmem:[#allocation2 + $0x58] sm:$0xff] }
 0x1cf   : > { %3538 = vst.msk [vmem:[#allocation2 + $0xd8] sm:$0xff] %vm923_vm6, %v3506_v31 }
 0x1d0   : > { %3536 = vst.msk [vmem:[#allocation2 + $0xc8] sm:$0xff] %vm923_vm6, %v3504_v13  ;;  %v5293_v58 = vpop.f32.mrb[112].mxu1  ;;  %v5327_v5 = vpop.f32.mrb[112].mxu0 }
 0x1d1   : > { %v3839_v52 = vadd.f32 %v5293_v58, %v3593_v18  ;;  %v3710_v16 = vpop.f32.mrb[113].mxu1  ;;  %v4084_v55 = vpop.f32.mrb[113].mxu0 }
 0x1d2   : > { %v3263_v60 = vld [vmem:[#allocation2 + $0xf0] sm:$0xff]  ;;  %v3837_v2 = vadd.f32 %v3710_v16, %v3591_v30  ;;  %v5294_v4 = vpop.f32.mrb[114].mxu1  ;;  %v5328_v3 = vpop.f32.mrb[114].mxu0 }
 0x1d3   : > { %v3509_v44 = vadd.f32 %v5287_v14, %v3263_v60  ;;  %v3261_v29 = vld [vmem:[#allocation2 + $0xe0] sm:$0xff]  ;;  %3871 = vst.msk [vmem:[#allocation2 + $0x10] sm:$0xff] %vm923_vm6, %v3839_v52  ;;  %v3840_v56 = vadd.f32 %v5294_v4, %v3594_v49  ;;  %v3713_v20 = vpop.f32.mrb[115].mxu1  ;;  %v4087_v0 = vpop.f32.mrb[115].mxu0 }
 0x1d4   : > { %v3507_v19 = vadd.f32 %v3464_v9, %v3261_v29  ;;  %v3264_v43 = vld [vmem:[#allocation2 + $0xf8] sm:$0xff]  ;;  %3869 = vst.msk [vmem:[#allocation2] sm:$0xff] %vm923_vm6, %v3837_v2  ;;  %v3838_v21 = vadd.f32 %v3713_v20, %v3592_v59 }
 0x1d5   : > { %3541 = vst.msk [vmem:[#allocation2 + $0xf0] sm:$0xff] %vm923_vm6, %v3509_v44  ;;  %v3510_v41 = vadd.f32 %v5288_v11, %v3264_v43  ;;  %v3262_v47 = vld [vmem:[#allocation2 + $0xe8] sm:$0xff]  ;;  %3872 = vst.msk [vmem:[#allocation2 + $0x18] sm:$0xff] %vm923_vm6, %v3840_v56 }
 0x1d6   : > { %3539 = vst.msk [vmem:[#allocation2 + $0xe0] sm:$0xff] %vm923_vm6, %v3507_v19  ;;  %v3508_v45 = vadd.f32 %v3467_v28, %v3262_v47  ;;  %3870 = vst.msk [vmem:[#allocation2 + $0x8] sm:$0xff] %vm923_vm6, %v3838_v21  ;;  %v3600_v28 = vld [vmem:[#allocation2 + $0x48] sm:$0xff]  ;;  %v3605_v21 = vld [vmem:[#allocation2 + $0x70] sm:$0xff] }
 0x1d7   : > { %3542 = vst.msk [vmem:[#allocation2 + $0xf8] sm:$0xff] %vm923_vm6, %v3510_v41 }
 0x1d8   : > { %3540 = vst.msk [vmem:[#allocation2 + $0xe8] sm:$0xff] %vm923_vm6, %v3508_v45  ;;  %v5297_v61 = vpop.f32.mrb[116].mxu1  ;;  %v5331_v25 = vpop.f32.mrb[116].mxu0  ;;  %v3603_v45 = vld [vmem:[#allocation2 + $0x60] sm:$0xff] }
 0x1d9   : > { %v3843_v24 = vadd.f32 %v5297_v61, %v3597_v35  ;;  %v3726_v12 = vpop.f32.mrb[117].mxu1  ;;  %v4100_v8 = vpop.f32.mrb[117].mxu0 }
 0x1da   : > { %v3967_v63 = vld [vmem:[#allocation2 + $0x10] sm:$0xff]  ;;  %v3841_v50 = vadd.f32 %v3726_v12, %v3595_v6  ;;  %v5298_v39 = vpop.f32.mrb[118].mxu1  ;;  %v5332_v38 = vpop.f32.mrb[118].mxu0 }
 0x1db   : > { %v4213_v10 = vadd.f32 %v5327_v5, %v3967_v63  ;;  %3875 = vst.msk [vmem:[#allocation2 + $0x30] sm:$0xff] %vm923_vm6, %v3843_v24  ;;  %v3965_v34 = vld [vmem:[#allocation2] sm:$0xff]  ;;  %v3844_v27 = vadd.f32 %v5298_v39, %v3598_v36  ;;  %v3729_v48 = vpop.f32.mrb[119].mxu1  ;;  %v4103_v62 = vpop.f32.mrb[119].mxu0 }
 0x1dc   : > { %v4211_v54 = vadd.f32 %v4084_v55, %v3965_v34  ;;  %3873 = vst.msk [vmem:[#allocation2 + $0x20] sm:$0xff] %vm923_vm6, %v3841_v50  ;;  %v3968_v57 = vld [vmem:[#allocation2 + $0x18] sm:$0xff]  ;;  %v3842_v32 = vadd.f32 %v3729_v48, %v3596_v26  ;;  %v3604_v48 = vld [vmem:[#allocation2 + $0x68] sm:$0xff] }
 0x1dd   : > { %4245 = vst.msk [vmem:[#allocation2 + $0x10] sm:$0xff] %vm923_vm6, %v4213_v10  ;;  %v4214_v17 = vadd.f32 %v5328_v3, %v3968_v57  ;;  %3876 = vst.msk [vmem:[#allocation2 + $0x38] sm:$0xff] %vm923_vm6, %v3844_v27  ;;  %v3966_v40 = vld [vmem:[#allocation2 + $0x8] sm:$0xff]  ;;  %v3606_v50 = vld [vmem:[#allocation2 + $0x78] sm:$0xff] }
 0x1de   : > { %4243 = vst.msk [vmem:[#allocation2] sm:$0xff] %vm923_vm6, %v4211_v54  ;;  %v4212_v15 = vadd.f32 %v4087_v0, %v3966_v40  ;;  %3874 = vst.msk [vmem:[#allocation2 + $0x28] sm:$0xff] %vm923_vm6, %v3842_v32 }
 0x1df   : > { %4246 = vst.msk [vmem:[#allocation2 + $0x18] sm:$0xff] %vm923_vm6, %v4214_v17 }
 0x1e0   : > { %4244 = vst.msk [vmem:[#allocation2 + $0x8] sm:$0xff] %vm923_vm6, %v4212_v15  ;;  %v5301_v14 = vpop.f32.mrb[120].mxu1  ;;  %v5335_v42 = vpop.f32.mrb[120].mxu0 }
 0x1e1   : > { %v3847_v7 = vadd.f32 %v5301_v14, %v3601_v51  ;;  %v3742_v33 = vpop.f32.mrb[121].mxu1  ;;  %v4116_v18 = vpop.f32.mrb[121].mxu0 }
 0x1e2   : > { %v3971_v1 = vld [vmem:[#allocation2 + $0x30] sm:$0xff]  ;;  %v3845_v9 = vadd.f32 %v3742_v33, %v3599_v23  ;;  %v5302_v53 = vpop.f32.mrb[122].mxu1  ;;  %v5336_v60 = vpop.f32.mrb[122].mxu0 }
 0x1e3   : > { %v4217_v11 = vadd.f32 %v5331_v25, %v3971_v1  ;;  %3879 = vst.msk [vmem:[#allocation2 + $0x50] sm:$0xff] %vm923_vm6, %v3847_v7  ;;  %v3969_v31 = vld [vmem:[#allocation2 + $0x20] sm:$0xff]  ;;  %v3848_v22 = vadd.f32 %v5302_v53, %v3602_v46  ;;  %v3745_v13 = vpop.f32.mrb[123].mxu1  ;;  %v4119_v44 = vpop.f32.mrb[123].mxu0 }
 0x1e4   : > { %v4277_v58 = vld [vmem:[#allocation2 + $0x10] sm:$0xff]  ;;  %v4215_v52 = vadd.f32 %v4100_v8, %v3969_v31  ;;  %3877 = vst.msk [vmem:[#allocation2 + $0x40] sm:$0xff] %vm923_vm6, %v3845_v9  ;;  %v3972_v30 = vld [vmem:[#allocation2 + $0x38] sm:$0xff]  ;;  %v3846_v16 = vadd.f32 %v3745_v13, %v3600_v28 }
 0x1e5   : > { %v4316_v2 = vadd.f32 %v6676_v37, %v4277_v58  ;;  %v4275_v49 = vld [vmem:[#allocation2] sm:$0xff]  ;;  %4249 = vst.msk [vmem:[#allocation2 + $0x30] sm:$0xff] %vm923_vm6, %v4217_v11  ;;  %v4218_v4 = vadd.f32 %v5332_v38, %v3972_v30  ;;  %3880 = vst.msk [vmem:[#allocation2 + $0x58] sm:$0xff] %vm923_vm6, %v3848_v22  ;;  %v3970_v5 = vld [vmem:[#allocation2 + $0x28] sm:$0xff] }
 0x1e6   : > { %v4314_v29 = vadd.f32 %v6676_v37, %v4275_v49  ;;  %v4278_v56 = vld [vmem:[#allocation2 + $0x18] sm:$0xff]  ;;  %4247 = vst.msk [vmem:[#allocation2 + $0x20] sm:$0xff] %vm923_vm6, %v4215_v52  ;;  %v4216_v59 = vadd.f32 %v4103_v62, %v3970_v5  ;;  %3878 = vst.msk [vmem:[#allocation2 + $0x48] sm:$0xff] %vm923_vm6, %v3846_v16 }
 0x1e7   : > { %4348 = vst.msk [vmem:[%s6682_s28 + $0x10] sm:$0xff] %vm923_vm6, %v4316_v2  ;;  %v4317_v20 = vadd.f32 %v6676_v37, %v4278_v56  ;;  %v4276_v55 = vld [vmem:[#allocation2 + $0x8] sm:$0xff]  ;;  %4250 = vst.msk [vmem:[#allocation2 + $0x38] sm:$0xff] %vm923_vm6, %v4218_v4  ;;  %v4381_v41 = vsel %vm923_vm6, %v4316_v2, 0.0  ;;  %v4451_v47 = vmul.f32 %v4316_v2, %v4316_v2 }
 0x1e8   : > { %4346 = vst.msk [vmem:[%s6682_s28] sm:$0xff] %vm923_vm6, %v4314_v29  ;;  %v4449_v19 = vmul.f32 %v4314_v29, %v4314_v29  ;;  %v4315_v43 = vadd.f32 %v6676_v37, %v4276_v55  ;;  %4248 = vst.msk [vmem:[#allocation2 + $0x28] sm:$0xff] %vm923_vm6, %v4216_v59  ;;  %v5305_v3 = vpop.f32.mrb[124].mxu1  ;;  %v4378_v61 = vsel %vm923_vm6, %v4314_v29, 0.0  ;;  %v6706_v39 = vpop.f32.mrb[124].mxu0 }
 0x1e9   : > { %4349 = vst.msk [vmem:[%s6682_s28 + $0x18] sm:$0xff] %vm923_vm6, %v4317_v20  ;;  %v3851_v0 = vadd.f32 %v5305_v3, %v3605_v21  ;;  %v3758_v35 = vpop.f32.mrb[125].mxu1  ;;  %v4452_v25 = vmul.f32 %v4317_v20, %v4317_v20  ;;  %v6709_v54 = vpop.f32.mrb[125].mxu0  ;;  %v4484_v46 = vsel %vm923_vm6, %v4451_v47, 0.0  ;;  %v4383_v53 = vsel %vm923_vm6, %v4317_v20, 0.0 }
 0x1ea   : > { %4347 = vst.msk [vmem:[%s6682_s28 + $0x8] sm:$0xff] %vm923_vm6, %v4315_v43  ;;  %v4379_v24 = vsel %vm923_vm6, %v4315_v43, 0.0  ;;  %v4450_v6 = vmul.f32 %v4315_v43, %v4315_v43  ;;  %v3975_v12 = vld [vmem:[#allocation2 + $0x50] sm:$0xff]  ;;  %v3849_v63 = vadd.f32 %v3758_v35, %v3603_v45  ;;  %v5306_v36 = vpop.f32.mrb[126].mxu1  ;;  %v4481_v57 = vsel %vm923_vm6, %v4449_v19, 0.0  ;;  %v6714_v15 = vpop.f32.mrb[126].mxu0 }
 0x1eb   : > { %v4380_v10 = vadd.f32 %v4379_v24, %v4378_v61  ;;  %v4221_v34 = vadd.f32 %v5335_v42, %v3975_v12  ;;  %3883 = vst.msk [vmem:[#allocation2 + $0x70] sm:$0xff] %vm923_vm6, %v3851_v0  ;;  %v3973_v27 = vld [vmem:[#allocation2 + $0x40] sm:$0xff]  ;;  %v3852_v26 = vadd.f32 %v5306_v36, %v3606_v50  ;;  %v3761_v8 = vpop.f32.mrb[127].mxu1  ;;  %v6719_v9 = vpop.f32.mrb[127].mxu0  ;;  %v4486_v22 = vsel %vm923_vm6, %v4452_v25, 0.0  ;;  %v3610_v61 = vld [vmem:[#allocation2 + $0x98] sm:$0xff] }
 0x1ec   : > { %v4482_v32 = vsel %vm923_vm6, %v4450_v6, 0.0  ;;  %v4281_v38 = vld [vmem:[#allocation2 + $0x30] sm:$0xff]  ;;  %v4219_v17 = vadd.f32 %v4116_v18, %v3973_v27  ;;  %3881 = vst.msk [vmem:[#allocation2 + $0x60] sm:$0xff] %vm923_vm6, %v3849_v63  ;;  %v3976_v40 = vld [vmem:[#allocation2 + $0x58] sm:$0xff]  ;;  %v3850_v62 = vadd.f32 %v3761_v8, %v3604_v48  ;;  %v3607_v35 = vld [vmem:[#allocation2 + $0x80] sm:$0xff] }
 0x1ed   : > { %v4382_v51 = vadd.f32 %v4381_v41, %v4380_v10  ;;  %v4483_v14 = vadd.f32 %v4482_v32, %v4481_v57  ;;  %v4320_v7 = vadd.f32 %v6676_v37, %v4281_v38  ;;  %v4279_v23 = vld [vmem:[#allocation2 + $0x20] sm:$0xff]  ;;  %4253 = vst.msk [vmem:[#allocation2 + $0x50] sm:$0xff] %vm923_vm6, %v4221_v34  ;;  %v4222_v33 = vadd.f32 %v5336_v60, %v3976_v40  ;;  %v3974_v1 = vld [vmem:[#allocation2 + $0x48] sm:$0xff]  ;;  %v3609_v60 = vld [vmem:[#allocation2 + $0x90] sm:$0xff] }
 0x1ee   : > { %3884 = vst.msk [vmem:[#allocation2 + $0x78] sm:$0xff] %vm923_vm6, %v3852_v26  ;;  %v4318_v42 = vadd.f32 %v6676_v37, %v4279_v23  ;;  %v4282_v11 = vld [vmem:[#allocation2 + $0x38] sm:$0xff]  ;;  %4251 = vst.msk [vmem:[#allocation2 + $0x40] sm:$0xff] %vm923_vm6, %v4219_v17  ;;  %v4220_v31 = vadd.f32 %v4119_v44, %v3974_v1  ;;  %v3608_v32 = vld [vmem:[#allocation2 + $0x88] sm:$0xff] }
 0x1ef   : > { %3882 = vst.msk [vmem:[#allocation2 + $0x68] sm:$0xff] %vm923_vm6, %v3850_v62  ;;  %v4485_v28 = vadd.f32 %v4484_v46, %v4483_v14  ;;  %4352 = vst.msk [vmem:[%s6682_s28 + $0x30] sm:$0xff] %vm923_vm6, %v4320_v7  ;;  %v4384_v13 = vadd.f32 %v4383_v53, %v4382_v51  ;;  %v4280_v18 = vld [vmem:[#allocation2 + $0x28] sm:$0xff]  ;;  %v4321_v30 = vadd.f32 %v6676_v37, %v4282_v11  ;;  %v4389_v49 = vsel %vm923_vm6, %v4320_v7, 0.0 }
 0x1f0   : > { %4254 = vst.msk [vmem:[#allocation2 + $0x58] sm:$0xff] %vm923_vm6, %v4222_v33  ;;  %4350 = vst.msk [vmem:[%s6682_s28 + $0x20] sm:$0xff] %vm923_vm6, %v4318_v42  ;;  %v4385_v58 = vsel %vm923_vm6, %v4318_v42, 0.0  ;;  %v4453_v52 = vmul.f32 %v4318_v42, %v4318_v42  ;;  %v4319_v16 = vadd.f32 %v6676_v37, %v4280_v18  ;;  %v5309_v2 = vpop.f32.mrb[128].mxu1  ;;  %v4455_v56 = vmul.f32 %v4320_v7, %v4320_v7  ;;  %v6744_v21 = vpop.f32.mrb[128].mxu0 }
 0x1f1   : > { %4252 = vst.msk [vmem:[#allocation2 + $0x48] sm:$0xff] %vm923_vm6, %v4220_v31  ;;  %v4386_v4 = vadd.f32 %v4385_v58, %v4384_v13  ;;  %v4487_v5 = vadd.f32 %v4486_v22, %v4485_v28  ;;  %v3855_v44 = vadd.f32 %v5309_v2, %v3609_v60  ;;  %v3774_v29 = vpop.f32.mrb[129].mxu1  ;;  %4353 = vst.msk [vmem:[%s6682_s28 + $0x38] sm:$0xff] %vm923_vm6, %v4321_v30  ;;  %v4391_v20 = vsel %vm923_vm6, %v4321_v30, 0.0  ;;  %v6748_v6 = vpop.f32.mrb[129].mxu0 }
 0x1f2   : > { %v4488_v59 = vsel %vm923_vm6, %v4453_v52, 0.0  ;;  %4351 = vst.msk [vmem:[%s6682_s28 + $0x28] sm:$0xff] %vm923_vm6, %v4319_v16  ;;  %v4387_v55 = vsel %vm923_vm6, %v4319_v16, 0.0  ;;  %v3979_v19 = vld [vmem:[#allocation2 + $0x70] sm:$0xff]  ;;  %v5310_v43 = vpop.f32.mrb[130].mxu1  ;;  %v4454_v47 = vmul.f32 %v4319_v16, %v4319_v16  ;;  %v4456_v12 = vmul.f32 %v4321_v30, %v4321_v30  ;;  %v6751_v34 = vpop.f32.mrb[130].mxu0 }
 0x1f3   : > { %v4489_v3 = vadd.f32 %v4488_v59, %v4487_v5  ;;  %v4388_v41 = vadd.f32 %v4387_v55, %v4386_v4  ;;  %v4225_v0 = vadd.f32 %v6706_v39, %v3979_v19  ;;  %3887 = vst.msk [vmem:[#allocation2 + $0x90] sm:$0xff] %vm923_vm6, %v3855_v44  ;;  %v3977_v45 = vld [vmem:[#allocation2 + $0x60] sm:$0xff]  ;;  %v3777_v24 = vpop.f32.mrb[131].mxu1  ;;  %v3853_v36 = vadd.f32 %v3774_v29, %v3607_v35  ;;  %v6757_v38 = vpop.f32.mrb[131].mxu0  ;;  %v3613_v16 = vld [vmem:[#allocation2 + $0xb0] sm:$0xff] }
 0x1f4   : > { %v4285_v63 = vld [vmem:[#allocation2 + $0x50] sm:$0xff]  ;;  %v4223_v50 = vadd.f32 %v6709_v54, %v3977_v45  ;;  %v3856_v10 = vadd.f32 %v5310_v43, %v3610_v61  ;;  %v4490_v39 = vsel %vm923_vm6, %v4454_v47, 0.0  ;;  %v3854_v51 = vadd.f32 %v3777_v24, %v3608_v32  ;;  %v3611_v29 = vld [vmem:[#allocation2 + $0xa0] sm:$0xff]  ;;  %v3612_v47 = vld [vmem:[#allocation2 + $0xa8] sm:$0xff] }
 0x1f5   : > { %v3980_v25 = vld [vmem:[#allocation2 + $0x78] sm:$0xff]  ;;  %v4390_v27 = vadd.f32 %v4389_v49, %v4388_v41  ;;  %v4324_v26 = vadd.f32 %v6676_v37, %v4285_v63  ;;  %v4283_v48 = vld [vmem:[#allocation2 + $0x40] sm:$0xff]  ;;  %4257 = vst.msk [vmem:[#allocation2 + $0x70] sm:$0xff] %vm923_vm6, %v4225_v0  ;;  %v4491_v54 = vadd.f32 %v4490_v39, %v4489_v3  ;;  %3885 = vst.msk [vmem:[#allocation2 + $0x80] sm:$0xff] %vm923_vm6, %v3853_v36  ;;  %v4494_v42 = vsel %vm923_vm6, %v4456_v12, 0.0 }
 0x1f6   : > { %v4226_v8 = vadd.f32 %v6714_v15, %v3980_v25  ;;  %v3978_v57 = vld [vmem:[#allocation2 + $0x68] sm:$0xff]  ;;  %v4322_v17 = vadd.f32 %v6676_v37, %v4283_v48  ;;  %4255 = vst.msk [vmem:[#allocation2 + $0x60] sm:$0xff] %vm923_vm6, %v4223_v50  ;;  %3888 = vst.msk [vmem:[#allocation2 + $0x98] sm:$0xff] %vm923_vm6, %v3856_v10  ;;  %v4492_v15 = vsel %vm923_vm6, %v4455_v56, 0.0  ;;  %v3614_v56 = vld [vmem:[#allocation2 + $0xb8] sm:$0xff] }
 0x1f7   : > { %v4286_v40 = vld [vmem:[#allocation2 + $0x58] sm:$0xff]  ;;  %v4224_v62 = vadd.f32 %v6719_v9, %v3978_v57  ;;  %4356 = vst.msk [vmem:[%s6682_s28 + $0x50] sm:$0xff] %vm923_vm6, %v4324_v26  ;;  %v4392_v14 = vadd.f32 %v4391_v20, %v4390_v27  ;;  %v4493_v33 = vadd.f32 %v4492_v15, %v4491_v54  ;;  %3886 = vst.msk [vmem:[#allocation2 + $0x88] sm:$0xff] %vm923_vm6, %v3854_v51  ;;  %v4397_v11 = vsel %vm923_vm6, %v4324_v26, 0.0 }
 0x1f8   : > { %v4325_v7 = vadd.f32 %v6676_v37, %v4286_v40  ;;  %v4284_v23 = vld [vmem:[#allocation2 + $0x48] sm:$0xff]  ;;  %4258 = vst.msk [vmem:[#allocation2 + $0x78] sm:$0xff] %vm923_vm6, %v4226_v8  ;;  %4354 = vst.msk [vmem:[%s6682_s28 + $0x40] sm:$0xff] %vm923_vm6, %v4322_v17  ;;  %v4393_v1 = vsel %vm923_vm6, %v4322_v17, 0.0  ;;  %v4457_v46 = vmul.f32 %v4322_v17, %v4322_v17  ;;  %v5313_v53 = vpop.f32.mrb[132].mxu1  ;;  %v4459_v31 = vmul.f32 %v4324_v26, %v4324_v26  ;;  %v6783_v2 = vpop.f32.mrb[132].mxu0 }
 0x1f9   : > { %v4323_v9 = vadd.f32 %v6676_v37, %v4284_v23  ;;  %4256 = vst.msk [vmem:[#allocation2 + $0x68] sm:$0xff] %vm923_vm6, %v4224_v62  ;;  %v4394_v22 = vadd.f32 %v4393_v1, %v4392_v14  ;;  %v3790_v28 = vpop.f32.mrb[133].mxu1  ;;  %v4495_v13 = vadd.f32 %v4494_v42, %v4493_v33  ;;  %v3859_v44 = vadd.f32 %v5313_v53, %v3613_v16  ;;  %v6787_v20 = vpop.f32.mrb[133].mxu0 }
 0x1fa   : > { %4357 = vst.msk [vmem:[%s6682_s28 + $0x58] sm:$0xff] %vm923_vm6, %v4325_v7  ;;  %v4496_v18 = vsel %vm923_vm6, %v4457_v46, 0.0  ;;  %v3983_v30 = vld [vmem:[#allocation2 + $0x90] sm:$0xff]  ;;  %v5314_v60 = vpop.f32.mrb[134].mxu1  ;;  %v4399_v49 = vsel %vm923_vm6, %v4325_v7, 0.0  ;;  %v3857_v3 = vadd.f32 %v3790_v28, %v3611_v29  ;;  %v6790_v0 = vpop.f32.mrb[134].mxu0  ;;  %v4460_v45 = vmul.f32 %v4325_v7, %v4325_v7 }
 0x1fb   : > { %4355 = vst.msk [vmem:[%s6682_s28 + $0x48] sm:$0xff] %vm923_vm6, %v4323_v9  ;;  %v4395_v58 = vsel %vm923_vm6, %v4323_v9, 0.0  ;;  %v4458_v52 = vmul.f32 %v4323_v9, %v4323_v9  ;;  %v4229_v5 = vadd.f32 %v6744_v21, %v3983_v30  ;;  %v3793_v59 = vpop.f32.mrb[135].mxu1  ;;  %v4497_v55 = vadd.f32 %v4496_v18, %v4495_v13  ;;  %3891 = vst.msk [vmem:[#allocation2 + $0xb0] sm:$0xff] %vm923_vm6, %v3859_v44  ;;  %v6795_v50 = vpop.f32.mrb[135].mxu0  ;;  %v3617_v9 = vld [vmem:[#allocation2 + $0xd0] sm:$0xff] }
 0x1fc   : > { %v4396_v4 = vadd.f32 %v4395_v58, %v4394_v22  ;;  %v4289_v43 = vld [vmem:[#allocation2 + $0x70] sm:$0xff]  ;;  %v3860_v41 = vadd.f32 %v5314_v60, %v3614_v56  ;;  %v3981_v24 = vld [vmem:[#allocation2 + $0x80] sm:$0xff]  ;;  %v3858_v63 = vadd.f32 %v3793_v59, %v3612_v47  ;;  %3889 = vst.msk [vmem:[#allocation2 + $0xa0] sm:$0xff] %vm923_vm6, %v3857_v3  ;;  %v4500_v26 = vsel %vm923_vm6, %v4459_v31, 0.0  ;;  %v3618_v18 = vld [vmem:[#allocation2 + $0xd8] sm:$0xff] }
 0x1fd   : > { %v4498_v19 = vsel %vm923_vm6, %v4458_v52, 0.0  ;;  %v4328_v61 = vadd.f32 %v6676_v37, %v4289_v43  ;;  %v4287_v21 = vld [vmem:[#allocation2 + $0x60] sm:$0xff]  ;;  %4261 = vst.msk [vmem:[#allocation2 + $0x90] sm:$0xff] %vm923_vm6, %v4229_v5  ;;  %v3984_v12 = vld [vmem:[#allocation2 + $0x98] sm:$0xff]  ;;  %v4227_v27 = vadd.f32 %v6748_v6, %v3981_v24  ;;  %v4502_v62 = vsel %vm923_vm6, %v4460_v45, 0.0  ;;  %v3616_v44 = vld [vmem:[#allocation2 + $0xc8] sm:$0xff] }
 0x1fe   : > { %v4398_v35 = vadd.f32 %v4397_v11, %v4396_v4  ;;  %v4499_v36 = vadd.f32 %v4498_v19, %v4497_v55  ;;  %v4326_v25 = vadd.f32 %v6676_v37, %v4287_v21  ;;  %v4230_v39 = vadd.f32 %v6751_v34, %v3984_v12  ;;  %3892 = vst.msk [vmem:[#allocation2 + $0xb8] sm:$0xff] %vm923_vm6, %v3860_v41  ;;  %v3982_v17 = vld [vmem:[#allocation2 + $0x88] sm:$0xff]  ;;  %v3615_v13 = vld [vmem:[#allocation2 + $0xc0] sm:$0xff] }
 0x1ff   : > { %v4290_v10 = vld [vmem:[#allocation2 + $0x78] sm:$0xff]  ;;  %4360 = vst.msk [vmem:[%s6682_s28 + $0x70] sm:$0xff] %vm923_vm6, %v4328_v61  ;;  %3890 = vst.msk [vmem:[#allocation2 + $0xa8] sm:$0xff] %vm923_vm6, %v3858_v63  ;;  %v4405_v51 = vsel %vm923_vm6, %v4328_v61, 0.0  ;;  %v4463_v15 = vmul.f32 %v4328_v61, %v4328_v61  ;;  %v4228_v22 = vadd.f32 %v6757_v38, %v3982_v17 }
 0x200   : > { %v4400_v48 = vadd.f32 %v4399_v49, %v4398_v35  ;;  %v4329_v8 = vadd.f32 %v6676_v37, %v4290_v10  ;;  %v4288_v57 = vld [vmem:[#allocation2 + $0x68] sm:$0xff]  ;;  %v4501_v32 = vadd.f32 %v4500_v26, %v4499_v36  ;;  %4358 = vst.msk [vmem:[%s6682_s28 + $0x60] sm:$0xff] %vm923_vm6, %v4326_v25  ;;  %v4401_v6 = vsel %vm923_vm6, %v4326_v25, 0.0  ;;  %4259 = vst.msk [vmem:[#allocation2 + $0x80] sm:$0xff] %vm923_vm6, %v4227_v27  ;;  %v5317_v40 = vpop.f32.mrb[136].mxu1  ;;  %v6821_v42 = vpop.f32.mrb[136].mxu0 }
 0x201   : > { %v4461_v34 = vmul.f32 %v4326_v25, %v4326_v25  ;;  %v4327_v54 = vadd.f32 %v6676_v37, %v4288_v57  ;;  %4262 = vst.msk [vmem:[#allocation2 + $0x98] sm:$0xff] %vm923_vm6, %v4230_v39  ;;  %v3806_v7 = vpop.f32.mrb[137].mxu1  ;;  %v3863_v28 = vadd.f32 %v5317_v40, %v3617_v9  ;;  %v6824_v52 = vpop.f32.mrb[137].mxu0  ;;  %4260 = vst.msk [vmem:[#allocation2 + $0x88] sm:$0xff] %vm923_vm6, %v4228_v22  ;;  %v4508_v61 = vsel %vm923_vm6, %v4463_v15, 0.0  ;;  %v3621_v25 = vld [vmem:[#allocation2 + $0xf0] sm:$0xff] }
 0x202   : > { %v4402_v14 = vadd.f32 %v4401_v6, %v4400_v48  ;;  %4361 = vst.msk [vmem:[%s6682_s28 + $0x78] sm:$0xff] %vm923_vm6, %v4329_v8  ;;  %v4503_v23 = vadd.f32 %v4502_v62, %v4501_v32  ;;  %v5318_v53 = vpop.f32.mrb[138].mxu1  ;;  %v4464_v11 = vmul.f32 %v4329_v8, %v4329_v8  ;;  %v3987_v49 = vld [vmem:[#allocation2 + $0xb0] sm:$0xff]  ;;  %v3861_v4 = vadd.f32 %v3806_v7, %v3615_v13  ;;  %v6827_v29 = vpop.f32.mrb[138].mxu0  ;;  %v3619_v57 = vld [vmem:[#allocation2 + $0xe0] sm:$0xff]  ;;  %v3622_v32 = vld [vmem:[#allocation2 + $0xf8] sm:$0xff] }
 0x203   : > { %v4504_v33 = vsel %vm923_vm6, %v4461_v34, 0.0  ;;  %4359 = vst.msk [vmem:[%s6682_s28 + $0x68] sm:$0xff] %vm923_vm6, %v4327_v54  ;;  %v4403_v1 = vsel %vm923_vm6, %v4327_v54, 0.0  ;;  %v4462_v46 = vmul.f32 %v4327_v54, %v4327_v54  ;;  %v3809_v58 = vpop.f32.mrb[139].mxu1  ;;  %v3864_v5 = vadd.f32 %v5318_v53, %v3618_v18  ;;  %3895 = vst.msk [vmem:[#allocation2 + $0xd0] sm:$0xff] %vm923_vm6, %v3863_v28  ;;  %v3985_v55 = vld [vmem:[#allocation2 + $0xa0] sm:$0xff] }
 0x204   : > { %v4404_v31 = vadd.f32 %v4403_v1, %v4402_v14  ;;  %v4505_v30 = vadd.f32 %v4504_v33, %v4503_v23  ;;  %v4293_v60 = vld [vmem:[#allocation2 + $0x90] sm:$0xff]  ;;  %v4233_v38 = vadd.f32 %v6783_v2, %v3987_v49  ;;  %v3862_v43 = vadd.f32 %v3809_v58, %v3616_v44  ;;  %v6835_v3 = vpop.f32.mrb[139].mxu0  ;;  %3893 = vst.msk [vmem:[#allocation2 + $0xc0] sm:$0xff] %vm923_vm6, %v3861_v4  ;;  %v3620_v40 = vld [vmem:[#allocation2 + $0xe8] sm:$0xff] }
 0x205   : > { %v4506_v16 = vsel %vm923_vm6, %v4462_v46, 0.0  ;;  %v6830_v59 = vadd.f32 %v6676_v37, %v4293_v60  ;;  %v3988_v19 = vld [vmem:[#allocation2 + $0xb8] sm:$0xff]  ;;  %v4231_v47 = vadd.f32 %v6787_v20, %v3985_v55  ;;  %3896 = vst.msk [vmem:[#allocation2 + $0xd8] sm:$0xff] %vm923_vm6, %v3864_v5  ;;  %v4407_v2 = vsel %vm923_vm6, %v4329_v8, 0.0 }
 0x206   : > { %v4406_v56 = vadd.f32 %v4405_v51, %v4404_v31  ;;  %v4507_v41 = vadd.f32 %v4506_v16, %v4505_v30  ;;  %v4234_v45 = vadd.f32 %v6790_v0, %v3988_v19  ;;  %v3986_v35 = vld [vmem:[#allocation2 + $0xa8] sm:$0xff]  ;;  %4265 = vst.msk [vmem:[#allocation2 + $0xb0] sm:$0xff] %vm923_vm6, %v4233_v38  ;;  %3894 = vst.msk [vmem:[#allocation2 + $0xc8] sm:$0xff] %vm923_vm6, %v3862_v43  ;;  %v4510_v27 = vsel %vm923_vm6, %v4464_v11, 0.0 }
 0x207   : > { %4364 = vst.msk [vmem:[%s6682_s28 + $0x90] sm:$0xff] %vm923_vm6, %v6830_v59  ;;  %v4291_v21 = vld [vmem:[#allocation2 + $0x80] sm:$0xff]  ;;  %v4232_v20 = vadd.f32 %v6795_v50, %v3986_v35  ;;  %4263 = vst.msk [vmem:[#allocation2 + $0xa0] sm:$0xff] %vm923_vm6, %v4231_v47  ;;  %v4467_v46 = vmul.f32 %v6830_v59, %v6830_v59  ;;  %v4413_v55 = vsel %vm923_vm6, %v6830_v59, 0.0 }
 0x208   : > { %v4294_v24 = vld [vmem:[#allocation2 + $0x98] sm:$0xff]  ;;  %v4509_v0 = vadd.f32 %v4508_v61, %v4507_v41  ;;  %v4330_v12 = vadd.f32 %v6676_v37, %v4291_v21  ;;  %v4408_v63 = vadd.f32 %v4407_v2, %v4406_v56  ;;  %4266 = vst.msk [vmem:[#allocation2 + $0xb8] sm:$0xff] %vm923_vm6, %v4234_v45  ;;  %v5321_v10 = vpop.f32.mrb[140].mxu1  ;;  %v6863_v34 = vpop.f32.mrb[140].mxu0  ;;  %v4292_v7 = vld [vmem:[#allocation2 + $0x88] sm:$0xff] }
 0x209   : > { %v6851_v36 = vadd.f32 %v6676_v37, %v4294_v24  ;;  %4264 = vst.msk [vmem:[#allocation2 + $0xa8] sm:$0xff] %vm923_vm6, %v4232_v20  ;;  %v3867_v50 = vadd.f32 %v5321_v10, %v3621_v25  ;;  %v3822_v39 = vpop.f32.mrb[141].mxu1  ;;  %v4196_v51 = vpop.f32.mrb[141].mxu0  ;;  %v4331_v9 = vadd.f32 %v6676_v37, %v4292_v7  ;;  %v4516_v35 = vsel %vm923_vm6, %v4467_v46, 0.0 }
 0x20a   : > { %4362 = vst.msk [vmem:[%s6682_s28 + $0x80] sm:$0xff] %vm923_vm6, %v4330_v12  ;;  %v4409_v26 = vsel %vm923_vm6, %v4330_v12, 0.0  ;;  %v4465_v48 = vmul.f32 %v4330_v12, %v4330_v12  ;;  %v4511_v8 = vadd.f32 %v4510_v27, %v4509_v0  ;;  %v5322_v6 = vpop.f32.mrb[142].mxu1  ;;  %v3865_v54 = vadd.f32 %v3822_v39, %v3619_v57  ;;  %v3991_v23 = vld [vmem:[#allocation2 + $0xd0] sm:$0xff]  ;;  %v5356_v1 = vpop.f32.mrb[142].mxu0 }
 0x20b   : > { %4365 = vst.msk [vmem:[%s6682_s28 + $0x98] sm:$0xff] %vm923_vm6, %v6851_v36  ;;  %3899 = vst.msk [vmem:[#allocation2 + $0xf0] sm:$0xff] %vm923_vm6, %v3867_v50  ;;  %v3868_v17 = vadd.f32 %v5322_v6, %v3622_v32  ;;  %v3825_v62 = vpop.f32.mrb[143].mxu1  ;;  %v4410_v15 = vadd.f32 %v4409_v26, %v4408_v63  ;;  %v4237_v53 = vadd.f32 %v6821_v42, %v3991_v23  ;;  %v3989_v11 = vld [vmem:[#allocation2 + $0xc0] sm:$0xff]  ;;  %v4199_v22 = vpop.f32.mrb[143].mxu0  ;;  %v4411_v42 = vsel %vm923_vm6, %v4331_v9, 0.0 }
 0x20c   : > { %v4512_v14 = vsel %vm923_vm6, %v4465_v48, 0.0  ;;  %v3866_v33 = vadd.f32 %v3825_v62, %v3620_v40  ;;  %3897 = vst.msk [vmem:[#allocation2 + $0xe0] sm:$0xff] %vm923_vm6, %v3865_v54  ;;  %v3992_v31 = vld [vmem:[#allocation2 + $0xd8] sm:$0xff]  ;;  %v4468_v13 = vmul.f32 %v6851_v36, %v6851_v36  ;;  %v4235_v58 = vadd.f32 %v6824_v52, %v3989_v11  ;;  %4363 = vst.msk [vmem:[%s6682_s28 + $0x88] sm:$0xff] %vm923_vm6, %v4331_v9 }
 0x20d   : > { %3900 = vst.msk [vmem:[#allocation2 + $0xf8] sm:$0xff] %vm923_vm6, %v3868_v17  ;;  %v4513_v28 = vadd.f32 %v4512_v14, %v4511_v8  ;;  %v4297_v18 = vld [vmem:[#allocation2 + $0xb0] sm:$0xff]  ;;  %v4238_v30 = vadd.f32 %v6827_v29, %v3992_v31  ;;  %v3990_v16 = vld [vmem:[#allocation2 + $0xc8] sm:$0xff]  ;;  %v4466_v60 = vmul.f32 %v4331_v9, %v4331_v9  ;;  %4269 = vst.msk [vmem:[#allocation2 + $0xd0] sm:$0xff] %vm923_vm6, %v4237_v53  ;;  %v4415_v59 = vsel %vm923_vm6, %v6851_v36, 0.0 }
 0x20e   : > { %3898 = vst.msk [vmem:[#allocation2 + $0xe8] sm:$0xff] %vm923_vm6, %v3866_v33  ;;  %v4336_v49 = vadd.f32 %v6676_v37, %v4297_v18  ;;  %v4295_v4 = vld [vmem:[#allocation2 + $0xa0] sm:$0xff]  ;;  %v4236_v52 = vadd.f32 %v6835_v3, %v3990_v16  ;;  %v4412_v44 = vadd.f32 %v4411_v42, %v4410_v15  ;;  %4267 = vst.msk [vmem:[#allocation2 + $0xc0] sm:$0xff] %vm923_vm6, %v4235_v58  ;;  %v4518_v61 = vsel %vm923_vm6, %v4468_v13, 0.0 }
 0x20f   : > { %v4298_v5 = vld [vmem:[#allocation2 + $0xb8] sm:$0xff]  ;;  %v4334_v29 = vadd.f32 %v6676_v37, %v4295_v4  ;;  %4270 = vst.msk [vmem:[#allocation2 + $0xd8] sm:$0xff] %vm923_vm6, %v4238_v30  ;;  %v4514_v19 = vsel %vm923_vm6, %v4466_v60, 0.0 }
 0x210   : > { %v4337_v56 = vadd.f32 %v6676_v37, %v4298_v5  ;;  %v4296_v38 = vld [vmem:[#allocation2 + $0xa8] sm:$0xff]  ;;  %4368 = vst.msk [vmem:[%s6682_s28 + $0xb0] sm:$0xff] %vm923_vm6, %v4336_v49  ;;  %4268 = vst.msk [vmem:[#allocation2 + $0xc8] sm:$0xff] %vm923_vm6, %v4236_v52  ;;  %v4414_v3 = vadd.f32 %v4413_v55, %v4412_v44  ;;  %v4515_v41 = vadd.f32 %v4514_v19, %v4513_v28  ;;  %v4421_v14 = vsel %vm923_vm6, %v4336_v49, 0.0 }
 0x211   : > { %v4335_v43 = vadd.f32 %v6676_v37, %v4296_v38  ;;  %4366 = vst.msk [vmem:[%s6682_s28 + $0xa0] sm:$0xff] %vm923_vm6, %v4334_v29  ;;  %v4469_v47 = vmul.f32 %v4334_v29, %v4334_v29  ;;  %v4417_v2 = vsel %vm923_vm6, %v4334_v29, 0.0  ;;  %v4471_v57 = vmul.f32 %v4336_v49, %v4336_v49 }
 0x212   : > { %4369 = vst.msk [vmem:[%s6682_s28 + $0xb8] sm:$0xff] %vm923_vm6, %v4337_v56  ;;  %v3995_v45 = vld [vmem:[#allocation2 + $0xf0] sm:$0xff]  ;;  %v4517_v21 = vadd.f32 %v4516_v35, %v4515_v41  ;;  %v4416_v24 = vadd.f32 %v4415_v59, %v4414_v3  ;;  %v4472_v7 = vmul.f32 %v4337_v56, %v4337_v56  ;;  %v4423_v53 = vsel %vm923_vm6, %v4337_v56, 0.0 }
 0x213   : > { %4367 = vst.msk [vmem:[%s6682_s28 + $0xa8] sm:$0xff] %vm923_vm6, %v4335_v43  ;;  %v4419_v20 = vsel %vm923_vm6, %v4335_v43, 0.0  ;;  %v4470_v0 = vmul.f32 %v4335_v43, %v4335_v43  ;;  %v3993_v12 = vld [vmem:[#allocation2 + $0xe0] sm:$0xff]  ;;  %v4520_v25 = vsel %vm923_vm6, %v4469_v47, 0.0  ;;  %v4241_v10 = vadd.f32 %v6863_v34, %v3995_v45 }
 0x214   : > { %v3996_v63 = vld [vmem:[#allocation2 + $0xf8] sm:$0xff]  ;;  %v4239_v27 = vadd.f32 %v4196_v51, %v3993_v12  ;;  %v4418_v39 = vadd.f32 %v4417_v2, %v4416_v24  ;;  %v4519_v26 = vadd.f32 %v4518_v61, %v4517_v21  ;;  %v4301_v48 = vld [vmem:[#allocation2 + $0xd0] sm:$0xff]  ;;  %v4524_v9 = vsel %vm923_vm6, %v4471_v57, 0.0 }
 0x215   : > { %v4242_v50 = vadd.f32 %v5356_v1, %v3996_v63  ;;  %v3994_v36 = vld [vmem:[#allocation2 + $0xe8] sm:$0xff]  ;;  %v4522_v32 = vsel %vm923_vm6, %v4470_v0, 0.0  ;;  %v4340_v6 = vadd.f32 %v6676_v37, %v4301_v48  ;;  %v4299_v54 = vld [vmem:[#allocation2 + $0xc0] sm:$0xff]  ;;  %4273 = vst.msk [vmem:[#allocation2 + $0xf0] sm:$0xff] %vm923_vm6, %v4241_v10  ;;  %v4526_v13 = vsel %vm923_vm6, %v4472_v7, 0.0 }
 0x216   : > { %v4240_v8 = vadd.f32 %v4199_v22, %v3994_v36  ;;  %v4302_v17 = vld [vmem:[#allocation2 + $0xd8] sm:$0xff]  ;;  %4271 = vst.msk [vmem:[#allocation2 + $0xe0] sm:$0xff] %vm923_vm6, %v4239_v27  ;;  %v4521_v34 = vadd.f32 %v4520_v25, %v4519_v26  ;;  %v4420_v40 = vadd.f32 %v4419_v20, %v4418_v39  ;;  %v4338_v62 = vadd.f32 %v6676_v37, %v4299_v54 }
 0x217   : > { %4274 = vst.msk [vmem:[#allocation2 + $0xf8] sm:$0xff] %vm923_vm6, %v4242_v50  ;;  %v4341_v51 = vadd.f32 %v6676_v37, %v4302_v17  ;;  %v4300_v15 = vld [vmem:[#allocation2 + $0xc8] sm:$0xff]  ;;  %4372 = vst.msk [vmem:[%s6682_s28 + $0xd0] sm:$0xff] %vm923_vm6, %v4340_v6  ;;  %v4475_v30 = vmul.f32 %v4340_v6, %v4340_v6  ;;  %v4429_v43 = vsel %vm923_vm6, %v4340_v6, 0.0 }
 0x218   : > { %4272 = vst.msk [vmem:[#allocation2 + $0xe8] sm:$0xff] %vm923_vm6, %v4240_v8  ;;  %v4339_v23 = vadd.f32 %v6676_v37, %v4300_v15  ;;  %v4422_v33 = vadd.f32 %v4421_v14, %v4420_v40  ;;  %v4523_v1 = vadd.f32 %v4522_v32, %v4521_v34  ;;  %4370 = vst.msk [vmem:[%s6682_s28 + $0xc0] sm:$0xff] %vm923_vm6, %v4338_v62  ;;  %v4425_v11 = vsel %vm923_vm6, %v4338_v62, 0.0 }
 0x219   : > { %v4473_v46 = vmul.f32 %v4338_v62, %v4338_v62  ;;  %4373 = vst.msk [vmem:[%s6682_s28 + $0xd8] sm:$0xff] %vm923_vm6, %v4341_v51  ;;  %v4476_v3 = vmul.f32 %v4341_v51, %v4341_v51  ;;  %v4532_v35 = vsel %vm923_vm6, %v4475_v30, 0.0  ;;  %v4431_v59 = vsel %vm923_vm6, %v4341_v51, 0.0 }
 0x21a   : > { %4371 = vst.msk [vmem:[%s6682_s28 + $0xc8] sm:$0xff] %vm923_vm6, %v4339_v23  ;;  %v4525_v31 = vadd.f32 %v4524_v9, %v4523_v1  ;;  %v4424_v22 = vadd.f32 %v4423_v53, %v4422_v33  ;;  %v4474_v28 = vmul.f32 %v4339_v23, %v4339_v23  ;;  %v4427_v58 = vsel %vm923_vm6, %v4339_v23, 0.0 }
 0x21b   : > { %v4528_v18 = vsel %vm923_vm6, %v4473_v46, 0.0  ;;  %v4534_v24 = vsel %vm923_vm6, %v4476_v3, 0.0 }
 0x21c   : > { %v4426_v16 = vadd.f32 %v4425_v11, %v4424_v22  ;;  %v4527_v42 = vadd.f32 %v4526_v13, %v4525_v31  ;;  %v4305_v60 = vld [vmem:[#allocation2 + $0xf0] sm:$0xff]  ;;  %v4530_v5 = vsel %vm923_vm6, %v4474_v28, 0.0 }
 0x21d   : > { %v4303_v49 = vld [vmem:[#allocation2 + $0xe0] sm:$0xff]  ;;  %v4344_v52 = vadd.f32 %v6676_v37, %v4305_v60 }
 0x21e   : > { %v4306_v4 = vld [vmem:[#allocation2 + $0xf8] sm:$0xff]  ;;  %v4342_v44 = vadd.f32 %v6676_v37, %v4303_v49  ;;  %v4529_v38 = vadd.f32 %v4528_v18, %v4527_v42  ;;  %v4428_v55 = vadd.f32 %v4427_v58, %v4426_v16 }
 0x21f   : > { %v4345_v29 = vadd.f32 %v6676_v37, %v4306_v4  ;;  %v4304_v56 = vld [vmem:[#allocation2 + $0xe8] sm:$0xff]  ;;  %4376 = vst.msk [vmem:[%s6682_s28 + $0xf0] sm:$0xff] %vm923_vm6, %v4344_v52  ;;  %v4479_v25 = vmul.f32 %v4344_v52, %v4344_v52  ;;  %v4437_v36 = vsel %vm923_vm6, %v4344_v52, 0.0 }
 0x220   : > { %v4343_v19 = vadd.f32 %v6676_v37, %v4304_v56  ;;  %4374 = vst.msk [vmem:[%s6682_s28 + $0xe0] sm:$0xff] %vm923_vm6, %v4342_v44  ;;  %v4477_v41 = vmul.f32 %v4342_v44, %v4342_v44  ;;  %v4430_v47 = vadd.f32 %v4429_v43, %v4428_v55  ;;  %v4531_v45 = vadd.f32 %v4530_v5, %v4529_v38 }
 0x221   : > { %4377 = vst.msk [vmem:[%s6682_s28 + $0xf8] sm:$0xff] %vm923_vm6, %v4345_v29  ;;  %v4433_v37 = vsel %vm923_vm6, %v4342_v44, 0.0  ;;  %v4480_v39 = vmul.f32 %v4345_v29, %v4345_v29  ;;  %v4540_v8 = vsel %vm923_vm6, %v4479_v25, 0.0  ;;  %v4439_v57 = vsel %vm923_vm6, %v4345_v29, 0.0 }
 0x222   : > { %4375 = vst.msk [vmem:[%s6682_s28 + $0xe8] sm:$0xff] %vm923_vm6, %v4343_v19  ;;  %v4478_v61 = vmul.f32 %v4343_v19, %v4343_v19  ;;  %v4533_v2 = vadd.f32 %v4532_v35, %v4531_v45  ;;  %v4432_v21 = vadd.f32 %v4431_v59, %v4430_v47  ;;  %v4536_v20 = vsel %vm923_vm6, %v4477_v41, 0.0 }
 0x223   : > { %v4435_v0 = vsel %vm923_vm6, %v4343_v19, 0.0  ;;  %v4542_v54 = vsel %vm923_vm6, %v4480_v39, 0.0 }
 0x224   : > { %v4434_v12 = vadd.f32 %v4433_v37, %v4432_v21  ;;  %v4535_v63 = vadd.f32 %v4534_v24, %v4533_v2  ;;  %v4538_v10 = vsel %vm923_vm6, %v4478_v61, 0.0 }
 0x226   : > { %v4537_v27 = vadd.f32 %v4536_v20, %v4535_v63  ;;  %v4436_v50 = vadd.f32 %v4435_v0, %v4434_v12 }
 0x228   : > { %v4438_v26 = vadd.f32 %v4437_v36, %v4436_v50  ;;  %v4539_v48 = vadd.f32 %v4538_v10, %v4537_v27 }
 0x22a   : > { %v4440_v32 = vadd.f32 %v4439_v57, %v4438_v26  ;;  %v4541_v6 = vadd.f32 %v4540_v8, %v4539_v48 }
 0x22c   : > { %v4441_v17 = vrot.slane %v4440_v32, 4  ;;  %v4543_v34 = vadd.f32 %v4542_v54, %v4541_v6 }
 0x22e   : > { %v4442_v40 = vadd.f32 %v4441_v17, %v4440_v32  ;;  %v4544_v62 = vrot.slane %v4543_v34, 4 }
 0x230   : > { %v4443_v51 = vrot.slane %v4442_v40, 2  ;;  %v4545_v15 = vadd.f32 %v4544_v62, %v4543_v34 }
 0x232   : > { %v4444_v14 = vadd.f32 %v4443_v51, %v4442_v40  ;;  %v4546_v7 = vrot.slane %v4545_v15, 2 }
 0x234   : > { %v4445_v23 = vrot.slane %v4444_v14, 1  ;;  %v4547_v33 = vadd.f32 %v4546_v7, %v4545_v15 }
 0x236   : > { %v4446_v1 = vadd.f32 %v4445_v23, %v4444_v14  ;;  %v4548_v46 = vrot.slane %v4547_v33, 1 }
 0x238   : > { %4448 = vst.msk [vmem:[%s274_s6] sm:$0x1] %vm4447_vm0, %v4446_v1  ;;  %v4549_v9 = vadd.f32 %v4548_v46, %v4547_v33 }
 0x23a   : > { %4550 = vst.msk [vmem:[%s280_s9] sm:$0x1] %vm4447_vm0, %v4549_v9 }
 0x23b PF: > { %s16_s20 = sadd.s32 1, %s5418_s20   ;;  %s7083_s18 = smov %s5414_s19 }
 0x23c   : > { %p13_p5 = scmp.ge.s32.totalorder %s16_s20, 4   ;;  %s7084_s19 = smov %s7086_s21 }
 0x23e   :  { %15 = sbr.rel (!%p13_p5) target bundleno = 2 (0x2), region = 94 }

</bundles_post_ra>
